<compile_context>
chip_gen: v7x
topology: tpu7x:2x2x1
jax: 0.10.0
libtpu: 0.0.40
codegen_flags: <defaults>
</compile_context>

<pallas_src>
import functools

import jax
import jax.numpy as jnp
from jax.experimental import pallas as pl
from jax.experimental.pallas import tpu as pltpu


def _rcu_kernel(x_ref, w1_ref, b1_ref, w2_ref, o_ref, *, F, H, W, C, mxu_dtype):
    HW = H * W

    # Halo bookkeeping: hoisted once per grid step, shared by every face in the
    # block and by both convs (reused 2*F times).
    col = jax.lax.broadcasted_iota(jnp.int32, (C, HW), 1) % W
    left_ok = col >= 1            # tap taken from the left neighbour  (kx == 0)
    right_ok = col <= W - 2       # tap taken from the right neighbour (kx == 2)
    zpad = jnp.zeros((C, W + 1), jnp.float32)
    bias = b1_ref[...]            # (C, 1) f32, lane-broadcast on add

    def conv3x3(inp, w_ref):
        # Lane-pad by W+1 zeros on each side so every tap is a static in-bounds
        # lane slice; rows falling outside [0, H) land in the zero pad, column
        # wrap-around is masked out with the precomputed iota masks.
        xp = jnp.concatenate([zpad, inp, zpad], axis=1)      # (C, HW + 2W + 2)
        acc = None
        for ky in range(3):
            for kx in range(3):
                if ky == 1 and kx == 1:
                    tap = inp                                # centre tap: no shift
                else:
                    off = (W + 1) + (ky - 1) * W + (kx - 1)
                    tap = xp[:, off:off + HW]                # (C, HW)
                    if kx == 0:
                        tap = jnp.where(left_ok, tap, 0.0)
                    elif kx == 2:
                        tap = jnp.where(right_ok, tap, 0.0)
                d = jnp.dot(w_ref[ky * 3 + kx],              # (Cout, Cin), mxu_dtype
                            tap.astype(mxu_dtype),
                            preferred_element_type=jnp.float32)
                acc = d if acc is None else acc + d          # first tap inits acc
        return acc                                           # (Cout, HW), f32

    for f in range(F):                                       # unrolled face loop
        x = x_ref[f].astype(jnp.float32)                     # (C, HW), lane-dense
        h = conv3x3(jnp.maximum(x, 0.0), w1_ref) + bias      # relu -> conv1 + bias
        h = jnp.maximum(h, 0.0)                              # relu
        y = conv3x3(h, w2_ref)                               # conv2 (no bias)
        o_ref[f] = (y + x).astype(o_ref.dtype)               # residual uses pre-relu x


def _pick_faces_per_step(n, target):
    """Largest divisor of n that is <= target (keeps the grid exact)."""
    f = max(1, min(n, target))
    while n % f:
        f -= 1
    return f


def residual_conv_unit(args, w1, b1, w2, *, mxu_dtype=jnp.float32,
                       faces_per_step=4):
    """args = (x_nchw, to_process, batch_size) matching the PyTorch forward."""
    x_nchw, to_process, batch_size = args
    del to_process, batch_size          # metadata only (see TODO above)
    N, C, H, W = x_nchw.shape
    HW = H * W
    F = _pick_faces_per_step(N, faces_per_step)

    x_flat = x_nchw.reshape(N, C, HW)   # free row-major reshape, no transpose

    # PyTorch conv weight (Cout, Cin, kH, kW) -> (9, Cout, Cin), tap-major.
    w1_k = jnp.transpose(w1, (2, 3, 0, 1)).reshape(9, C, C).astype(mxu_dtype)
    w2_k = jnp.transpose(w2, (2, 3, 0, 1)).reshape(9, C, C).astype(mxu_dtype)
    b1_k = b1.reshape(C, 1).astype(jnp.float32)

    kernel = functools.partial(_rcu_kernel, F=F, H=H, W=W, C=C,
                               mxu_dtype=mxu_dtype)

    out_flat = pl.pallas_call(
        kernel,
        out_shape=jax.ShapeDtypeStruct((N, C, HW), x_nchw.dtype),
        grid_spec=pltpu.PrefetchScalarGridSpec(
            num_scalar_prefetch=0,
            grid=(N // F,),                             # blocks of F cube faces
            in_specs=[
                pl.BlockSpec((F, C, HW), lambda s: (s, 0, 0)),
                pl.BlockSpec((9, C, C), lambda s: (0, 0, 0)),
                pl.BlockSpec((C, 1), lambda s: (0, 0)),
                pl.BlockSpec((9, C, C), lambda s: (0, 0, 0)),
            ],
            out_specs=pl.BlockSpec((F, C, HW), lambda s: (s, 0, 0)),
        ),
        compiler_params=pltpu.CompilerParams(
            dimension_semantics=("parallel",)),
    )(x_flat, w1_k, b1_k, w2_k)

    return out_flat.reshape(N, C, H, W)


def _reference(x_nchw, w1, b1, w2):
    """Pure-JAX reference of the PyTorch forward, NCHW."""
    dn = ("NCHW", "OIHW", "NCHW")
    out = jax.nn.relu(x_nchw)
    out = jax.lax.conv_general_dilated(out, w1, (1, 1), [(1, 1), (1, 1)],
                                       dimension_numbers=dn)
    out = out + b1.reshape(1, -1, 1, 1)
    out = jax.nn.relu(out)
    out = jax.lax.conv_general_dilated(out, w2, (1, 1), [(1, 1), (1, 1)],
                                       dimension_numbers=dn)
    return out + x_nchw


if __name__ == "__main__":
    # CubeMidasNet operates on cube faces: batch=2 samples x 6 faces = 12 face
    # images -> a 3-step fully-parallel grid (4 faces per step).
    FACES, C, H, W = 2 * 6, 4, 16, 16
    key = jax.random.PRNGKey(0)
    kx, kw1, kb1, kw2 = jax.random.split(key, 4)

    x = jax.random.normal(kx, (FACES, C, H, W), dtype=jnp.float32)
    # deterministic parameter init (shapes from SparseCubeConv2d(features, features, 3))
    w1 = jax.random.normal(kw1, (C, C, 3, 3), dtype=jnp.float32) * 0.1
    b1 = jax.random.normal(kb1, (C,), dtype=jnp.float32) * 0.1
    w2 = jax.random.normal(kw2, (C, C, 3, 3), dtype=jnp.float32) * 0.1

    to_process = None   # face-selection metadata placeholder (see TODO above)
    batch_size = 2

    ref = jax.block_until_ready(_reference(x, w1, b1, w2))

    # f32 MXU operands: tight tolerance.
    out = jax.block_until_ready(
        residual_conv_unit((x, to_process, batch_size), w1, b1, w2))
    assert out.shape == (FACES, C, H, W)
    assert jnp.allclose(out, ref, atol=1e-4, rtol=1e-4), "f32 mismatch vs reference"

    # bf16 MXU operands (v5e/v6e/v7x MXU fast path), f32 accumulation: loose tolerance.
    out_bf16 = jax.block_until_ready(
        residual_conv_unit((x, to_process, batch_size), w1, b1, w2,
                           mxu_dtype=jnp.bfloat16))
    assert out_bf16.shape == (FACES, C, H, W)
    assert jnp.allclose(out_bf16, ref, atol=1e-1, rtol=1e-1), "bf16 mismatch vs reference"

    print("KERNEL_OK")
</pallas_src>

<mosaic_0001>
module attributes {stable_mosaic.version = 11 : i64} {
  func.func @_rcu_kernel(%arg0: i32, %arg1: memref<4x4x256xf32, #tpu.memory_space<vmem>>, %arg2: memref<9x4x4xf32, #tpu.memory_space<vmem>>, %arg3: memref<4x1xf32, #tpu.memory_space<vmem>>, %arg4: memref<9x4x4xf32, #tpu.memory_space<vmem>>, %arg5: memref<4x4x256xf32, #tpu.memory_space<vmem>>) attributes {dimension_semantics = [#tpu.dimension_semantics<parallel>], iteration_bounds = array<i64: 3>, scalar_prefetch = 0 : i64, scratch_operands = 0 : i64, tpu.core_type = #tpu.core_type<tc>, window_params = [{transform_indices = @transform_0, window_bounds = array<i64: 4, 4, 256>}, {pipeline_mode = #tpu.pipeline_mode<synchronous>, transform_indices = @transform_1, window_bounds = array<i64: 9, 4, 4>}, {pipeline_mode = #tpu.pipeline_mode<synchronous>, transform_indices = @transform_2, window_bounds = array<i64: 4, 1>}, {pipeline_mode = #tpu.pipeline_mode<synchronous>, transform_indices = @transform_3, window_bounds = array<i64: 9, 4, 4>}, {transform_indices = @transform_4, window_bounds = array<i64: 4, 4, 256>}]} {
    %0 = tpu.iota {dimensions = array<i32: 1>} : vector<4x256xi32>
    %c16_i32 = arith.constant 16 : i32
    %c0_i32 = arith.constant 0 : i32
    %1 = arith.cmpi eq, %c16_i32, %c0_i32 : i32
    %c1_i32 = arith.constant 1 : i32
    %2 = arith.select %1, %c1_i32, %c16_i32 : i32
    %3 = vector.broadcast %2 : i32 to vector<4x256xi32>
    %4 = arith.remsi %0, %3 : vector<4x256xi32>
    %c0_i32_0 = arith.constant 0 : i32
    %5 = vector.broadcast %c0_i32_0 : i32 to vector<4x256xi32>
    %6 = arith.cmpi ne, %4, %5 : vector<4x256xi32>
    %c0_i32_1 = arith.constant 0 : i32
    %7 = vector.broadcast %c0_i32_1 : i32 to vector<4x256xi32>
    %8 = arith.cmpi slt, %4, %7 : vector<4x256xi32>
    %c0_i32_2 = arith.constant 0 : i32
    %9 = arith.cmpi slt, %2, %c0_i32_2 : i32
    %10 = vector.broadcast %9 : i1 to vector<4x256xi1>
    %11 = vector.broadcast %10 : vector<4x256xi1> to vector<4x256xi1>
    %12 = arith.xori %8, %11 : vector<4x256xi1>
    %13 = arith.andi %12, %6 : vector<4x256xi1>
    %14 = vector.broadcast %2 : i32 to vector<4x256xi32>
    %15 = arith.addi %4, %14 : vector<4x256xi32>
    %16 = arith.select %13, %15, %4 : vector<4x256xi1>, vector<4x256xi32>
    %c1_i32_3 = arith.constant 1 : i32
    %17 = vector.broadcast %c1_i32_3 : i32 to vector<4x256xi32>
    %18 = arith.cmpi sge, %16, %17 : vector<4x256xi32>
    %c14_i32 = arith.constant 14 : i32
    %19 = vector.broadcast %c14_i32 : i32 to vector<4x256xi32>
    %20 = arith.cmpi sle, %16, %19 : vector<4x256xi32>
    %cst = arith.constant 0.000000e+00 : f32
    %21 = vector.broadcast %cst : f32 to vector<4x17xf32>
    %c0 = arith.constant 0 : index
    %c0_4 = arith.constant 0 : index
    %22 = vector.load %arg3[%c0, %c0_4] : memref<4x1xf32, #tpu.memory_space<vmem>>, vector<4x1xf32>
    %c0_5 = arith.constant 0 : index
    %c0_6 = arith.constant 0 : index
    %c0_7 = arith.constant 0 : index
    %23 = vector.load %arg1[%c0_5, %c0_6, %c0_7] : memref<4x4x256xf32, #tpu.memory_space<vmem>>, vector<1x4x256xf32>
    %24 = vector.shape_cast %23 : vector<1x4x256xf32> to vector<4x256xf32>
    %cst_8 = arith.constant 0.000000e+00 : f32
    %25 = vector.broadcast %cst_8 : f32 to vector<4x256xf32>
    %26 = arith.maximumf %24, %25 : vector<4x256xf32>
    %27 = tpu.concatenate %21, %26, %21 in 1 : vector<4x17xf32>, vector<4x256xf32>, vector<4x17xf32> -> vector<4x290xf32>
    %28 = vector.extract_strided_slice %27 {offsets = [0, 0], sizes = [4, 256], strides = [1, 1]} : vector<4x290xf32> to vector<4x256xf32>
    %cst_9 = arith.constant 0.000000e+00 : f32
    %29 = vector.broadcast %cst_9 : f32 to vector<4x256xf32>
    %30 = arith.select %18, %28, %29 : vector<4x256xi1>, vector<4x256xf32>
    %c0_10 = arith.constant 0 : index
    %c0_11 = arith.constant 0 : index
    %c0_12 = arith.constant 0 : index
    %31 = vector.load %arg2[%c0_10, %c0_11, %c0_12] : memref<9x4x4xf32, #tpu.memory_space<vmem>>, vector<1x4x4xf32>
    %32 = vector.shape_cast %31 : vector<1x4x4xf32> to vector<4x4xf32>
    %cst_13 = arith.constant dense<0.000000e+00> : vector<4x256xf32>
    %33 = tpu.matmul %32, %30, %cst_13 {dimension_numbers = #tpu.dot_dimension_numbers<[1], [0], [0], [1], [0, 0, 1, 1], [], []>} : vector<4x4xf32>, vector<4x256xf32>, vector<4x256xf32> -> vector<4x256xf32>
    %34 = vector.extract_strided_slice %27 {offsets = [0, 1], sizes = [4, 256], strides = [1, 1]} : vector<4x290xf32> to vector<4x256xf32>
    %c1 = arith.constant 1 : index
    %c0_14 = arith.constant 0 : index
    %c0_15 = arith.constant 0 : index
    %35 = vector.load %arg2[%c1, %c0_14, %c0_15] : memref<9x4x4xf32, #tpu.memory_space<vmem>>, vector<1x4x4xf32>
    %36 = vector.shape_cast %35 : vector<1x4x4xf32> to vector<4x4xf32>
    %cst_16 = arith.constant dense<0.000000e+00> : vector<4x256xf32>
    %37 = tpu.matmul %36, %34, %cst_16 {dimension_numbers = #tpu.dot_dimension_numbers<[1], [0], [0], [1], [0, 0, 1, 1], [], []>} : vector<4x4xf32>, vector<4x256xf32>, vector<4x256xf32> -> vector<4x256xf32>
    %38 = arith.addf %33, %37 : vector<4x256xf32>
    %39 = vector.extract_strided_slice %27 {offsets = [0, 2], sizes = [4, 256], strides = [1, 1]} : vector<4x290xf32> to vector<4x256xf32>
    %cst_17 = arith.constant 0.000000e+00 : f32
    %40 = vector.broadcast %cst_17 : f32 to vector<4x256xf32>
    %41 = arith.select %20, %39, %40 : vector<4x256xi1>, vector<4x256xf32>
    %c2 = arith.constant 2 : index
    %c0_18 = arith.constant 0 : index
    %c0_19 = arith.constant 0 : index
    %42 = vector.load %arg2[%c2, %c0_18, %c0_19] : memref<9x4x4xf32, #tpu.memory_space<vmem>>, vector<1x4x4xf32>
    %43 = vector.shape_cast %42 : vector<1x4x4xf32> to vector<4x4xf32>
    %cst_20 = arith.constant dense<0.000000e+00> : vector<4x256xf32>
    %44 = tpu.matmul %43, %41, %cst_20 {dimension_numbers = #tpu.dot_dimension_numbers<[1], [0], [0], [1], [0, 0, 1, 1], [], []>} : vector<4x4xf32>, vector<4x256xf32>, vector<4x256xf32> -> vector<4x256xf32>
    %45 = arith.addf %38, %44 : vector<4x256xf32>
    %46 = vector.extract_strided_slice %27 {offsets = [0, 16], sizes = [4, 256], strides = [1, 1]} : vector<4x290xf32> to vector<4x256xf32>
    %cst_21 = arith.constant 0.000000e+00 : f32
    %47 = vector.broadcast %cst_21 : f32 to vector<4x256xf32>
    %48 = arith.select %18, %46, %47 : vector<4x256xi1>, vector<4x256xf32>
    %c3 = arith.constant 3 : index
    %c0_22 = arith.constant 0 : index
    %c0_23 = arith.constant 0 : index
    %49 = vector.load %arg2[%c3, %c0_22, %c0_23] : memref<9x4x4xf32, #tpu.memory_space<vmem>>, vector<1x4x4xf32>
    %50 = vector.shape_cast %49 : vector<1x4x4xf32> to vector<4x4xf32>
    %cst_24 = arith.constant dense<0.000000e+00> : vector<4x256xf32>
    %51 = tpu.matmul %50, %48, %cst_24 {dimension_numbers = #tpu.dot_dimension_numbers<[1], [0], [0], [1], [0, 0, 1, 1], [], []>} : vector<4x4xf32>, vector<4x256xf32>, vector<4x256xf32> -> vector<4x256xf32>
    %52 = arith.addf %45, %51 : vector<4x256xf32>
    %c4 = arith.constant 4 : index
    %c0_25 = arith.constant 0 : index
    %c0_26 = arith.constant 0 : index
    %53 = vector.load %arg2[%c4, %c0_25, %c0_26] : memref<9x4x4xf32, #tpu.memory_space<vmem>>, vector<1x4x4xf32>
    %54 = vector.shape_cast %53 : vector<1x4x4xf32> to vector<4x4xf32>
    %cst_27 = arith.constant dense<0.000000e+00> : vector<4x256xf32>
    %55 = tpu.matmul %54, %26, %cst_27 {dimension_numbers = #tpu.dot_dimension_numbers<[1], [0], [0], [1], [0, 0, 1, 1], [], []>} : vector<4x4xf32>, vector<4x256xf32>, vector<4x256xf32> -> vector<4x256xf32>
    %56 = arith.addf %52, %55 : vector<4x256xf32>
    %57 = vector.extract_strided_slice %27 {offsets = [0, 18], sizes = [4, 256], strides = [1, 1]} : vector<4x290xf32> to vector<4x256xf32>
    %cst_28 = arith.constant 0.000000e+00 : f32
    %58 = vector.broadcast %cst_28 : f32 to vector<4x256xf32>
    %59 = arith.select %20, %57, %58 : vector<4x256xi1>, vector<4x256xf32>
    %c5 = arith.constant 5 : index
    %c0_29 = arith.constant 0 : index
    %c0_30 = arith.constant 0 : index
    %60 = vector.load %arg2[%c5, %c0_29, %c0_30] : memref<9x4x4xf32, #tpu.memory_space<vmem>>, vector<1x4x4xf32>
    %61 = vector.shape_cast %60 : vector<1x4x4xf32> to vector<4x4xf32>
    %cst_31 = arith.constant dense<0.000000e+00> : vector<4x256xf32>
    %62 = tpu.matmul %61, %59, %cst_31 {dimension_numbers = #tpu.dot_dimension_numbers<[1], [0], [0], [1], [0, 0, 1, 1], [], []>} : vector<4x4xf32>, vector<4x256xf32>, vector<4x256xf32> -> vector<4x256xf32>
    %63 = arith.addf %56, %62 : vector<4x256xf32>
    %64 = vector.extract_strided_slice %27 {offsets = [0, 32], sizes = [4, 256], strides = [1, 1]} : vector<4x290xf32> to vector<4x256xf32>
    %cst_32 = arith.constant 0.000000e+00 : f32
    %65 = vector.broadcast %cst_32 : f32 to vector<4x256xf32>
    %66 = arith.select %18, %64, %65 : vector<4x256xi1>, vector<4x256xf32>
    %c6 = arith.constant 6 : index
    %c0_33 = arith.constant 0 : index
    %c0_34 = arith.constant 0 : index
    %67 = vector.load %arg2[%c6, %c0_33, %c0_34] : memref<9x4x4xf32, #tpu.memory_space<vmem>>, vector<1x4x4xf32>
    %68 = vector.shape_cast %67 : vector<1x4x4xf32> to vector<4x4xf32>
    %cst_35 = arith.constant dense<0.000000e+00> : vector<4x256xf32>
    %69 = tpu.matmul %68, %66, %cst_35 {dimension_numbers = #tpu.dot_dimension_numbers<[1], [0], [0], [1], [0, 0, 1, 1], [], []>} : vector<4x4xf32>, vector<4x256xf32>, vector<4x256xf32> -> vector<4x256xf32>
    %70 = arith.addf %63, %69 : vector<4x256xf32>
    %71 = vector.extract_strided_slice %27 {offsets = [0, 33], sizes = [4, 256], strides = [1, 1]} : vector<4x290xf32> to vector<4x256xf32>
    %c7 = arith.constant 7 : index
    %c0_36 = arith.constant 0 : index
    %c0_37 = arith.constant 0 : index
    %72 = vector.load %arg2[%c7, %c0_36, %c0_37] : memref<9x4x4xf32, #tpu.memory_space<vmem>>, vector<1x4x4xf32>
    %73 = vector.shape_cast %72 : vector<1x4x4xf32> to vector<4x4xf32>
    %cst_38 = arith.constant dense<0.000000e+00> : vector<4x256xf32>
    %74 = tpu.matmul %73, %71, %cst_38 {dimension_numbers = #tpu.dot_dimension_numbers<[1], [0], [0], [1], [0, 0, 1, 1], [], []>} : vector<4x4xf32>, vector<4x256xf32>, vector<4x256xf32> -> vector<4x256xf32>
    %75 = arith.addf %70, %74 : vector<4x256xf32>
    %76 = vector.extract_strided_slice %27 {offsets = [0, 34], sizes = [4, 256], strides = [1, 1]} : vector<4x290xf32> to vector<4x256xf32>
    %cst_39 = arith.constant 0.000000e+00 : f32
    %77 = vector.broadcast %cst_39 : f32 to vector<4x256xf32>
    %78 = arith.select %20, %76, %77 : vector<4x256xi1>, vector<4x256xf32>
    %c8 = arith.constant 8 : index
    %c0_40 = arith.constant 0 : index
    %c0_41 = arith.constant 0 : index
    %79 = vector.load %arg2[%c8, %c0_40, %c0_41] : memref<9x4x4xf32, #tpu.memory_space<vmem>>, vector<1x4x4xf32>
    %80 = vector.shape_cast %79 : vector<1x4x4xf32> to vector<4x4xf32>
    %cst_42 = arith.constant dense<0.000000e+00> : vector<4x256xf32>
    %81 = tpu.matmul %80, %78, %cst_42 {dimension_numbers = #tpu.dot_dimension_numbers<[1], [0], [0], [1], [0, 0, 1, 1], [], []>} : vector<4x4xf32>, vector<4x256xf32>, vector<4x256xf32> -> vector<4x256xf32>
    %82 = arith.addf %75, %81 : vector<4x256xf32>
    %83 = vector.broadcast %22 : vector<4x1xf32> to vector<4x256xf32>
    %84 = arith.addf %82, %83 : vector<4x256xf32>
    %cst_43 = arith.constant 0.000000e+00 : f32
    %85 = vector.broadcast %cst_43 : f32 to vector<4x256xf32>
    %86 = arith.maximumf %84, %85 : vector<4x256xf32>
    %87 = tpu.concatenate %21, %86, %21 in 1 : vector<4x17xf32>, vector<4x256xf32>, vector<4x17xf32> -> vector<4x290xf32>
    %88 = vector.extract_strided_slice %87 {offsets = [0, 0], sizes = [4, 256], strides = [1, 1]} : vector<4x290xf32> to vector<4x256xf32>
    %cst_44 = arith.constant 0.000000e+00 : f32
    %89 = vector.broadcast %cst_44 : f32 to vector<4x256xf32>
    %90 = arith.select %18, %88, %89 : vector<4x256xi1>, vector<4x256xf32>
    %c0_45 = arith.constant 0 : index
    %c0_46 = arith.constant 0 : index
    %c0_47 = arith.constant 0 : index
    %91 = vector.load %arg4[%c0_45, %c0_46, %c0_47] : memref<9x4x4xf32, #tpu.memory_space<vmem>>, vector<1x4x4xf32>
    %92 = vector.shape_cast %91 : vector<1x4x4xf32> to vector<4x4xf32>
    %cst_48 = arith.constant dense<0.000000e+00> : vector<4x256xf32>
    %93 = tpu.matmul %92, %90, %cst_48 {dimension_numbers = #tpu.dot_dimension_numbers<[1], [0], [0], [1], [0, 0, 1, 1], [], []>} : vector<4x4xf32>, vector<4x256xf32>, vector<4x256xf32> -> vector<4x256xf32>
    %94 = vector.extract_strided_slice %87 {offsets = [0, 1], sizes = [4, 256], strides = [1, 1]} : vector<4x290xf32> to vector<4x256xf32>
    %c1_49 = arith.constant 1 : index
    %c0_50 = arith.constant 0 : index
    %c0_51 = arith.constant 0 : index
    %95 = vector.load %arg4[%c1_49, %c0_50, %c0_51] : memref<9x4x4xf32, #tpu.memory_space<vmem>>, vector<1x4x4xf32>
    %96 = vector.shape_cast %95 : vector<1x4x4xf32> to vector<4x4xf32>
    %cst_52 = arith.constant dense<0.000000e+00> : vector<4x256xf32>
    %97 = tpu.matmul %96, %94, %cst_52 {dimension_numbers = #tpu.dot_dimension_numbers<[1], [0], [0], [1], [0, 0, 1, 1], [], []>} : vector<4x4xf32>, vector<4x256xf32>, vector<4x256xf32> -> vector<4x256xf32>
    %98 = arith.addf %93, %97 : vector<4x256xf32>
    %99 = vector.extract_strided_slice %87 {offsets = [0, 2], sizes = [4, 256], strides = [1, 1]} : vector<4x290xf32> to vector<4x256xf32>
    %cst_53 = arith.constant 0.000000e+00 : f32
    %100 = vector.broadcast %cst_53 : f32 to vector<4x256xf32>
    %101 = arith.select %20, %99, %100 : vector<4x256xi1>, vector<4x256xf32>
    %c2_54 = arith.constant 2 : index
    %c0_55 = arith.constant 0 : index
    %c0_56 = arith.constant 0 : index
    %102 = vector.load %arg4[%c2_54, %c0_55, %c0_56] : memref<9x4x4xf32, #tpu.memory_space<vmem>>, vector<1x4x4xf32>
    %103 = vector.shape_cast %102 : vector<1x4x4xf32> to vector<4x4xf32>
    %cst_57 = arith.constant dense<0.000000e+00> : vector<4x256xf32>
    %104 = tpu.matmul %103, %101, %cst_57 {dimension_numbers = #tpu.dot_dimension_numbers<[1], [0], [0], [1], [0, 0, 1, 1], [], []>} : vector<4x4xf32>, vector<4x256xf32>, vector<4x256xf32> -> vector<4x256xf32>
    %105 = arith.addf %98, %104 : vector<4x256xf32>
    %106 = vector.extract_strided_slice %87 {offsets = [0, 16], sizes = [4, 256], strides = [1, 1]} : vector<4x290xf32> to vector<4x256xf32>
    %cst_58 = arith.constant 0.000000e+00 : f32
    %107 = vector.broadcast %cst_58 : f32 to vector<4x256xf32>
    %108 = arith.select %18, %106, %107 : vector<4x256xi1>, vector<4x256xf32>
    %c3_59 = arith.constant 3 : index
    %c0_60 = arith.constant 0 : index
    %c0_61 = arith.constant 0 : index
    %109 = vector.load %arg4[%c3_59, %c0_60, %c0_61] : memref<9x4x4xf32, #tpu.memory_space<vmem>>, vector<1x4x4xf32>
    %110 = vector.shape_cast %109 : vector<1x4x4xf32> to vector<4x4xf32>
    %cst_62 = arith.constant dense<0.000000e+00> : vector<4x256xf32>
    %111 = tpu.matmul %110, %108, %cst_62 {dimension_numbers = #tpu.dot_dimension_numbers<[1], [0], [0], [1], [0, 0, 1, 1], [], []>} : vector<4x4xf32>, vector<4x256xf32>, vector<4x256xf32> -> vector<4x256xf32>
    %112 = arith.addf %105, %111 : vector<4x256xf32>
    %c4_63 = arith.constant 4 : index
    %c0_64 = arith.constant 0 : index
    %c0_65 = arith.constant 0 : index
    %113 = vector.load %arg4[%c4_63, %c0_64, %c0_65] : memref<9x4x4xf32, #tpu.memory_space<vmem>>, vector<1x4x4xf32>
    %114 = vector.shape_cast %113 : vector<1x4x4xf32> to vector<4x4xf32>
    %cst_66 = arith.constant dense<0.000000e+00> : vector<4x256xf32>
    %115 = tpu.matmul %114, %86, %cst_66 {dimension_numbers = #tpu.dot_dimension_numbers<[1], [0], [0], [1], [0, 0, 1, 1], [], []>} : vector<4x4xf32>, vector<4x256xf32>, vector<4x256xf32> -> vector<4x256xf32>
    %116 = arith.addf %112, %115 : vector<4x256xf32>
    %117 = vector.extract_strided_slice %87 {offsets = [0, 18], sizes = [4, 256], strides = [1, 1]} : vector<4x290xf32> to vector<4x256xf32>
    %cst_67 = arith.constant 0.000000e+00 : f32
    %118 = vector.broadcast %cst_67 : f32 to vector<4x256xf32>
    %119 = arith.select %20, %117, %118 : vector<4x256xi1>, vector<4x256xf32>
    %c5_68 = arith.constant 5 : index
    %c0_69 = arith.constant 0 : index
    %c0_70 = arith.constant 0 : index
    %120 = vector.load %arg4[%c5_68, %c0_69, %c0_70] : memref<9x4x4xf32, #tpu.memory_space<vmem>>, vector<1x4x4xf32>
    %121 = vector.shape_cast %120 : vector<1x4x4xf32> to vector<4x4xf32>
    %cst_71 = arith.constant dense<0.000000e+00> : vector<4x256xf32>
    %122 = tpu.matmul %121, %119, %cst_71 {dimension_numbers = #tpu.dot_dimension_numbers<[1], [0], [0], [1], [0, 0, 1, 1], [], []>} : vector<4x4xf32>, vector<4x256xf32>, vector<4x256xf32> -> vector<4x256xf32>
    %123 = arith.addf %116, %122 : vector<4x256xf32>
    %124 = vector.extract_strided_slice %87 {offsets = [0, 32], sizes = [4, 256], strides = [1, 1]} : vector<4x290xf32> to vector<4x256xf32>
    %cst_72 = arith.constant 0.000000e+00 : f32
    %125 = vector.broadcast %cst_72 : f32 to vector<4x256xf32>
    %126 = arith.select %18, %124, %125 : vector<4x256xi1>, vector<4x256xf32>
    %c6_73 = arith.constant 6 : index
    %c0_74 = arith.constant 0 : index
    %c0_75 = arith.constant 0 : index
    %127 = vector.load %arg4[%c6_73, %c0_74, %c0_75] : memref<9x4x4xf32, #tpu.memory_space<vmem>>, vector<1x4x4xf32>
    %128 = vector.shape_cast %127 : vector<1x4x4xf32> to vector<4x4xf32>
    %cst_76 = arith.constant dense<0.000000e+00> : vector<4x256xf32>
    %129 = tpu.matmul %128, %126, %cst_76 {dimension_numbers = #tpu.dot_dimension_numbers<[1], [0], [0], [1], [0, 0, 1, 1], [], []>} : vector<4x4xf32>, vector<4x256xf32>, vector<4x256xf32> -> vector<4x256xf32>
    %130 = arith.addf %123, %129 : vector<4x256xf32>
    %131 = vector.extract_strided_slice %87 {offsets = [0, 33], sizes = [4, 256], strides = [1, 1]} : vector<4x290xf32> to vector<4x256xf32>
    %c7_77 = arith.constant 7 : index
    %c0_78 = arith.constant 0 : index
    %c0_79 = arith.constant 0 : index
    %132 = vector.load %arg4[%c7_77, %c0_78, %c0_79] : memref<9x4x4xf32, #tpu.memory_space<vmem>>, vector<1x4x4xf32>
    %133 = vector.shape_cast %132 : vector<1x4x4xf32> to vector<4x4xf32>
    %cst_80 = arith.constant dense<0.000000e+00> : vector<4x256xf32>
    %134 = tpu.matmul %133, %131, %cst_80 {dimension_numbers = #tpu.dot_dimension_numbers<[1], [0], [0], [1], [0, 0, 1, 1], [], []>} : vector<4x4xf32>, vector<4x256xf32>, vector<4x256xf32> -> vector<4x256xf32>
    %135 = arith.addf %130, %134 : vector<4x256xf32>
    %136 = vector.extract_strided_slice %87 {offsets = [0, 34], sizes = [4, 256], strides = [1, 1]} : vector<4x290xf32> to vector<4x256xf32>
    %cst_81 = arith.constant 0.000000e+00 : f32
    %137 = vector.broadcast %cst_81 : f32 to vector<4x256xf32>
    %138 = arith.select %20, %136, %137 : vector<4x256xi1>, vector<4x256xf32>
    %c8_82 = arith.constant 8 : index
    %c0_83 = arith.constant 0 : index
    %c0_84 = arith.constant 0 : index
    %139 = vector.load %arg4[%c8_82, %c0_83, %c0_84] : memref<9x4x4xf32, #tpu.memory_space<vmem>>, vector<1x4x4xf32>
    %140 = vector.shape_cast %139 : vector<1x4x4xf32> to vector<4x4xf32>
    %cst_85 = arith.constant dense<0.000000e+00> : vector<4x256xf32>
    %141 = tpu.matmul %140, %138, %cst_85 {dimension_numbers = #tpu.dot_dimension_numbers<[1], [0], [0], [1], [0, 0, 1, 1], [], []>} : vector<4x4xf32>, vector<4x256xf32>, vector<4x256xf32> -> vector<4x256xf32>
    %142 = arith.addf %135, %141 : vector<4x256xf32>
    %143 = arith.addf %142, %24 : vector<4x256xf32>
    %c0_86 = arith.constant 0 : index
    %c0_87 = arith.constant 0 : index
    %c0_88 = arith.constant 0 : index
    %144 = vector.load %arg5[%c0_86, %c0_87, %c0_88] : memref<4x4x256xf32, #tpu.memory_space<vmem>>, vector<1x4x256xf32>
    %145 = vector.shape_cast %144 : vector<1x4x256xf32> to vector<4x256xf32>
    %146 = vector.shape_cast %143 : vector<4x256xf32> to vector<1x4x256xf32>
    tpu.vector_store %arg5[%c0_86, %c0_87, %c0_88], %146 {strides = array<i32>} : memref<4x4x256xf32, #tpu.memory_space<vmem>>, vector<1x4x256xf32>,
    %c1_89 = arith.constant 1 : index
    %c0_90 = arith.constant 0 : index
    %c0_91 = arith.constant 0 : index
    %147 = vector.load %arg1[%c1_89, %c0_90, %c0_91] : memref<4x4x256xf32, #tpu.memory_space<vmem>>, vector<1x4x256xf32>
    %148 = vector.shape_cast %147 : vector<1x4x256xf32> to vector<4x256xf32>
    %cst_92 = arith.constant 0.000000e+00 : f32
    %149 = vector.broadcast %cst_92 : f32 to vector<4x256xf32>
    %150 = arith.maximumf %148, %149 : vector<4x256xf32>
    %151 = tpu.concatenate %21, %150, %21 in 1 : vector<4x17xf32>, vector<4x256xf32>, vector<4x17xf32> -> vector<4x290xf32>
    %152 = vector.extract_strided_slice %151 {offsets = [0, 0], sizes = [4, 256], strides = [1, 1]} : vector<4x290xf32> to vector<4x256xf32>
    %cst_93 = arith.constant 0.000000e+00 : f32
    %153 = vector.broadcast %cst_93 : f32 to vector<4x256xf32>
    %154 = arith.select %18, %152, %153 : vector<4x256xi1>, vector<4x256xf32>
    %c0_94 = arith.constant 0 : index
    %c0_95 = arith.constant 0 : index
    %c0_96 = arith.constant 0 : index
    %155 = vector.load %arg2[%c0_94, %c0_95, %c0_96] : memref<9x4x4xf32, #tpu.memory_space<vmem>>, vector<1x4x4xf32>
    %156 = vector.shape_cast %155 : vector<1x4x4xf32> to vector<4x4xf32>
    %cst_97 = arith.constant dense<0.000000e+00> : vector<4x256xf32>
    %157 = tpu.matmul %156, %154, %cst_97 {dimension_numbers = #tpu.dot_dimension_numbers<[1], [0], [0], [1], [0, 0, 1, 1], [], []>} : vector<4x4xf32>, vector<4x256xf32>, vector<4x256xf32> -> vector<4x256xf32>
    %158 = vector.extract_strided_slice %151 {offsets = [0, 1], sizes = [4, 256], strides = [1, 1]} : vector<4x290xf32> to vector<4x256xf32>
    %c1_98 = arith.constant 1 : index
    %c0_99 = arith.constant 0 : index
    %c0_100 = arith.constant 0 : index
    %159 = vector.load %arg2[%c1_98, %c0_99, %c0_100] : memref<9x4x4xf32, #tpu.memory_space<vmem>>, vector<1x4x4xf32>
    %160 = vector.shape_cast %159 : vector<1x4x4xf32> to vector<4x4xf32>
    %cst_101 = arith.constant dense<0.000000e+00> : vector<4x256xf32>
    %161 = tpu.matmul %160, %158, %cst_101 {dimension_numbers = #tpu.dot_dimension_numbers<[1], [0], [0], [1], [0, 0, 1, 1], [], []>} : vector<4x4xf32>, vector<4x256xf32>, vector<4x256xf32> -> vector<4x256xf32>
    %162 = arith.addf %157, %161 : vector<4x256xf32>
    %163 = vector.extract_strided_slice %151 {offsets = [0, 2], sizes = [4, 256], strides = [1, 1]} : vector<4x290xf32> to vector<4x256xf32>
    %cst_102 = arith.constant 0.000000e+00 : f32
    %164 = vector.broadcast %cst_102 : f32 to vector<4x256xf32>
    %165 = arith.select %20, %163, %164 : vector<4x256xi1>, vector<4x256xf32>
    %c2_103 = arith.constant 2 : index
    %c0_104 = arith.constant 0 : index
    %c0_105 = arith.constant 0 : index
    %166 = vector.load %arg2[%c2_103, %c0_104, %c0_105] : memref<9x4x4xf32, #tpu.memory_space<vmem>>, vector<1x4x4xf32>
    %167 = vector.shape_cast %166 : vector<1x4x4xf32> to vector<4x4xf32>
    %cst_106 = arith.constant dense<0.000000e+00> : vector<4x256xf32>
    %168 = tpu.matmul %167, %165, %cst_106 {dimension_numbers = #tpu.dot_dimension_numbers<[1], [0], [0], [1], [0, 0, 1, 1], [], []>} : vector<4x4xf32>, vector<4x256xf32>, vector<4x256xf32> -> vector<4x256xf32>
    %169 = arith.addf %162, %168 : vector<4x256xf32>
    %170 = vector.extract_strided_slice %151 {offsets = [0, 16], sizes = [4, 256], strides = [1, 1]} : vector<4x290xf32> to vector<4x256xf32>
    %cst_107 = arith.constant 0.000000e+00 : f32
    %171 = vector.broadcast %cst_107 : f32 to vector<4x256xf32>
    %172 = arith.select %18, %170, %171 : vector<4x256xi1>, vector<4x256xf32>
    %c3_108 = arith.constant 3 : index
    %c0_109 = arith.constant 0 : index
    %c0_110 = arith.constant 0 : index
    %173 = vector.load %arg2[%c3_108, %c0_109, %c0_110] : memref<9x4x4xf32, #tpu.memory_space<vmem>>, vector<1x4x4xf32>
    %174 = vector.shape_cast %173 : vector<1x4x4xf32> to vector<4x4xf32>
    %cst_111 = arith.constant dense<0.000000e+00> : vector<4x256xf32>
    %175 = tpu.matmul %174, %172, %cst_111 {dimension_numbers = #tpu.dot_dimension_numbers<[1], [0], [0], [1], [0, 0, 1, 1], [], []>} : vector<4x4xf32>, vector<4x256xf32>, vector<4x256xf32> -> vector<4x256xf32>
    %176 = arith.addf %169, %175 : vector<4x256xf32>
    %c4_112 = arith.constant 4 : index
    %c0_113 = arith.constant 0 : index
    %c0_114 = arith.constant 0 : index
    %177 = vector.load %arg2[%c4_112, %c0_113, %c0_114] : memref<9x4x4xf32, #tpu.memory_space<vmem>>, vector<1x4x4xf32>
    %178 = vector.shape_cast %177 : vector<1x4x4xf32> to vector<4x4xf32>
    %cst_115 = arith.constant dense<0.000000e+00> : vector<4x256xf32>
    %179 = tpu.matmul %178, %150, %cst_115 {dimension_numbers = #tpu.dot_dimension_numbers<[1], [0], [0], [1], [0, 0, 1, 1], [], []>} : vector<4x4xf32>, vector<4x256xf32>, vector<4x256xf32> -> vector<4x256xf32>
    %180 = arith.addf %176, %179 : vector<4x256xf32>
    %181 = vector.extract_strided_slice %151 {offsets = [0, 18], sizes = [4, 256], strides = [1, 1]} : vector<4x290xf32> to vector<4x256xf32>
    %cst_116 = arith.constant 0.000000e+00 : f32
    %182 = vector.broadcast %cst_116 : f32 to vector<4x256xf32>
    %183 = arith.select %20, %181, %182 : vector<4x256xi1>, vector<4x256xf32>
    %c5_117 = arith.constant 5 : index
    %c0_118 = arith.constant 0 : index
    %c0_119 = arith.constant 0 : index
    %184 = vector.load %arg2[%c5_117, %c0_118, %c0_119] : memref<9x4x4xf32, #tpu.memory_space<vmem>>, vector<1x4x4xf32>
    %185 = vector.shape_cast %184 : vector<1x4x4xf32> to vector<4x4xf32>
    %cst_120 = arith.constant dense<0.000000e+00> : vector<4x256xf32>
    %186 = tpu.matmul %185, %183, %cst_120 {dimension_numbers = #tpu.dot_dimension_numbers<[1], [0], [0], [1], [0, 0, 1, 1], [], []>} : vector<4x4xf32>, vector<4x256xf32>, vector<4x256xf32> -> vector<4x256xf32>
    %187 = arith.addf %180, %186 : vector<4x256xf32>
    %188 = vector.extract_strided_slice %151 {offsets = [0, 32], sizes = [4, 256], strides = [1, 1]} : vector<4x290xf32> to vector<4x256xf32>
    %cst_121 = arith.constant 0.000000e+00 : f32
    %189 = vector.broadcast %cst_121 : f32 to vector<4x256xf32>
    %190 = arith.select %18, %188, %189 : vector<4x256xi1>, vector<4x256xf32>
    %c6_122 = arith.constant 6 : index
    %c0_123 = arith.constant 0 : index
    %c0_124 = arith.constant 0 : index
    %191 = vector.load %arg2[%c6_122, %c0_123, %c0_124] : memref<9x4x4xf32, #tpu.memory_space<vmem>>, vector<1x4x4xf32>
    %192 = vector.shape_cast %191 : vector<1x4x4xf32> to vector<4x4xf32>
    %cst_125 = arith.constant dense<0.000000e+00> : vector<4x256xf32>
    %193 = tpu.matmul %192, %190, %cst_125 {dimension_numbers = #tpu.dot_dimension_numbers<[1], [0], [0], [1], [0, 0, 1, 1], [], []>} : vector<4x4xf32>, vector<4x256xf32>, vector<4x256xf32> -> vector<4x256xf32>
    %194 = arith.addf %187, %193 : vector<4x256xf32>
    %195 = vector.extract_strided_slice %151 {offsets = [0, 33], sizes = [4, 256], strides = [1, 1]} : vector<4x290xf32> to vector<4x256xf32>
    %c7_126 = arith.constant 7 : index
    %c0_127 = arith.constant 0 : index
    %c0_128 = arith.constant 0 : index
    %196 = vector.load %arg2[%c7_126, %c0_127, %c0_128] : memref<9x4x4xf32, #tpu.memory_space<vmem>>, vector<1x4x4xf32>
    %197 = vector.shape_cast %196 : vector<1x4x4xf32> to vector<4x4xf32>
    %cst_129 = arith.constant dense<0.000000e+00> : vector<4x256xf32>
    %198 = tpu.matmul %197, %195, %cst_129 {dimension_numbers = #tpu.dot_dimension_numbers<[1], [0], [0], [1], [0, 0, 1, 1], [], []>} : vector<4x4xf32>, vector<4x256xf32>, vector<4x256xf32> -> vector<4x256xf32>
    %199 = arith.addf %194, %198 : vector<4x256xf32>
    %200 = vector.extract_strided_slice %151 {offsets = [0, 34], sizes = [4, 256], strides = [1, 1]} : vector<4x290xf32> to vector<4x256xf32>
    %cst_130 = arith.constant 0.000000e+00 : f32
    %201 = vector.broadcast %cst_130 : f32 to vector<4x256xf32>
    %202 = arith.select %20, %200, %201 : vector<4x256xi1>, vector<4x256xf32>
    %c8_131 = arith.constant 8 : index
    %c0_132 = arith.constant 0 : index
    %c0_133 = arith.constant 0 : index
    %203 = vector.load %arg2[%c8_131, %c0_132, %c0_133] : memref<9x4x4xf32, #tpu.memory_space<vmem>>, vector<1x4x4xf32>
    %204 = vector.shape_cast %203 : vector<1x4x4xf32> to vector<4x4xf32>
    %cst_134 = arith.constant dense<0.000000e+00> : vector<4x256xf32>
    %205 = tpu.matmul %204, %202, %cst_134 {dimension_numbers = #tpu.dot_dimension_numbers<[1], [0], [0], [1], [0, 0, 1, 1], [], []>} : vector<4x4xf32>, vector<4x256xf32>, vector<4x256xf32> -> vector<4x256xf32>
    %206 = arith.addf %199, %205 : vector<4x256xf32>
    %207 = vector.broadcast %22 : vector<4x1xf32> to vector<4x256xf32>
    %208 = arith.addf %206, %207 : vector<4x256xf32>
    %cst_135 = arith.constant 0.000000e+00 : f32
    %209 = vector.broadcast %cst_135 : f32 to vector<4x256xf32>
    %210 = arith.maximumf %208, %209 : vector<4x256xf32>
    %211 = tpu.concatenate %21, %210, %21 in 1 : vector<4x17xf32>, vector<4x256xf32>, vector<4x17xf32> -> vector<4x290xf32>
    %212 = vector.extract_strided_slice %211 {offsets = [0, 0], sizes = [4, 256], strides = [1, 1]} : vector<4x290xf32> to vector<4x256xf32>
    %cst_136 = arith.constant 0.000000e+00 : f32
    %213 = vector.broadcast %cst_136 : f32 to vector<4x256xf32>
    %214 = arith.select %18, %212, %213 : vector<4x256xi1>, vector<4x256xf32>
    %c0_137 = arith.constant 0 : index
    %c0_138 = arith.constant 0 : index
    %c0_139 = arith.constant 0 : index
    %215 = vector.load %arg4[%c0_137, %c0_138, %c0_139] : memref<9x4x4xf32, #tpu.memory_space<vmem>>, vector<1x4x4xf32>
    %216 = vector.shape_cast %215 : vector<1x4x4xf32> to vector<4x4xf32>
    %cst_140 = arith.constant dense<0.000000e+00> : vector<4x256xf32>
    %217 = tpu.matmul %216, %214, %cst_140 {dimension_numbers = #tpu.dot_dimension_numbers<[1], [0], [0], [1], [0, 0, 1, 1], [], []>} : vector<4x4xf32>, vector<4x256xf32>, vector<4x256xf32> -> vector<4x256xf32>
    %218 = vector.extract_strided_slice %211 {offsets = [0, 1], sizes = [4, 256], strides = [1, 1]} : vector<4x290xf32> to vector<4x256xf32>
    %c1_141 = arith.constant 1 : index
    %c0_142 = arith.constant 0 : index
    %c0_143 = arith.constant 0 : index
    %219 = vector.load %arg4[%c1_141, %c0_142, %c0_143] : memref<9x4x4xf32, #tpu.memory_space<vmem>>, vector<1x4x4xf32>
    %220 = vector.shape_cast %219 : vector<1x4x4xf32> to vector<4x4xf32>
    %cst_144 = arith.constant dense<0.000000e+00> : vector<4x256xf32>
    %221 = tpu.matmul %220, %218, %cst_144 {dimension_numbers = #tpu.dot_dimension_numbers<[1], [0], [0], [1], [0, 0, 1, 1], [], []>} : vector<4x4xf32>, vector<4x256xf32>, vector<4x256xf32> -> vector<4x256xf32>
    %222 = arith.addf %217, %221 : vector<4x256xf32>
    %223 = vector.extract_strided_slice %211 {offsets = [0, 2], sizes = [4, 256], strides = [1, 1]} : vector<4x290xf32> to vector<4x256xf32>
    %cst_145 = arith.constant 0.000000e+00 : f32
    %224 = vector.broadcast %cst_145 : f32 to vector<4x256xf32>
    %225 = arith.select %20, %223, %224 : vector<4x256xi1>, vector<4x256xf32>
    %c2_146 = arith.constant 2 : index
    %c0_147 = arith.constant 0 : index
    %c0_148 = arith.constant 0 : index
    %226 = vector.load %arg4[%c2_146, %c0_147, %c0_148] : memref<9x4x4xf32, #tpu.memory_space<vmem>>, vector<1x4x4xf32>
    %227 = vector.shape_cast %226 : vector<1x4x4xf32> to vector<4x4xf32>
    %cst_149 = arith.constant dense<0.000000e+00> : vector<4x256xf32>
    %228 = tpu.matmul %227, %225, %cst_149 {dimension_numbers = #tpu.dot_dimension_numbers<[1], [0], [0], [1], [0, 0, 1, 1], [], []>} : vector<4x4xf32>, vector<4x256xf32>, vector<4x256xf32> -> vector<4x256xf32>
    %229 = arith.addf %222, %228 : vector<4x256xf32>
    %230 = vector.extract_strided_slice %211 {offsets = [0, 16], sizes = [4, 256], strides = [1, 1]} : vector<4x290xf32> to vector<4x256xf32>
    %cst_150 = arith.constant 0.000000e+00 : f32
    %231 = vector.broadcast %cst_150 : f32 to vector<4x256xf32>
    %232 = arith.select %18, %230, %231 : vector<4x256xi1>, vector<4x256xf32>
    %c3_151 = arith.constant 3 : index
    %c0_152 = arith.constant 0 : index
    %c0_153 = arith.constant 0 : index
    %233 = vector.load %arg4[%c3_151, %c0_152, %c0_153] : memref<9x4x4xf32, #tpu.memory_space<vmem>>, vector<1x4x4xf32>
    %234 = vector.shape_cast %233 : vector<1x4x4xf32> to vector<4x4xf32>
    %cst_154 = arith.constant dense<0.000000e+00> : vector<4x256xf32>
    %235 = tpu.matmul %234, %232, %cst_154 {dimension_numbers = #tpu.dot_dimension_numbers<[1], [0], [0], [1], [0, 0, 1, 1], [], []>} : vector<4x4xf32>, vector<4x256xf32>, vector<4x256xf32> -> vector<4x256xf32>
    %236 = arith.addf %229, %235 : vector<4x256xf32>
    %c4_155 = arith.constant 4 : index
    %c0_156 = arith.constant 0 : index
    %c0_157 = arith.constant 0 : index
    %237 = vector.load %arg4[%c4_155, %c0_156, %c0_157] : memref<9x4x4xf32, #tpu.memory_space<vmem>>, vector<1x4x4xf32>
    %238 = vector.shape_cast %237 : vector<1x4x4xf32> to vector<4x4xf32>
    %cst_158 = arith.constant dense<0.000000e+00> : vector<4x256xf32>
    %239 = tpu.matmul %238, %210, %cst_158 {dimension_numbers = #tpu.dot_dimension_numbers<[1], [0], [0], [1], [0, 0, 1, 1], [], []>} : vector<4x4xf32>, vector<4x256xf32>, vector<4x256xf32> -> vector<4x256xf32>
    %240 = arith.addf %236, %239 : vector<4x256xf32>
    %241 = vector.extract_strided_slice %211 {offsets = [0, 18], sizes = [4, 256], strides = [1, 1]} : vector<4x290xf32> to vector<4x256xf32>
    %cst_159 = arith.constant 0.000000e+00 : f32
    %242 = vector.broadcast %cst_159 : f32 to vector<4x256xf32>
    %243 = arith.select %20, %241, %242 : vector<4x256xi1>, vector<4x256xf32>
    %c5_160 = arith.constant 5 : index
    %c0_161 = arith.constant 0 : index
    %c0_162 = arith.constant 0 : index
    %244 = vector.load %arg4[%c5_160, %c0_161, %c0_162] : memref<9x4x4xf32, #tpu.memory_space<vmem>>, vector<1x4x4xf32>
    %245 = vector.shape_cast %244 : vector<1x4x4xf32> to vector<4x4xf32>
    %cst_163 = arith.constant dense<0.000000e+00> : vector<4x256xf32>
    %246 = tpu.matmul %245, %243, %cst_163 {dimension_numbers = #tpu.dot_dimension_numbers<[1], [0], [0], [1], [0, 0, 1, 1], [], []>} : vector<4x4xf32>, vector<4x256xf32>, vector<4x256xf32> -> vector<4x256xf32>
    %247 = arith.addf %240, %246 : vector<4x256xf32>
    %248 = vector.extract_strided_slice %211 {offsets = [0, 32], sizes = [4, 256], strides = [1, 1]} : vector<4x290xf32> to vector<4x256xf32>
    %cst_164 = arith.constant 0.000000e+00 : f32
    %249 = vector.broadcast %cst_164 : f32 to vector<4x256xf32>
    %250 = arith.select %18, %248, %249 : vector<4x256xi1>, vector<4x256xf32>
    %c6_165 = arith.constant 6 : index
    %c0_166 = arith.constant 0 : index
    %c0_167 = arith.constant 0 : index
    %251 = vector.load %arg4[%c6_165, %c0_166, %c0_167] : memref<9x4x4xf32, #tpu.memory_space<vmem>>, vector<1x4x4xf32>
    %252 = vector.shape_cast %251 : vector<1x4x4xf32> to vector<4x4xf32>
    %cst_168 = arith.constant dense<0.000000e+00> : vector<4x256xf32>
    %253 = tpu.matmul %252, %250, %cst_168 {dimension_numbers = #tpu.dot_dimension_numbers<[1], [0], [0], [1], [0, 0, 1, 1], [], []>} : vector<4x4xf32>, vector<4x256xf32>, vector<4x256xf32> -> vector<4x256xf32>
    %254 = arith.addf %247, %253 : vector<4x256xf32>
    %255 = vector.extract_strided_slice %211 {offsets = [0, 33], sizes = [4, 256], strides = [1, 1]} : vector<4x290xf32> to vector<4x256xf32>
    %c7_169 = arith.constant 7 : index
    %c0_170 = arith.constant 0 : index
    %c0_171 = arith.constant 0 : index
    %256 = vector.load %arg4[%c7_169, %c0_170, %c0_171] : memref<9x4x4xf32, #tpu.memory_space<vmem>>, vector<1x4x4xf32>
    %257 = vector.shape_cast %256 : vector<1x4x4xf32> to vector<4x4xf32>
    %cst_172 = arith.constant dense<0.000000e+00> : vector<4x256xf32>
    %258 = tpu.matmul %257, %255, %cst_172 {dimension_numbers = #tpu.dot_dimension_numbers<[1], [0], [0], [1], [0, 0, 1, 1], [], []>} : vector<4x4xf32>, vector<4x256xf32>, vector<4x256xf32> -> vector<4x256xf32>
    %259 = arith.addf %254, %258 : vector<4x256xf32>
    %260 = vector.extract_strided_slice %211 {offsets = [0, 34], sizes = [4, 256], strides = [1, 1]} : vector<4x290xf32> to vector<4x256xf32>
    %cst_173 = arith.constant 0.000000e+00 : f32
    %261 = vector.broadcast %cst_173 : f32 to vector<4x256xf32>
    %262 = arith.select %20, %260, %261 : vector<4x256xi1>, vector<4x256xf32>
    %c8_174 = arith.constant 8 : index
    %c0_175 = arith.constant 0 : index
    %c0_176 = arith.constant 0 : index
    %263 = vector.load %arg4[%c8_174, %c0_175, %c0_176] : memref<9x4x4xf32, #tpu.memory_space<vmem>>, vector<1x4x4xf32>
    %264 = vector.shape_cast %263 : vector<1x4x4xf32> to vector<4x4xf32>
    %cst_177 = arith.constant dense<0.000000e+00> : vector<4x256xf32>
    %265 = tpu.matmul %264, %262, %cst_177 {dimension_numbers = #tpu.dot_dimension_numbers<[1], [0], [0], [1], [0, 0, 1, 1], [], []>} : vector<4x4xf32>, vector<4x256xf32>, vector<4x256xf32> -> vector<4x256xf32>
    %266 = arith.addf %259, %265 : vector<4x256xf32>
    %267 = arith.addf %266, %148 : vector<4x256xf32>
    %c1_178 = arith.constant 1 : index
    %c0_179 = arith.constant 0 : index
    %c0_180 = arith.constant 0 : index
    %268 = vector.load %arg5[%c1_178, %c0_179, %c0_180] : memref<4x4x256xf32, #tpu.memory_space<vmem>>, vector<1x4x256xf32>
    %269 = vector.shape_cast %268 : vector<1x4x256xf32> to vector<4x256xf32>
    %270 = vector.shape_cast %267 : vector<4x256xf32> to vector<1x4x256xf32>
    tpu.vector_store %arg5[%c1_178, %c0_179, %c0_180], %270 {strides = array<i32>} : memref<4x4x256xf32, #tpu.memory_space<vmem>>, vector<1x4x256xf32>,
    %c2_181 = arith.constant 2 : index
    %c0_182 = arith.constant 0 : index
    %c0_183 = arith.constant 0 : index
    %271 = vector.load %arg1[%c2_181, %c0_182, %c0_183] : memref<4x4x256xf32, #tpu.memory_space<vmem>>, vector<1x4x256xf32>
    %272 = vector.shape_cast %271 : vector<1x4x256xf32> to vector<4x256xf32>
    %cst_184 = arith.constant 0.000000e+00 : f32
    %273 = vector.broadcast %cst_184 : f32 to vector<4x256xf32>
    %274 = arith.maximumf %272, %273 : vector<4x256xf32>
    %275 = tpu.concatenate %21, %274, %21 in 1 : vector<4x17xf32>, vector<4x256xf32>, vector<4x17xf32> -> vector<4x290xf32>
    %276 = vector.extract_strided_slice %275 {offsets = [0, 0], sizes = [4, 256], strides = [1, 1]} : vector<4x290xf32> to vector<4x256xf32>
    %cst_185 = arith.constant 0.000000e+00 : f32
    %277 = vector.broadcast %cst_185 : f32 to vector<4x256xf32>
    %278 = arith.select %18, %276, %277 : vector<4x256xi1>, vector<4x256xf32>
    %c0_186 = arith.constant 0 : index
    %c0_187 = arith.constant 0 : index
    %c0_188 = arith.constant 0 : index
    %279 = vector.load %arg2[%c0_186, %c0_187, %c0_188] : memref<9x4x4xf32, #tpu.memory_space<vmem>>, vector<1x4x4xf32>
    %280 = vector.shape_cast %279 : vector<1x4x4xf32> to vector<4x4xf32>
    %cst_189 = arith.constant dense<0.000000e+00> : vector<4x256xf32>
    %281 = tpu.matmul %280, %278, %cst_189 {dimension_numbers = #tpu.dot_dimension_numbers<[1], [0], [0], [1], [0, 0, 1, 1], [], []>} : vector<4x4xf32>, vector<4x256xf32>, vector<4x256xf32> -> vector<4x256xf32>
    %282 = vector.extract_strided_slice %275 {offsets = [0, 1], sizes = [4, 256], strides = [1, 1]} : vector<4x290xf32> to vector<4x256xf32>
    %c1_190 = arith.constant 1 : index
    %c0_191 = arith.constant 0 : index
    %c0_192 = arith.constant 0 : index
    %283 = vector.load %arg2[%c1_190, %c0_191, %c0_192] : memref<9x4x4xf32, #tpu.memory_space<vmem>>, vector<1x4x4xf32>
    %284 = vector.shape_cast %283 : vector<1x4x4xf32> to vector<4x4xf32>
    %cst_193 = arith.constant dense<0.000000e+00> : vector<4x256xf32>
    %285 = tpu.matmul %284, %282, %cst_193 {dimension_numbers = #tpu.dot_dimension_numbers<[1], [0], [0], [1], [0, 0, 1, 1], [], []>} : vector<4x4xf32>, vector<4x256xf32>, vector<4x256xf32> -> vector<4x256xf32>
    %286 = arith.addf %281, %285 : vector<4x256xf32>
    %287 = vector.extract_strided_slice %275 {offsets = [0, 2], sizes = [4, 256], strides = [1, 1]} : vector<4x290xf32> to vector<4x256xf32>
    %cst_194 = arith.constant 0.000000e+00 : f32
    %288 = vector.broadcast %cst_194 : f32 to vector<4x256xf32>
    %289 = arith.select %20, %287, %288 : vector<4x256xi1>, vector<4x256xf32>
    %c2_195 = arith.constant 2 : index
    %c0_196 = arith.constant 0 : index
    %c0_197 = arith.constant 0 : index
    %290 = vector.load %arg2[%c2_195, %c0_196, %c0_197] : memref<9x4x4xf32, #tpu.memory_space<vmem>>, vector<1x4x4xf32>
    %291 = vector.shape_cast %290 : vector<1x4x4xf32> to vector<4x4xf32>
    %cst_198 = arith.constant dense<0.000000e+00> : vector<4x256xf32>
    %292 = tpu.matmul %291, %289, %cst_198 {dimension_numbers = #tpu.dot_dimension_numbers<[1], [0], [0], [1], [0, 0, 1, 1], [], []>} : vector<4x4xf32>, vector<4x256xf32>, vector<4x256xf32> -> vector<4x256xf32>
    %293 = arith.addf %286, %292 : vector<4x256xf32>
    %294 = vector.extract_strided_slice %275 {offsets = [0, 16], sizes = [4, 256], strides = [1, 1]} : vector<4x290xf32> to vector<4x256xf32>
    %cst_199 = arith.constant 0.000000e+00 : f32
    %295 = vector.broadcast %cst_199 : f32 to vector<4x256xf32>
    %296 = arith.select %18, %294, %295 : vector<4x256xi1>, vector<4x256xf32>
    %c3_200 = arith.constant 3 : index
    %c0_201 = arith.constant 0 : index
    %c0_202 = arith.constant 0 : index
    %297 = vector.load %arg2[%c3_200, %c0_201, %c0_202] : memref<9x4x4xf32, #tpu.memory_space<vmem>>, vector<1x4x4xf32>
    %298 = vector.shape_cast %297 : vector<1x4x4xf32> to vector<4x4xf32>
    %cst_203 = arith.constant dense<0.000000e+00> : vector<4x256xf32>
    %299 = tpu.matmul %298, %296, %cst_203 {dimension_numbers = #tpu.dot_dimension_numbers<[1], [0], [0], [1], [0, 0, 1, 1], [], []>} : vector<4x4xf32>, vector<4x256xf32>, vector<4x256xf32> -> vector<4x256xf32>
    %300 = arith.addf %293, %299 : vector<4x256xf32>
    %c4_204 = arith.constant 4 : index
    %c0_205 = arith.constant 0 : index
    %c0_206 = arith.constant 0 : index
    %301 = vector.load %arg2[%c4_204, %c0_205, %c0_206] : memref<9x4x4xf32, #tpu.memory_space<vmem>>, vector<1x4x4xf32>
    %302 = vector.shape_cast %301 : vector<1x4x4xf32> to vector<4x4xf32>
    %cst_207 = arith.constant dense<0.000000e+00> : vector<4x256xf32>
    %303 = tpu.matmul %302, %274, %cst_207 {dimension_numbers = #tpu.dot_dimension_numbers<[1], [0], [0], [1], [0, 0, 1, 1], [], []>} : vector<4x4xf32>, vector<4x256xf32>, vector<4x256xf32> -> vector<4x256xf32>
    %304 = arith.addf %300, %303 : vector<4x256xf32>
    %305 = vector.extract_strided_slice %275 {offsets = [0, 18], sizes = [4, 256], strides = [1, 1]} : vector<4x290xf32> to vector<4x256xf32>
    %cst_208 = arith.constant 0.000000e+00 : f32
    %306 = vector.broadcast %cst_208 : f32 to vector<4x256xf32>
    %307 = arith.select %20, %305, %306 : vector<4x256xi1>, vector<4x256xf32>
    %c5_209 = arith.constant 5 : index
    %c0_210 = arith.constant 0 : index
    %c0_211 = arith.constant 0 : index
    %308 = vector.load %arg2[%c5_209, %c0_210, %c0_211] : memref<9x4x4xf32, #tpu.memory_space<vmem>>, vector<1x4x4xf32>
    %309 = vector.shape_cast %308 : vector<1x4x4xf32> to vector<4x4xf32>
    %cst_212 = arith.constant dense<0.000000e+00> : vector<4x256xf32>
    %310 = tpu.matmul %309, %307, %cst_212 {dimension_numbers = #tpu.dot_dimension_numbers<[1], [0], [0], [1], [0, 0, 1, 1], [], []>} : vector<4x4xf32>, vector<4x256xf32>, vector<4x256xf32> -> vector<4x256xf32>
    %311 = arith.addf %304, %310 : vector<4x256xf32>
    %312 = vector.extract_strided_slice %275 {offsets = [0, 32], sizes = [4, 256], strides = [1, 1]} : vector<4x290xf32> to vector<4x256xf32>
    %cst_213 = arith.constant 0.000000e+00 : f32
    %313 = vector.broadcast %cst_213 : f32 to vector<4x256xf32>
    %314 = arith.select %18, %312, %313 : vector<4x256xi1>, vector<4x256xf32>
    %c6_214 = arith.constant 6 : index
    %c0_215 = arith.constant 0 : index
    %c0_216 = arith.constant 0 : index
    %315 = vector.load %arg2[%c6_214, %c0_215, %c0_216] : memref<9x4x4xf32, #tpu.memory_space<vmem>>, vector<1x4x4xf32>
    %316 = vector.shape_cast %315 : vector<1x4x4xf32> to vector<4x4xf32>
    %cst_217 = arith.constant dense<0.000000e+00> : vector<4x256xf32>
    %317 = tpu.matmul %316, %314, %cst_217 {dimension_numbers = #tpu.dot_dimension_numbers<[1], [0], [0], [1], [0, 0, 1, 1], [], []>} : vector<4x4xf32>, vector<4x256xf32>, vector<4x256xf32> -> vector<4x256xf32>
    %318 = arith.addf %311, %317 : vector<4x256xf32>
    %319 = vector.extract_strided_slice %275 {offsets = [0, 33], sizes = [4, 256], strides = [1, 1]} : vector<4x290xf32> to vector<4x256xf32>
    %c7_218 = arith.constant 7 : index
    %c0_219 = arith.constant 0 : index
    %c0_220 = arith.constant 0 : index
    %320 = vector.load %arg2[%c7_218, %c0_219, %c0_220] : memref<9x4x4xf32, #tpu.memory_space<vmem>>, vector<1x4x4xf32>
    %321 = vector.shape_cast %320 : vector<1x4x4xf32> to vector<4x4xf32>
    %cst_221 = arith.constant dense<0.000000e+00> : vector<4x256xf32>
    %322 = tpu.matmul %321, %319, %cst_221 {dimension_numbers = #tpu.dot_dimension_numbers<[1], [0], [0], [1], [0, 0, 1, 1], [], []>} : vector<4x4xf32>, vector<4x256xf32>, vector<4x256xf32> -> vector<4x256xf32>
    %323 = arith.addf %318, %322 : vector<4x256xf32>
    %324 = vector.extract_strided_slice %275 {offsets = [0, 34], sizes = [4, 256], strides = [1, 1]} : vector<4x290xf32> to vector<4x256xf32>
    %cst_222 = arith.constant 0.000000e+00 : f32
    %325 = vector.broadcast %cst_222 : f32 to vector<4x256xf32>
    %326 = arith.select %20, %324, %325 : vector<4x256xi1>, vector<4x256xf32>
    %c8_223 = arith.constant 8 : index
    %c0_224 = arith.constant 0 : index
    %c0_225 = arith.constant 0 : index
    %327 = vector.load %arg2[%c8_223, %c0_224, %c0_225] : memref<9x4x4xf32, #tpu.memory_space<vmem>>, vector<1x4x4xf32>
    %328 = vector.shape_cast %327 : vector<1x4x4xf32> to vector<4x4xf32>
    %cst_226 = arith.constant dense<0.000000e+00> : vector<4x256xf32>
    %329 = tpu.matmul %328, %326, %cst_226 {dimension_numbers = #tpu.dot_dimension_numbers<[1], [0], [0], [1], [0, 0, 1, 1], [], []>} : vector<4x4xf32>, vector<4x256xf32>, vector<4x256xf32> -> vector<4x256xf32>
    %330 = arith.addf %323, %329 : vector<4x256xf32>
    %331 = vector.broadcast %22 : vector<4x1xf32> to vector<4x256xf32>
    %332 = arith.addf %330, %331 : vector<4x256xf32>
    %cst_227 = arith.constant 0.000000e+00 : f32
    %333 = vector.broadcast %cst_227 : f32 to vector<4x256xf32>
    %334 = arith.maximumf %332, %333 : vector<4x256xf32>
    %335 = tpu.concatenate %21, %334, %21 in 1 : vector<4x17xf32>, vector<4x256xf32>, vector<4x17xf32> -> vector<4x290xf32>
    %336 = vector.extract_strided_slice %335 {offsets = [0, 0], sizes = [4, 256], strides = [1, 1]} : vector<4x290xf32> to vector<4x256xf32>
    %cst_228 = arith.constant 0.000000e+00 : f32
    %337 = vector.broadcast %cst_228 : f32 to vector<4x256xf32>
    %338 = arith.select %18, %336, %337 : vector<4x256xi1>, vector<4x256xf32>
    %c0_229 = arith.constant 0 : index
    %c0_230 = arith.constant 0 : index
    %c0_231 = arith.constant 0 : index
    %339 = vector.load %arg4[%c0_229, %c0_230, %c0_231] : memref<9x4x4xf32, #tpu.memory_space<vmem>>, vector<1x4x4xf32>
    %340 = vector.shape_cast %339 : vector<1x4x4xf32> to vector<4x4xf32>
    %cst_232 = arith.constant dense<0.000000e+00> : vector<4x256xf32>
    %341 = tpu.matmul %340, %338, %cst_232 {dimension_numbers = #tpu.dot_dimension_numbers<[1], [0], [0], [1], [0, 0, 1, 1], [], []>} : vector<4x4xf32>, vector<4x256xf32>, vector<4x256xf32> -> vector<4x256xf32>
    %342 = vector.extract_strided_slice %335 {offsets = [0, 1], sizes = [4, 256], strides = [1, 1]} : vector<4x290xf32> to vector<4x256xf32>
    %c1_233 = arith.constant 1 : index
    %c0_234 = arith.constant 0 : index
    %c0_235 = arith.constant 0 : index
    %343 = vector.load %arg4[%c1_233, %c0_234, %c0_235] : memref<9x4x4xf32, #tpu.memory_space<vmem>>, vector<1x4x4xf32>
    %344 = vector.shape_cast %343 : vector<1x4x4xf32> to vector<4x4xf32>
    %cst_236 = arith.constant dense<0.000000e+00> : vector<4x256xf32>
    %345 = tpu.matmul %344, %342, %cst_236 {dimension_numbers = #tpu.dot_dimension_numbers<[1], [0], [0], [1], [0, 0, 1, 1], [], []>} : vector<4x4xf32>, vector<4x256xf32>, vector<4x256xf32> -> vector<4x256xf32>
    %346 = arith.addf %341, %345 : vector<4x256xf32>
    %347 = vector.extract_strided_slice %335 {offsets = [0, 2], sizes = [4, 256], strides = [1, 1]} : vector<4x290xf32> to vector<4x256xf32>
    %cst_237 = arith.constant 0.000000e+00 : f32
    %348 = vector.broadcast %cst_237 : f32 to vector<4x256xf32>
    %349 = arith.select %20, %347, %348 : vector<4x256xi1>, vector<4x256xf32>
    %c2_238 = arith.constant 2 : index
    %c0_239 = arith.constant 0 : index
    %c0_240 = arith.constant 0 : index
    %350 = vector.load %arg4[%c2_238, %c0_239, %c0_240] : memref<9x4x4xf32, #tpu.memory_space<vmem>>, vector<1x4x4xf32>
    %351 = vector.shape_cast %350 : vector<1x4x4xf32> to vector<4x4xf32>
    %cst_241 = arith.constant dense<0.000000e+00> : vector<4x256xf32>
    %352 = tpu.matmul %351, %349, %cst_241 {dimension_numbers = #tpu.dot_dimension_numbers<[1], [0], [0], [1], [0, 0, 1, 1], [], []>} : vector<4x4xf32>, vector<4x256xf32>, vector<4x256xf32> -> vector<4x256xf32>
    %353 = arith.addf %346, %352 : vector<4x256xf32>
    %354 = vector.extract_strided_slice %335 {offsets = [0, 16], sizes = [4, 256], strides = [1, 1]} : vector<4x290xf32> to vector<4x256xf32>
    %cst_242 = arith.constant 0.000000e+00 : f32
    %355 = vector.broadcast %cst_242 : f32 to vector<4x256xf32>
    %356 = arith.select %18, %354, %355 : vector<4x256xi1>, vector<4x256xf32>
    %c3_243 = arith.constant 3 : index
    %c0_244 = arith.constant 0 : index
    %c0_245 = arith.constant 0 : index
    %357 = vector.load %arg4[%c3_243, %c0_244, %c0_245] : memref<9x4x4xf32, #tpu.memory_space<vmem>>, vector<1x4x4xf32>
    %358 = vector.shape_cast %357 : vector<1x4x4xf32> to vector<4x4xf32>
    %cst_246 = arith.constant dense<0.000000e+00> : vector<4x256xf32>
    %359 = tpu.matmul %358, %356, %cst_246 {dimension_numbers = #tpu.dot_dimension_numbers<[1], [0], [0], [1], [0, 0, 1, 1], [], []>} : vector<4x4xf32>, vector<4x256xf32>, vector<4x256xf32> -> vector<4x256xf32>
    %360 = arith.addf %353, %359 : vector<4x256xf32>
    %c4_247 = arith.constant 4 : index
    %c0_248 = arith.constant 0 : index
    %c0_249 = arith.constant 0 : index
    %361 = vector.load %arg4[%c4_247, %c0_248, %c0_249] : memref<9x4x4xf32, #tpu.memory_space<vmem>>, vector<1x4x4xf32>
    %362 = vector.shape_cast %361 : vector<1x4x4xf32> to vector<4x4xf32>
    %cst_250 = arith.constant dense<0.000000e+00> : vector<4x256xf32>
    %363 = tpu.matmul %362, %334, %cst_250 {dimension_numbers = #tpu.dot_dimension_numbers<[1], [0], [0], [1], [0, 0, 1, 1], [], []>} : vector<4x4xf32>, vector<4x256xf32>, vector<4x256xf32> -> vector<4x256xf32>
    %364 = arith.addf %360, %363 : vector<4x256xf32>
    %365 = vector.extract_strided_slice %335 {offsets = [0, 18], sizes = [4, 256], strides = [1, 1]} : vector<4x290xf32> to vector<4x256xf32>
    %cst_251 = arith.constant 0.000000e+00 : f32
    %366 = vector.broadcast %cst_251 : f32 to vector<4x256xf32>
    %367 = arith.select %20, %365, %366 : vector<4x256xi1>, vector<4x256xf32>
    %c5_252 = arith.constant 5 : index
    %c0_253 = arith.constant 0 : index
    %c0_254 = arith.constant 0 : index
    %368 = vector.load %arg4[%c5_252, %c0_253, %c0_254] : memref<9x4x4xf32, #tpu.memory_space<vmem>>, vector<1x4x4xf32>
    %369 = vector.shape_cast %368 : vector<1x4x4xf32> to vector<4x4xf32>
    %cst_255 = arith.constant dense<0.000000e+00> : vector<4x256xf32>
    %370 = tpu.matmul %369, %367, %cst_255 {dimension_numbers = #tpu.dot_dimension_numbers<[1], [0], [0], [1], [0, 0, 1, 1], [], []>} : vector<4x4xf32>, vector<4x256xf32>, vector<4x256xf32> -> vector<4x256xf32>
    %371 = arith.addf %364, %370 : vector<4x256xf32>
    %372 = vector.extract_strided_slice %335 {offsets = [0, 32], sizes = [4, 256], strides = [1, 1]} : vector<4x290xf32> to vector<4x256xf32>
    %cst_256 = arith.constant 0.000000e+00 : f32
    %373 = vector.broadcast %cst_256 : f32 to vector<4x256xf32>
    %374 = arith.select %18, %372, %373 : vector<4x256xi1>, vector<4x256xf32>
    %c6_257 = arith.constant 6 : index
    %c0_258 = arith.constant 0 : index
    %c0_259 = arith.constant 0 : index
    %375 = vector.load %arg4[%c6_257, %c0_258, %c0_259] : memref<9x4x4xf32, #tpu.memory_space<vmem>>, vector<1x4x4xf32>
    %376 = vector.shape_cast %375 : vector<1x4x4xf32> to vector<4x4xf32>
    %cst_260 = arith.constant dense<0.000000e+00> : vector<4x256xf32>
    %377 = tpu.matmul %376, %374, %cst_260 {dimension_numbers = #tpu.dot_dimension_numbers<[1], [0], [0], [1], [0, 0, 1, 1], [], []>} : vector<4x4xf32>, vector<4x256xf32>, vector<4x256xf32> -> vector<4x256xf32>
    %378 = arith.addf %371, %377 : vector<4x256xf32>
    %379 = vector.extract_strided_slice %335 {offsets = [0, 33], sizes = [4, 256], strides = [1, 1]} : vector<4x290xf32> to vector<4x256xf32>
    %c7_261 = arith.constant 7 : index
    %c0_262 = arith.constant 0 : index
    %c0_263 = arith.constant 0 : index
    %380 = vector.load %arg4[%c7_261, %c0_262, %c0_263] : memref<9x4x4xf32, #tpu.memory_space<vmem>>, vector<1x4x4xf32>
    %381 = vector.shape_cast %380 : vector<1x4x4xf32> to vector<4x4xf32>
    %cst_264 = arith.constant dense<0.000000e+00> : vector<4x256xf32>
    %382 = tpu.matmul %381, %379, %cst_264 {dimension_numbers = #tpu.dot_dimension_numbers<[1], [0], [0], [1], [0, 0, 1, 1], [], []>} : vector<4x4xf32>, vector<4x256xf32>, vector<4x256xf32> -> vector<4x256xf32>
    %383 = arith.addf %378, %382 : vector<4x256xf32>
    %384 = vector.extract_strided_slice %335 {offsets = [0, 34], sizes = [4, 256], strides = [1, 1]} : vector<4x290xf32> to vector<4x256xf32>
    %cst_265 = arith.constant 0.000000e+00 : f32
    %385 = vector.broadcast %cst_265 : f32 to vector<4x256xf32>
    %386 = arith.select %20, %384, %385 : vector<4x256xi1>, vector<4x256xf32>
    %c8_266 = arith.constant 8 : index
    %c0_267 = arith.constant 0 : index
    %c0_268 = arith.constant 0 : index
    %387 = vector.load %arg4[%c8_266, %c0_267, %c0_268] : memref<9x4x4xf32, #tpu.memory_space<vmem>>, vector<1x4x4xf32>
    %388 = vector.shape_cast %387 : vector<1x4x4xf32> to vector<4x4xf32>
    %cst_269 = arith.constant dense<0.000000e+00> : vector<4x256xf32>
    %389 = tpu.matmul %388, %386, %cst_269 {dimension_numbers = #tpu.dot_dimension_numbers<[1], [0], [0], [1], [0, 0, 1, 1], [], []>} : vector<4x4xf32>, vector<4x256xf32>, vector<4x256xf32> -> vector<4x256xf32>
    %390 = arith.addf %383, %389 : vector<4x256xf32>
    %391 = arith.addf %390, %272 : vector<4x256xf32>
    %c2_270 = arith.constant 2 : index
    %c0_271 = arith.constant 0 : index
    %c0_272 = arith.constant 0 : index
    %392 = vector.load %arg5[%c2_270, %c0_271, %c0_272] : memref<4x4x256xf32, #tpu.memory_space<vmem>>, vector<1x4x256xf32>
    %393 = vector.shape_cast %392 : vector<1x4x256xf32> to vector<4x256xf32>
    %394 = vector.shape_cast %391 : vector<4x256xf32> to vector<1x4x256xf32>
    tpu.vector_store %arg5[%c2_270, %c0_271, %c0_272], %394 {strides = array<i32>} : memref<4x4x256xf32, #tpu.memory_space<vmem>>, vector<1x4x256xf32>,
    %c3_273 = arith.constant 3 : index
    %c0_274 = arith.constant 0 : index
    %c0_275 = arith.constant 0 : index
    %395 = vector.load %arg1[%c3_273, %c0_274, %c0_275] : memref<4x4x256xf32, #tpu.memory_space<vmem>>, vector<1x4x256xf32>
    %396 = vector.shape_cast %395 : vector<1x4x256xf32> to vector<4x256xf32>
    %cst_276 = arith.constant 0.000000e+00 : f32
    %397 = vector.broadcast %cst_276 : f32 to vector<4x256xf32>
    %398 = arith.maximumf %396, %397 : vector<4x256xf32>
    %399 = tpu.concatenate %21, %398, %21 in 1 : vector<4x17xf32>, vector<4x256xf32>, vector<4x17xf32> -> vector<4x290xf32>
    %400 = vector.extract_strided_slice %399 {offsets = [0, 0], sizes = [4, 256], strides = [1, 1]} : vector<4x290xf32> to vector<4x256xf32>
    %cst_277 = arith.constant 0.000000e+00 : f32
    %401 = vector.broadcast %cst_277 : f32 to vector<4x256xf32>
    %402 = arith.select %18, %400, %401 : vector<4x256xi1>, vector<4x256xf32>
    %c0_278 = arith.constant 0 : index
    %c0_279 = arith.constant 0 : index
    %c0_280 = arith.constant 0 : index
    %403 = vector.load %arg2[%c0_278, %c0_279, %c0_280] : memref<9x4x4xf32, #tpu.memory_space<vmem>>, vector<1x4x4xf32>
    %404 = vector.shape_cast %403 : vector<1x4x4xf32> to vector<4x4xf32>
    %cst_281 = arith.constant dense<0.000000e+00> : vector<4x256xf32>
    %405 = tpu.matmul %404, %402, %cst_281 {dimension_numbers = #tpu.dot_dimension_numbers<[1], [0], [0], [1], [0, 0, 1, 1], [], []>} : vector<4x4xf32>, vector<4x256xf32>, vector<4x256xf32> -> vector<4x256xf32>
    %406 = vector.extract_strided_slice %399 {offsets = [0, 1], sizes = [4, 256], strides = [1, 1]} : vector<4x290xf32> to vector<4x256xf32>
    %c1_282 = arith.constant 1 : index
    %c0_283 = arith.constant 0 : index
    %c0_284 = arith.constant 0 : index
    %407 = vector.load %arg2[%c1_282, %c0_283, %c0_284] : memref<9x4x4xf32, #tpu.memory_space<vmem>>, vector<1x4x4xf32>
    %408 = vector.shape_cast %407 : vector<1x4x4xf32> to vector<4x4xf32>
    %cst_285 = arith.constant dense<0.000000e+00> : vector<4x256xf32>
    %409 = tpu.matmul %408, %406, %cst_285 {dimension_numbers = #tpu.dot_dimension_numbers<[1], [0], [0], [1], [0, 0, 1, 1], [], []>} : vector<4x4xf32>, vector<4x256xf32>, vector<4x256xf32> -> vector<4x256xf32>
    %410 = arith.addf %405, %409 : vector<4x256xf32>
    %411 = vector.extract_strided_slice %399 {offsets = [0, 2], sizes = [4, 256], strides = [1, 1]} : vector<4x290xf32> to vector<4x256xf32>
    %cst_286 = arith.constant 0.000000e+00 : f32
    %412 = vector.broadcast %cst_286 : f32 to vector<4x256xf32>
    %413 = arith.select %20, %411, %412 : vector<4x256xi1>, vector<4x256xf32>
    %c2_287 = arith.constant 2 : index
    %c0_288 = arith.constant 0 : index
    %c0_289 = arith.constant 0 : index
    %414 = vector.load %arg2[%c2_287, %c0_288, %c0_289] : memref<9x4x4xf32, #tpu.memory_space<vmem>>, vector<1x4x4xf32>
    %415 = vector.shape_cast %414 : vector<1x4x4xf32> to vector<4x4xf32>
    %cst_290 = arith.constant dense<0.000000e+00> : vector<4x256xf32>
    %416 = tpu.matmul %415, %413, %cst_290 {dimension_numbers = #tpu.dot_dimension_numbers<[1], [0], [0], [1], [0, 0, 1, 1], [], []>} : vector<4x4xf32>, vector<4x256xf32>, vector<4x256xf32> -> vector<4x256xf32>
    %417 = arith.addf %410, %416 : vector<4x256xf32>
    %418 = vector.extract_strided_slice %399 {offsets = [0, 16], sizes = [4, 256], strides = [1, 1]} : vector<4x290xf32> to vector<4x256xf32>
    %cst_291 = arith.constant 0.000000e+00 : f32
    %419 = vector.broadcast %cst_291 : f32 to vector<4x256xf32>
    %420 = arith.select %18, %418, %419 : vector<4x256xi1>, vector<4x256xf32>
    %c3_292 = arith.constant 3 : index
    %c0_293 = arith.constant 0 : index
    %c0_294 = arith.constant 0 : index
    %421 = vector.load %arg2[%c3_292, %c0_293, %c0_294] : memref<9x4x4xf32, #tpu.memory_space<vmem>>, vector<1x4x4xf32>
    %422 = vector.shape_cast %421 : vector<1x4x4xf32> to vector<4x4xf32>
    %cst_295 = arith.constant dense<0.000000e+00> : vector<4x256xf32>
    %423 = tpu.matmul %422, %420, %cst_295 {dimension_numbers = #tpu.dot_dimension_numbers<[1], [0], [0], [1], [0, 0, 1, 1], [], []>} : vector<4x4xf32>, vector<4x256xf32>, vector<4x256xf32> -> vector<4x256xf32>
    %424 = arith.addf %417, %423 : vector<4x256xf32>
    %c4_296 = arith.constant 4 : index
    %c0_297 = arith.constant 0 : index
    %c0_298 = arith.constant 0 : index
    %425 = vector.load %arg2[%c4_296, %c0_297, %c0_298] : memref<9x4x4xf32, #tpu.memory_space<vmem>>, vector<1x4x4xf32>
    %426 = vector.shape_cast %425 : vector<1x4x4xf32> to vector<4x4xf32>
    %cst_299 = arith.constant dense<0.000000e+00> : vector<4x256xf32>
    %427 = tpu.matmul %426, %398, %cst_299 {dimension_numbers = #tpu.dot_dimension_numbers<[1], [0], [0], [1], [0, 0, 1, 1], [], []>} : vector<4x4xf32>, vector<4x256xf32>, vector<4x256xf32> -> vector<4x256xf32>
    %428 = arith.addf %424, %427 : vector<4x256xf32>
    %429 = vector.extract_strided_slice %399 {offsets = [0, 18], sizes = [4, 256], strides = [1, 1]} : vector<4x290xf32> to vector<4x256xf32>
    %cst_300 = arith.constant 0.000000e+00 : f32
    %430 = vector.broadcast %cst_300 : f32 to vector<4x256xf32>
    %431 = arith.select %20, %429, %430 : vector<4x256xi1>, vector<4x256xf32>
    %c5_301 = arith.constant 5 : index
    %c0_302 = arith.constant 0 : index
    %c0_303 = arith.constant 0 : index
    %432 = vector.load %arg2[%c5_301, %c0_302, %c0_303] : memref<9x4x4xf32, #tpu.memory_space<vmem>>, vector<1x4x4xf32>
    %433 = vector.shape_cast %432 : vector<1x4x4xf32> to vector<4x4xf32>
    %cst_304 = arith.constant dense<0.000000e+00> : vector<4x256xf32>
    %434 = tpu.matmul %433, %431, %cst_304 {dimension_numbers = #tpu.dot_dimension_numbers<[1], [0], [0], [1], [0, 0, 1, 1], [], []>} : vector<4x4xf32>, vector<4x256xf32>, vector<4x256xf32> -> vector<4x256xf32>
    %435 = arith.addf %428, %434 : vector<4x256xf32>
    %436 = vector.extract_strided_slice %399 {offsets = [0, 32], sizes = [4, 256], strides = [1, 1]} : vector<4x290xf32> to vector<4x256xf32>
    %cst_305 = arith.constant 0.000000e+00 : f32
    %437 = vector.broadcast %cst_305 : f32 to vector<4x256xf32>
    %438 = arith.select %18, %436, %437 : vector<4x256xi1>, vector<4x256xf32>
    %c6_306 = arith.constant 6 : index
    %c0_307 = arith.constant 0 : index
    %c0_308 = arith.constant 0 : index
    %439 = vector.load %arg2[%c6_306, %c0_307, %c0_308] : memref<9x4x4xf32, #tpu.memory_space<vmem>>, vector<1x4x4xf32>
    %440 = vector.shape_cast %439 : vector<1x4x4xf32> to vector<4x4xf32>
    %cst_309 = arith.constant dense<0.000000e+00> : vector<4x256xf32>
    %441 = tpu.matmul %440, %438, %cst_309 {dimension_numbers = #tpu.dot_dimension_numbers<[1], [0], [0], [1], [0, 0, 1, 1], [], []>} : vector<4x4xf32>, vector<4x256xf32>, vector<4x256xf32> -> vector<4x256xf32>
    %442 = arith.addf %435, %441 : vector<4x256xf32>
    %443 = vector.extract_strided_slice %399 {offsets = [0, 33], sizes = [4, 256], strides = [1, 1]} : vector<4x290xf32> to vector<4x256xf32>
    %c7_310 = arith.constant 7 : index
    %c0_311 = arith.constant 0 : index
    %c0_312 = arith.constant 0 : index
    %444 = vector.load %arg2[%c7_310, %c0_311, %c0_312] : memref<9x4x4xf32, #tpu.memory_space<vmem>>, vector<1x4x4xf32>
    %445 = vector.shape_cast %444 : vector<1x4x4xf32> to vector<4x4xf32>
    %cst_313 = arith.constant dense<0.000000e+00> : vector<4x256xf32>
    %446 = tpu.matmul %445, %443, %cst_313 {dimension_numbers = #tpu.dot_dimension_numbers<[1], [0], [0], [1], [0, 0, 1, 1], [], []>} : vector<4x4xf32>, vector<4x256xf32>, vector<4x256xf32> -> vector<4x256xf32>
    %447 = arith.addf %442, %446 : vector<4x256xf32>
    %448 = vector.extract_strided_slice %399 {offsets = [0, 34], sizes = [4, 256], strides = [1, 1]} : vector<4x290xf32> to vector<4x256xf32>
    %cst_314 = arith.constant 0.000000e+00 : f32
    %449 = vector.broadcast %cst_314 : f32 to vector<4x256xf32>
    %450 = arith.select %20, %448, %449 : vector<4x256xi1>, vector<4x256xf32>
    %c8_315 = arith.constant 8 : index
    %c0_316 = arith.constant 0 : index
    %c0_317 = arith.constant 0 : index
    %451 = vector.load %arg2[%c8_315, %c0_316, %c0_317] : memref<9x4x4xf32, #tpu.memory_space<vmem>>, vector<1x4x4xf32>
    %452 = vector.shape_cast %451 : vector<1x4x4xf32> to vector<4x4xf32>
    %cst_318 = arith.constant dense<0.000000e+00> : vector<4x256xf32>
    %453 = tpu.matmul %452, %450, %cst_318 {dimension_numbers = #tpu.dot_dimension_numbers<[1], [0], [0], [1], [0, 0, 1, 1], [], []>} : vector<4x4xf32>, vector<4x256xf32>, vector<4x256xf32> -> vector<4x256xf32>
    %454 = arith.addf %447, %453 : vector<4x256xf32>
    %455 = vector.broadcast %22 : vector<4x1xf32> to vector<4x256xf32>
    %456 = arith.addf %454, %455 : vector<4x256xf32>
    %cst_319 = arith.constant 0.000000e+00 : f32
    %457 = vector.broadcast %cst_319 : f32 to vector<4x256xf32>
    %458 = arith.maximumf %456, %457 : vector<4x256xf32>
    %459 = tpu.concatenate %21, %458, %21 in 1 : vector<4x17xf32>, vector<4x256xf32>, vector<4x17xf32> -> vector<4x290xf32>
    %460 = vector.extract_strided_slice %459 {offsets = [0, 0], sizes = [4, 256], strides = [1, 1]} : vector<4x290xf32> to vector<4x256xf32>
    %cst_320 = arith.constant 0.000000e+00 : f32
    %461 = vector.broadcast %cst_320 : f32 to vector<4x256xf32>
    %462 = arith.select %18, %460, %461 : vector<4x256xi1>, vector<4x256xf32>
    %c0_321 = arith.constant 0 : index
    %c0_322 = arith.constant 0 : index
    %c0_323 = arith.constant 0 : index
    %463 = vector.load %arg4[%c0_321, %c0_322, %c0_323] : memref<9x4x4xf32, #tpu.memory_space<vmem>>, vector<1x4x4xf32>
    %464 = vector.shape_cast %463 : vector<1x4x4xf32> to vector<4x4xf32>
    %cst_324 = arith.constant dense<0.000000e+00> : vector<4x256xf32>
    %465 = tpu.matmul %464, %462, %cst_324 {dimension_numbers = #tpu.dot_dimension_numbers<[1], [0], [0], [1], [0, 0, 1, 1], [], []>} : vector<4x4xf32>, vector<4x256xf32>, vector<4x256xf32> -> vector<4x256xf32>
    %466 = vector.extract_strided_slice %459 {offsets = [0, 1], sizes = [4, 256], strides = [1, 1]} : vector<4x290xf32> to vector<4x256xf32>
    %c1_325 = arith.constant 1 : index
    %c0_326 = arith.constant 0 : index
    %c0_327 = arith.constant 0 : index
    %467 = vector.load %arg4[%c1_325, %c0_326, %c0_327] : memref<9x4x4xf32, #tpu.memory_space<vmem>>, vector<1x4x4xf32>
    %468 = vector.shape_cast %467 : vector<1x4x4xf32> to vector<4x4xf32>
    %cst_328 = arith.constant dense<0.000000e+00> : vector<4x256xf32>
    %469 = tpu.matmul %468, %466, %cst_328 {dimension_numbers = #tpu.dot_dimension_numbers<[1], [0], [0], [1], [0, 0, 1, 1], [], []>} : vector<4x4xf32>, vector<4x256xf32>, vector<4x256xf32> -> vector<4x256xf32>
    %470 = arith.addf %465, %469 : vector<4x256xf32>
    %471 = vector.extract_strided_slice %459 {offsets = [0, 2], sizes = [4, 256], strides = [1, 1]} : vector<4x290xf32> to vector<4x256xf32>
    %cst_329 = arith.constant 0.000000e+00 : f32
    %472 = vector.broadcast %cst_329 : f32 to vector<4x256xf32>
    %473 = arith.select %20, %471, %472 : vector<4x256xi1>, vector<4x256xf32>
    %c2_330 = arith.constant 2 : index
    %c0_331 = arith.constant 0 : index
    %c0_332 = arith.constant 0 : index
    %474 = vector.load %arg4[%c2_330, %c0_331, %c0_332] : memref<9x4x4xf32, #tpu.memory_space<vmem>>, vector<1x4x4xf32>
    %475 = vector.shape_cast %474 : vector<1x4x4xf32> to vector<4x4xf32>
    %cst_333 = arith.constant dense<0.000000e+00> : vector<4x256xf32>
    %476 = tpu.matmul %475, %473, %cst_333 {dimension_numbers = #tpu.dot_dimension_numbers<[1], [0], [0], [1], [0, 0, 1, 1], [], []>} : vector<4x4xf32>, vector<4x256xf32>, vector<4x256xf32> -> vector<4x256xf32>
    %477 = arith.addf %470, %476 : vector<4x256xf32>
    %478 = vector.extract_strided_slice %459 {offsets = [0, 16], sizes = [4, 256], strides = [1, 1]} : vector<4x290xf32> to vector<4x256xf32>
    %cst_334 = arith.constant 0.000000e+00 : f32
    %479 = vector.broadcast %cst_334 : f32 to vector<4x256xf32>
    %480 = arith.select %18, %478, %479 : vector<4x256xi1>, vector<4x256xf32>
    %c3_335 = arith.constant 3 : index
    %c0_336 = arith.constant 0 : index
    %c0_337 = arith.constant 0 : index
    %481 = vector.load %arg4[%c3_335, %c0_336, %c0_337] : memref<9x4x4xf32, #tpu.memory_space<vmem>>, vector<1x4x4xf32>
    %482 = vector.shape_cast %481 : vector<1x4x4xf32> to vector<4x4xf32>
    %cst_338 = arith.constant dense<0.000000e+00> : vector<4x256xf32>
    %483 = tpu.matmul %482, %480, %cst_338 {dimension_numbers = #tpu.dot_dimension_numbers<[1], [0], [0], [1], [0, 0, 1, 1], [], []>} : vector<4x4xf32>, vector<4x256xf32>, vector<4x256xf32> -> vector<4x256xf32>
    %484 = arith.addf %477, %483 : vector<4x256xf32>
    %c4_339 = arith.constant 4 : index
    %c0_340 = arith.constant 0 : index
    %c0_341 = arith.constant 0 : index
    %485 = vector.load %arg4[%c4_339, %c0_340, %c0_341] : memref<9x4x4xf32, #tpu.memory_space<vmem>>, vector<1x4x4xf32>
    %486 = vector.shape_cast %485 : vector<1x4x4xf32> to vector<4x4xf32>
    %cst_342 = arith.constant dense<0.000000e+00> : vector<4x256xf32>
    %487 = tpu.matmul %486, %458, %cst_342 {dimension_numbers = #tpu.dot_dimension_numbers<[1], [0], [0], [1], [0, 0, 1, 1], [], []>} : vector<4x4xf32>, vector<4x256xf32>, vector<4x256xf32> -> vector<4x256xf32>
    %488 = arith.addf %484, %487 : vector<4x256xf32>
    %489 = vector.extract_strided_slice %459 {offsets = [0, 18], sizes = [4, 256], strides = [1, 1]} : vector<4x290xf32> to vector<4x256xf32>
    %cst_343 = arith.constant 0.000000e+00 : f32
    %490 = vector.broadcast %cst_343 : f32 to vector<4x256xf32>
    %491 = arith.select %20, %489, %490 : vector<4x256xi1>, vector<4x256xf32>
    %c5_344 = arith.constant 5 : index
    %c0_345 = arith.constant 0 : index
    %c0_346 = arith.constant 0 : index
    %492 = vector.load %arg4[%c5_344, %c0_345, %c0_346] : memref<9x4x4xf32, #tpu.memory_space<vmem>>, vector<1x4x4xf32>
    %493 = vector.shape_cast %492 : vector<1x4x4xf32> to vector<4x4xf32>
    %cst_347 = arith.constant dense<0.000000e+00> : vector<4x256xf32>
    %494 = tpu.matmul %493, %491, %cst_347 {dimension_numbers = #tpu.dot_dimension_numbers<[1], [0], [0], [1], [0, 0, 1, 1], [], []>} : vector<4x4xf32>, vector<4x256xf32>, vector<4x256xf32> -> vector<4x256xf32>
    %495 = arith.addf %488, %494 : vector<4x256xf32>
    %496 = vector.extract_strided_slice %459 {offsets = [0, 32], sizes = [4, 256], strides = [1, 1]} : vector<4x290xf32> to vector<4x256xf32>
    %cst_348 = arith.constant 0.000000e+00 : f32
    %497 = vector.broadcast %cst_348 : f32 to vector<4x256xf32>
    %498 = arith.select %18, %496, %497 : vector<4x256xi1>, vector<4x256xf32>
    %c6_349 = arith.constant 6 : index
    %c0_350 = arith.constant 0 : index
    %c0_351 = arith.constant 0 : index
    %499 = vector.load %arg4[%c6_349, %c0_350, %c0_351] : memref<9x4x4xf32, #tpu.memory_space<vmem>>, vector<1x4x4xf32>
    %500 = vector.shape_cast %499 : vector<1x4x4xf32> to vector<4x4xf32>
    %cst_352 = arith.constant dense<0.000000e+00> : vector<4x256xf32>
    %501 = tpu.matmul %500, %498, %cst_352 {dimension_numbers = #tpu.dot_dimension_numbers<[1], [0], [0], [1], [0, 0, 1, 1], [], []>} : vector<4x4xf32>, vector<4x256xf32>, vector<4x256xf32> -> vector<4x256xf32>
    %502 = arith.addf %495, %501 : vector<4x256xf32>
    %503 = vector.extract_strided_slice %459 {offsets = [0, 33], sizes = [4, 256], strides = [1, 1]} : vector<4x290xf32> to vector<4x256xf32>
    %c7_353 = arith.constant 7 : index
    %c0_354 = arith.constant 0 : index
    %c0_355 = arith.constant 0 : index
    %504 = vector.load %arg4[%c7_353, %c0_354, %c0_355] : memref<9x4x4xf32, #tpu.memory_space<vmem>>, vector<1x4x4xf32>
    %505 = vector.shape_cast %504 : vector<1x4x4xf32> to vector<4x4xf32>
    %cst_356 = arith.constant dense<0.000000e+00> : vector<4x256xf32>
    %506 = tpu.matmul %505, %503, %cst_356 {dimension_numbers = #tpu.dot_dimension_numbers<[1], [0], [0], [1], [0, 0, 1, 1], [], []>} : vector<4x4xf32>, vector<4x256xf32>, vector<4x256xf32> -> vector<4x256xf32>
    %507 = arith.addf %502, %506 : vector<4x256xf32>
    %508 = vector.extract_strided_slice %459 {offsets = [0, 34], sizes = [4, 256], strides = [1, 1]} : vector<4x290xf32> to vector<4x256xf32>
    %cst_357 = arith.constant 0.000000e+00 : f32
    %509 = vector.broadcast %cst_357 : f32 to vector<4x256xf32>
    %510 = arith.select %20, %508, %509 : vector<4x256xi1>, vector<4x256xf32>
    %c8_358 = arith.constant 8 : index
    %c0_359 = arith.constant 0 : index
    %c0_360 = arith.constant 0 : index
    %511 = vector.load %arg4[%c8_358, %c0_359, %c0_360] : memref<9x4x4xf32, #tpu.memory_space<vmem>>, vector<1x4x4xf32>
    %512 = vector.shape_cast %511 : vector<1x4x4xf32> to vector<4x4xf32>
    %cst_361 = arith.constant dense<0.000000e+00> : vector<4x256xf32>
    %513 = tpu.matmul %512, %510, %cst_361 {dimension_numbers = #tpu.dot_dimension_numbers<[1], [0], [0], [1], [0, 0, 1, 1], [], []>} : vector<4x4xf32>, vector<4x256xf32>, vector<4x256xf32> -> vector<4x256xf32>
    %514 = arith.addf %507, %513 : vector<4x256xf32>
    %515 = arith.addf %514, %396 : vector<4x256xf32>
    %c3_362 = arith.constant 3 : index
    %c0_363 = arith.constant 0 : index
    %c0_364 = arith.constant 0 : index
    %516 = vector.load %arg5[%c3_362, %c0_363, %c0_364] : memref<4x4x256xf32, #tpu.memory_space<vmem>>, vector<1x4x256xf32>
    %517 = vector.shape_cast %516 : vector<1x4x256xf32> to vector<4x256xf32>
    %518 = vector.shape_cast %515 : vector<4x256xf32> to vector<1x4x256xf32>
    tpu.vector_store %arg5[%c3_362, %c0_363, %c0_364], %518 {strides = array<i32>} : memref<4x4x256xf32, #tpu.memory_space<vmem>>, vector<1x4x256xf32>,
    return
  }
  func.func @transform_0(%arg0: i32) -> (i32, i32, i32) {
    %c0_i32 = arith.constant 0 : i32
    %c0_i32_0 = arith.constant 0 : i32
    %c0_i32_1 = arith.constant 0 : i32
    return %arg0, %c0_i32, %c0_i32_0 : i32, i32, i32
  }
  func.func @transform_1(%arg0: i32) -> (i32, i32, i32) {
    %c0_i32 = arith.constant 0 : i32
    %c0_i32_0 = arith.constant 0 : i32
    %c0_i32_1 = arith.constant 0 : i32
    %c0_i32_2 = arith.constant 0 : i32
    return %c0_i32, %c0_i32_0, %c0_i32_1 : i32, i32, i32
  }
  func.func @transform_2(%arg0: i32) -> (i32, i32) {
    %c0_i32 = arith.constant 0 : i32
    %c0_i32_0 = arith.constant 0 : i32
    %c0_i32_1 = arith.constant 0 : i32
    return %c0_i32, %c0_i32_0 : i32, i32
  }
  func.func @transform_3(%arg0: i32) -> (i32, i32, i32) {
    %c0_i32 = arith.constant 0 : i32
    %c0_i32_0 = arith.constant 0 : i32
    %c0_i32_1 = arith.constant 0 : i32
    %c0_i32_2 = arith.constant 0 : i32
    return %c0_i32, %c0_i32_0, %c0_i32_1 : i32, i32, i32
  }
  func.func @transform_4(%arg0: i32) -> (i32, i32, i32) {
    %c0_i32 = arith.constant 0 : i32
    %c0_i32_0 = arith.constant 0 : i32
    %c0_i32_1 = arith.constant 0 : i32
    return %arg0, %c0_i32, %c0_i32_0 : i32, i32, i32
  }
}

</mosaic_0001>

<bundles_post_ra>
// kernel: tpu_custom_call.1
= control target key start
LH: loop header
LB: loop body
LE: loop exit
PB: predicated region body
PF: predicated region fallthrough
CT: control target
= control target key end

     0   :  { %9 = vsyncpa [#allocation3], 0  ;;  %s9097_s0 = inlined_call_operand.vmem [shape: f32[12,4,256], index: 0, kind: input, shape index: {}]   ;;  %s9098_s1 = inlined_call_operand.vmem [shape: f32[9,4,4], index: 1, kind: input, shape index: {}]   ;;  %s9099_s2 = inlined_call_operand.vmem [shape: f32[4,1], index: 2, kind: input, shape index: {}]   ;;  %s9100_s3 = inlined_call_operand.vmem [shape: f32[9,4,4], index: 3, kind: input, shape index: {}]   ;;  %s9101_s4 = inlined_call_operand.hbm [shape: f32[12,4,256], index: 4, kind: output, shape index: {}]  }
   0x1   :  { %11 = vsyncpa [#allocation3 + $0x1], 0  ;;  %s7637_s15 = smov 0   ;;  %s7639_s16 = smov 0  }
   0x2   :  { %s7641_s17 = smov 0   ;;  %s7643_s18 = smov 0  }
   0x3 LB: > { %s7658_s19 = sadd.s32 4294967295, %s7597_s18   ;;  %s7044_s20 = sadd.s32 4294967294, %s7597_s18   ;;  %s7597_s18 = sphi %s7643_s18, %s9115_s18   ;;  %s7593_s17 = sphi %s7641_s17, %s9114_s17   ;;  %s7589_s16 = sphi %s7639_s16, %s9113_s16   ;;  %s7585_s15 = sphi %s7637_s15, %s9112_s15  }
   0x4   : > { %s7662_s21 = sadd.s32 1, %s7597_s18   ;;  %s113_s22 = sadd.s32 1, %s7593_s17 }
   0x5   : > { %s110_s23 = ssub.s32 %s7597_s18, %s7662_s21  ;;  %p123_p0 = scmp.ne.s32.totalorder %s7593_s17, %s7589_s16 }
   0x6   : > { %p111_p1 = scmp.eq.s32.totalorder %s110_s23, 0  ;;  %p124_p2 = scmp.eq.s32.totalorder %s7658_s19, 2 }
   0x7   : > { %p129_p3 = scmp.ne.s32.totalorder %s7589_s16, %s7585_s15  ;;  %p130_p4 = scmp.eq.s32.totalorder %s7044_s20, 2 }
   0x8   : > { %s7673_s24 = scalar_select %p111_p1, %s7593_s17, %s113_s22  }
   0x9   : > { %p7675_p5 = por %p124_p2, %p123_p0  ;;  %p7679_p6 = por %p130_p4, %p129_p3 }
   0xa   : > { %p7047_p7 = scmp.ge.s32.totalorder %s7597_s18, 1  ;;  %p167_p8 = scmp.lt.s32.totalorder %s7597_s18, 4 }
   0xc   : > { %p168_p9 = pnand %p7047_p7, %p167_p8 }
   0xd   : > { %s7049_s27 = sshll.u32 (!%p168_p9), %s7658_s19, 2  ;;  %s7599_s6 = smov (!%p168_p9), 17   ;;  %vm242_vm0 = vcmask (!%p168_p9), 138240   ;;  %v7600_v5 = vmov (!%p168_p9), 0.0   ;;  %v202_v12 = vlaneseq (!%p168_p9)  ;;  %vm262_vm1 = vcmask (!%p168_p9), 1039360  }
   0xe   : > { %171 = sbr.rel (%p168_p9) target bundleno = 1600 (0x640), region = 36  ;;  %p195_p10 = scmp.lt.s32.totalorder (!%p168_p9), %s7049_s27, 11  ;;  %338 = vmatprep.mubr.f32.mxu0 (!%p168_p9), %v7600_v5  ;;  %1190 = vmatprep.mubr.f32.mxu1 (!%p168_p9), %v7600_v5  ;;  %vm269_vm2 = vcmask (!%p168_p9), 1043456   ;;  %v7052_v26 = vld [vmem:[%s9098_s1 + $0x4] sm:$0xf] (!%p168_p9)  ;;  %vm265_vm4 = vcmask (!%p168_p9), 31744  }
   0xf   : > { %s7601_s7 = smov (!%p168_p9), 127   ;;  %s7602_s8 = smov (!%p168_p9), 126   ;;  %v203_v13 = vand.u32 (!%p168_p9), 127, %v202_v12  ;;  %vm431_vm6 = vcmask (!%p168_p9), 1031168   ;;  %v251_v39 = vld [vmem:[%s9098_s1] sm:$0xf] (!%p168_p9) }
  0x10   : > { %s7603_s9 = smov (!%p168_p9), 112   ;;  %s7604_s10 = smov (!%p168_p9), 110   ;;  %vm528_vm9 = vcmask (!%p168_p9), 916480   ;;  %v7059_v50 = vld [vmem:[%s9098_s1 + $0x8] sm:$0xf] (!%p168_p9)  ;;  %vm707_vm10 = vcmask (!%p168_p9), 900096  }
  0x11   : > { %s7605_s11 = smov (!%p168_p9), 96   ;;  %s7606_s12 = smov (!%p168_p9), 95   ;;  %v204_v15 = vadd.s32 (!%p168_p9), 128, %v203_v13  ;;  %v209_v21 = vand.u32 (!%p168_p9), 15, %v203_v13  ;;  %v7063_v56 = vld [vmem:[%s9098_s1 + $0xc] sm:$0xf] (!%p168_p9) }
  0x12   : > { %s7607_s13 = smov (!%p168_p9), 94   ;;  %vm804_vm11 = vcmask (!%p168_p9), 785408   ;;  %v7067_v62 = vld [vmem:[%s9098_s1 + $0x10] sm:$0xf] (!%p168_p9)  ;;  %vm903_vm12 = vcmask (!%p168_p9), 777216   ;;  %vm992_vm13 = vcmask (!%p168_p9), 769024  }
  0x13   : > { %v216_v19 = vand.u32 (!%p168_p9), 15, %v204_v15  ;;  %vm7764_vm5 = vcmp.ge.s32.totalorder (!%p168_p9), %v209_v21, 1  ;;  %vm7811_vm8 = vcmp.le.s32.totalorder (!%p168_p9), %v209_v21, 14  ;;  %v7075_v15 = vld [vmem:[%s9098_s1 + $0x18] sm:$0xf] (!%p168_p9)  ;;  %s7346_s22 = sshll.u32 (!%p168_p9), %s7658_s19, 9 }
  0x14   : > { %v7079_v21 = vld [vmem:[%s9098_s1 + $0x1c] sm:$0xf] (!%p168_p9)  ;;  %v7333_v34 = vld [vmem:[%s9100_s3 + $0x20] sm:$0xf] (!%p168_p9)  ;;  %s7609_s19 = smov (!%p168_p9), [#allocation2]  }
  0x15   : > { %s9117_s27 = smov (!%p195_p10, %s7049_s27), 11  ;;  %vm7756_vm3 = vcmp.ge.s32.totalorder %v216_v19, 1  ;;  %vm7789_vm7 = vcmp.le.s32.totalorder %v216_v19, 14 }
  0x16   : > { %s7344_s28 = sshll.u32 %s9117_s27, 3 }
  0x17   : > { %s7689_s5 = scalar_lea.vmem %s9097_s0, %s7344_s28 }
  0x18   : > { %v234_v0 = vld [vmem:[%s7689_s5] sm:$0xff]  ;;  %v7122_v3 = vld [vmem:[%s7689_s5 + $0x8] sm:$0xff]  ;;  %v7194_v16 = vld [vmem:[%s7689_s5 + $0x10] sm:$0xff] }
  0x19   : > { %v7692_v1 = vmax.f32 %v234_v0, 0.0  ;;  %v7703_v4 = vmax.f32 %v7122_v3, 0.0  ;;  %v7754_v22 = vmax.f32 %v7194_v16, 0.0 }
  0x1b   : > { %238 = vrot.lane.b32.xlu0 %v7692_v1, %s7599_s6  ;;  %v7698_v2 = vcombine.high %v7692_v1, %v7692_v1  ;;  %v7714_v8 = vcombine.high %v7703_v4, %v7703_v4  ;;  %v7808_v41 = vcombine.high %v7754_v22, %v7754_v22 }
  0x1f   : > { %240 = vrot.lane.b32.xlu0 %v7698_v2, %s7599_s6 }
  0x8d   : > { %v239_v6 = vpop.permute.xlu0 %238 }
  0x8e   : > { %v7708_v7 = vsel %vm242_vm0, 0.0, %v239_v6 }
  0x8f   : > { %256 = vrot.lane.b32.xlu0 %v7708_v7, %s7601_s7  ;;  %v249_v32 = vsel %vm7764_vm5, %v7708_v7, 0.0 }
  0x91   : > { %v241_v9 = vpop.permute.xlu0 %240 }
  0x92   : > { %v243_v10 = vsel %vm242_vm0, %v239_v6, %v241_v9  ;;  %v248_v11 = vsel %vm242_vm0, %v241_v9, 0.0  ;;  %v7071_v9 = vld [vmem:[%s9098_s1 + $0x14] sm:$0xf] }
  0x93   : > { %1946 = vrot.lane.b32.xlu0 %v7714_v8, %s7599_s6  ;;  %258 = vrot.lane.b32.xlu1 %v243_v10, %s7601_s7  ;;  %v250_v30 = vsel %vm7756_vm3, %v243_v10, 0.0 }
  0x97   : > { %429 = vrot.lane.b32.xlu0 %v248_v11, %s7602_s8  ;;  %260 = vrot.lane.b32.xlu1 %v248_v11, %s7601_s7 }
  0x9b   : > { %524 = vrot.lane.b32.xlu0 %v243_v10, %s7603_s9  ;;  %1944 = vrot.lane.b32.xlu1 %v7703_v4, %s7599_s6 }
  0x9f   : > { %522 = vrot.lane.b32.xlu0 %v7708_v7, %s7603_s9  ;;  %427 = vrot.lane.b32.xlu1 %v243_v10, %s7602_s8 }
  0xa3   : > { %705 = vrot.lane.b32.xlu0 %v248_v11, %s7604_s10  ;;  %425 = vrot.lane.b32.xlu1 %v7708_v7, %s7602_s8 }
  0xa7   : > { %800 = vrot.lane.b32.xlu0 %v243_v10, %s7605_s11  ;;  %526 = vrot.lane.b32.xlu1 %v248_v11, %s7603_s9 }
  0xab   : > { %798 = vrot.lane.b32.xlu0 %v7708_v7, %s7605_s11  ;;  %703 = vrot.lane.b32.xlu1 %v243_v10, %s7604_s10 }
  0xaf   : > { %901 = vrot.lane.b32.xlu0 %v248_v11, %s7606_s12  ;;  %701 = vrot.lane.b32.xlu1 %v7708_v7, %s7604_s10 }
  0xb3   : > { %988 = vrot.lane.b32.xlu0 %v243_v10, %s7607_s13  ;;  %802 = vrot.lane.b32.xlu1 %v248_v11, %s7605_s11 }
  0xb7   : > { %986 = vrot.lane.b32.xlu0 %v7708_v7, %s7607_s13  ;;  %899 = vrot.lane.b32.xlu1 %v243_v10, %s7606_s12 }
  0xbb   : > { %897 = vrot.lane.b32.xlu1 %v7708_v7, %s7606_s12 }
  0xbf   : > { %990 = vrot.lane.b32.xlu1 %v248_v11, %s7607_s13 }
 0x101   : > { %v257_v14 = vpop.permute.xlu0 %256 }
 0x105   : > { %v259_v17 = vpop.permute.xlu1 %258  ;;  %v1947_v18 = vpop.permute.xlu0 %1946 }
 0x106   : > { %v7750_v20 = vsel %vm242_vm0, %v1947_v18, 0.0  ;;  %v263_v29 = vsel %vm262_vm1, %v257_v14, %v259_v17 }
 0x107   : > { %1964 = vrot.lane.b32.xlu0 %v7750_v20, %s7601_s7 }
 0x109   : > { %v261_v23 = vpop.permute.xlu1 %260  ;;  %v430_v28 = vpop.permute.xlu0 %429 }
 0x10a   : > { %v264_v25 = vsel %vm262_vm1, %v259_v17, %v261_v23 }
 0x10b   : > { %7053 = vmatprep.subr.msk.mxu0 %vm269_vm2, %v264_v25  ;;  %3620 = vrot.lane.b32.xlu0 %v7754_v22, %s7599_s6  ;;  %v7083_v25 = vld [vmem:[%s9098_s1 + $0x20] sm:$0xf] }
 0x10c   : > { %7054 = vmatpush1.msk.msra.mxu0 %vm269_vm2, %v263_v29 }
 0x10d   : > { %v1945_v31 = vpop.permute.xlu1 %1944  ;;  %7055 = vmatmul.mubr.msk.f32.vlgmr.msra.gmra.mrb[0].mxu0 %vm265_vm4, %v7052_v26  ;;  %7056 = vmatprep.subr.msk.mxu0 %vm269_vm2, %v250_v30  ;;  %v525_v35 = vpop.permute.xlu0 %524 }
 0x10e   : > { %v7781_v33 = vsel %vm242_vm0, %v1945_v31, %v1947_v18  ;;  %7057 = vmatpush1.msk.msra.mxu0 %vm269_vm2, %v249_v32  ;;  %418 = vmatprep.mubr.f32.mxu0 %v7600_v5  ;;  %v7794_v37 = vsel %vm242_vm0, 0.0, %v1945_v31 }
 0x10f   : > { %2128 = vrot.lane.b32.xlu0 %v7781_v33, %s7602_s8  ;;  %1962 = vrot.lane.b32.xlu1 %v7781_v33, %s7601_s7 }
 0x111   : > { %v428_v36 = vpop.permute.xlu1 %427  ;;  %v523_v45 = vpop.permute.xlu0 %522 }
 0x112   : > { %v433_v38 = vsel %vm431_vm6, %v428_v36, %v430_v28  ;;  %v529_v48 = vsel %vm528_vm9, %v523_v45, %v525_v35 }
 0x113   : > { %2126 = vrot.lane.b32.xlu0 %v7794_v37, %s7602_s8  ;;  %1960 = vrot.lane.b32.xlu1 %v7794_v37, %s7601_s7  ;;  %v437_v40 = vsel %vm7789_vm7, %v433_v38, 0.0  ;;  %v533_v52 = vsel %vm7764_vm5, %v529_v48, 0.0  ;;  %v1955_v38 = vsel %vm7756_vm3, %v7781_v33, 0.0  ;;  %v1956_v48 = vld [vmem:[%s9098_s1] sm:$0xf] }
 0x114   : > { %7060 = vmatprep.subr.msk.mxu0 %vm269_vm2, %v437_v40  ;;  %v7266_v40 = vld [vmem:[%s7689_s5 + $0x18] sm:$0xff] }
 0x115   : > { %v426_v43 = vpop.permute.xlu1 %425  ;;  %7058 = vmatmul.mubr.msk.f32.vlgmr.msra.gmra.mrb[0].mxu0 %vm265_vm4, %v251_v39  ;;  %v706_v54 = vpop.permute.xlu0 %705  ;;  %v1954_v39 = vsel %vm7764_vm5, %v7794_v37, 0.0 }
 0x116   : > { %v432_v44 = vsel %vm431_vm6, %v426_v43, %v428_v36  ;;  %513 = vmatprep.mubr.f32.mxu0 %v7600_v5 }
 0x117   : > { %v436_v46 = vsel %vm7811_vm8, %v432_v44, 0.0  ;;  %2225 = vrot.lane.b32.xlu0 %v7750_v20, %s7603_s9  ;;  %3622 = vrot.lane.b32.xlu1 %v7808_v41, %s7599_s6 }
 0x118   : > { %7061 = vmatpush1.msk.msra.mxu0 %vm269_vm2, %v436_v46 }
 0x119   : > { %v527_v47 = vpop.permute.xlu1 %526  ;;  %v801_v60 = vpop.permute.xlu0 %800 }
 0x11a   : > { %v530_v49 = vsel %vm528_vm9, %v525_v35, %v527_v47  ;;  %v7123_v35 = vld [vmem:[%s9098_s1 + $0x4] sm:$0xf] }
 0x11b   : > { %v534_v51 = vsel %vm7756_vm3, %v530_v49, 0.0  ;;  %2399 = vrot.lane.b32.xlu0 %v7781_v33, %s7604_s10  ;;  %2130 = vrot.lane.b32.xlu1 %v7750_v20, %s7602_s8 }
 0x11c   : > { %7064 = vmatprep.subr.msk.mxu0 %vm269_vm2, %v534_v51 }
 0x11d   : > { %v704_v53 = vpop.permute.xlu1 %703  ;;  %7062 = vmatmul.mubr.msk.f32.vlgmr.msra.gmra.mrb[0].mxu0 %vm265_vm4, %v7059_v50 }
 0x11e   : > { %7065 = vmatpush1.msk.msra.mxu0 %vm269_vm2, %v533_v52  ;;  %610 = vmatprep.mubr.f32.mxu0 %v7600_v5  ;;  %v709_v57 = vsel %vm707_vm10, %v704_v53, %v706_v54 }
 0x11f   : > { %2397 = vrot.lane.b32.xlu0 %v7794_v37, %s7604_s10  ;;  %2223 = vrot.lane.b32.xlu1 %v7781_v33, %s7603_s9  ;;  %v713_v59 = vsel %vm7789_vm7, %v709_v57, 0.0 }
 0x120   : > { %7068 = vmatprep.subr.msk.mxu0 %vm269_vm2, %v7698_v2 }
 0x121   : > { %v702_v55 = vpop.permute.xlu1 %701 }
 0x122   : > { %v708_v61 = vsel %vm707_vm10, %v702_v55, %v704_v53 }
 0x123   : > { %2496 = vrot.lane.b32.xlu0 %v7750_v20, %s7605_s11  ;;  %2221 = vrot.lane.b32.xlu1 %v7794_v37, %s7603_s9  ;;  %v712_v2 = vsel %vm7811_vm8, %v708_v61, 0.0 }
 0x125   : > { %7066 = vmatmul.mubr.msk.f32.vlgmr.msra.gmra.mrb[0].mxu0 %vm265_vm4, %v7063_v56  ;;  %v803_v58 = vpop.permute.xlu1 %802 }
 0x126   : > { %7069 = vmatpush1.msk.msra.mxu0 %vm269_vm2, %v7692_v1  ;;  %692 = vmatprep.mubr.f32.mxu0 %v7600_v5  ;;  %v806_v63 = vsel %vm804_vm11, %v801_v60, %v803_v58  ;;  %v799_v1 = vpop.permute.xlu0 %798 }
 0x127   : > { %7072 = vmatprep.subr.msk.mxu0 %vm269_vm2, %v713_v59  ;;  %2590 = vrot.lane.b32.xlu0 %v7781_v33, %s7606_s12  ;;  %v810_v3 = vsel %vm7756_vm3, %v806_v63, 0.0  ;;  %v805_v6 = vsel %vm804_vm11, %v799_v1, %v801_v60  ;;  %v7130_v59 = vld [vmem:[%s9098_s1 + $0x8] sm:$0xf]  ;;  %v7134_v1 = vld [vmem:[%s9098_s1 + $0xc] sm:$0xf] }
 0x128   : > { %2401 = vrot.lane.b32.xlu1 %v7750_v20, %s7604_s10  ;;  %v809_v11 = vsel %vm7764_vm5, %v805_v6, 0.0 }
 0x129   : > { %v900_v0 = vpop.permute.xlu1 %899 }
 0x12a   : > { %v902_v10 = vpop.permute.xlu0 %901 }
 0x12b   : > { %2588 = vrot.lane.b32.xlu0 %v7794_v37, %s7606_s12  ;;  %v905_v12 = vsel %vm903_vm12, %v900_v0, %v902_v10 }
 0x12c   : > { %2494 = vrot.lane.b32.xlu1 %v7781_v33, %s7605_s11 }
 0x12d   : > { %7070 = vmatmul.mubr.msk.f32.vlgmr.msra.gmra.mrb[0].mxu0 %vm265_vm4, %v7067_v62  ;;  %v898_v7 = vpop.permute.xlu1 %897 }
 0x12e   : > { %7073 = vmatpush1.msk.msra.mxu0 %vm269_vm2, %v712_v2  ;;  %789 = vmatprep.mubr.f32.mxu0 %v7600_v5  ;;  %v989_v14 = vpop.permute.xlu0 %988  ;;  %v904_v17 = vsel %vm903_vm12, %v898_v7, %v900_v0 }
 0x12f   : > { %7076 = vmatprep.subr.msk.mxu0 %vm269_vm2, %v810_v3  ;;  %2680 = vrot.lane.b32.xlu0 %v7750_v20, %s7607_s13 }
 0x130   : > { %2492 = vrot.lane.b32.xlu1 %v7794_v37, %s7605_s11 }
 0x131   : > { %v991_v13 = vpop.permute.xlu1 %990 }
 0x132   : > { %v994_v16 = vsel %vm992_vm13, %v989_v14, %v991_v13  ;;  %v987_v19 = vpop.permute.xlu0 %986 }
 0x133   : > { %v998_v18 = vsel %vm7789_vm7, %v994_v16, 0.0  ;;  %v7142_v16 = vld [vmem:[%s9098_s1 + $0x14] sm:$0xf] }
 0x134   : > { %2592 = vrot.lane.b32.xlu1 %v7750_v20, %s7606_s12  ;;  %v993_v20 = vsel %vm992_vm13, %v987_v19, %v989_v14  ;;  %v7608_v19 = vmov 0  }
 0x135   : > { %7074 = vmatmul.mubr.msk.f32.vlgmr.msra.gmra.mrb[0].mxu0 %vm265_vm4, %v7071_v9  ;;  %v997_v23 = vsel %vm7811_vm8, %v993_v20, 0.0  ;;  %v7138_v9 = vld [vmem:[%s9098_s1 + $0x10] sm:$0xf]  ;;  %7526 = vset.pattern.permute.xlu0 %v7608_v19 }
 0x136   : > { %7077 = vmatpush1.msk.msra.mxu0 %vm269_vm2, %v809_v11  ;;  %886 = vmatprep.mubr.f32.mxu0 %v7600_v5 }
 0x137   : > { %7080 = vmatprep.subr.msk.mxu0 %vm269_vm2, %v905_v12 }
 0x138   : > { %2678 = vrot.lane.b32.xlu1 %v7781_v33, %s7607_s13 }
 0x13c   : > { %2676 = vrot.lane.b32.xlu1 %v7794_v37, %s7607_s13  ;;  %v7958_v37 = vmax.f32 %v7266_v40, 0.0 }
 0x13d   : > { %7078 = vmatmul.mubr.msk.f32.vlgmr.msra.gmra.mrb[0].mxu0 %vm265_vm4, %v7075_v15 }
 0x13e   : > { %7081 = vmatpush1.msk.msra.mxu0 %vm269_vm2, %v904_v17  ;;  %977 = vmatprep.mubr.f32.mxu0 %v7600_v5  ;;  %v7976_v52 = vcombine.high %v7958_v37, %v7958_v37 }
 0x13f   : > { %7084 = vmatprep.subr.msk.mxu0 %vm269_vm2, %v998_v18 }
 0x145   : > { %7082 = vmatmul.mubr.msk.f32.vlgmr.msra.gmra.mrb[0].mxu0 %vm265_vm4, %v7079_v21 }
 0x146   : > { %7085 = vmatpush1.msk.msra.mxu0 %vm269_vm2, %v997_v23  ;;  %1074 = vmatprep.mubr.f32.mxu0 %v7600_v5 }
 0x14d   : > { %7086 = vmatmul.mubr.msk.f32.vlgmr.msra.gmra.mrb[0].mxu0 %vm265_vm4, %v7083_v25  ;;  %v7146_v25 = vld [vmem:[%s9098_s1 + $0x18] sm:$0xf] }
 0x14e   : > { %2039 = vmatprep.mubr.f32.mxu0 %v7600_v5 }
 0x179   : > { %v1965_v26 = vpop.permute.xlu0 %1964 }
 0x17d   : > { %v3621_v28 = vpop.permute.xlu0 %3620 }
 0x17e   : > { %v7965_v49 = vsel %vm242_vm0, 0.0, %v3621_v28 }
 0x181   : > { %v1963_v29 = vpop.permute.xlu1 %1962  ;;  %v2129_v31 = vpop.permute.xlu0 %2128 }
 0x182   : > { %v1967_v30 = vsel %vm262_vm1, %v1963_v29, %v1965_v26 }
 0x183   : > { %7124 = vmatprep.subr.msk.mxu0 %vm269_vm2, %v1967_v30 }
 0x185   : > { %v1961_v32 = vpop.permute.xlu1 %1960  ;;  %v2127_v44 = vpop.permute.xlu0 %2126 }
 0x186   : > { %v1966_v36 = vsel %vm262_vm1, %v1961_v32, %v1963_v29  ;;  %v2132_v46 = vsel %vm431_vm6, %v2127_v44, %v2129_v31  ;;  %v7150_v32 = vld [vmem:[%s9098_s1 + $0x1c] sm:$0xf] }
 0x187   : > { %7125 = vmatpush1.msk.msra.mxu0 %vm269_vm2, %v1966_v36  ;;  %v2136_v53 = vsel %vm7811_vm8, %v2132_v46, 0.0  ;;  %v7154_v36 = vld [vmem:[%s9098_s1 + $0x20] sm:$0xf] }
 0x188   : > { %7126 = vmatmul.mubr.msk.f32.vlgmr.msra.gmra.mrb[2].mxu0 %vm265_vm4, %v7123_v35  ;;  %7127 = vmatprep.subr.msk.mxu0 %vm269_vm2, %v1955_v38 }
 0x189   : > { %v3623_v43 = vpop.permute.xlu1 %3622  ;;  %7128 = vmatpush1.msk.msra.mxu0 %vm269_vm2, %v1954_v39  ;;  %2119 = vmatprep.mubr.f32.mxu0 %v7600_v5  ;;  %v2226_v54 = vpop.permute.xlu0 %2225 }
 0x18a   : > { %v7949_v45 = vsel %vm242_vm0, %v3621_v28, %v3623_v43  ;;  %v7952_v33 = vsel %vm242_vm0, %v3623_v43, 0.0 }
 0x18b   : > { %3640 = vrot.lane.b32.xlu1 %v7952_v33, %s7601_s7  ;;  %3638 = vrot.lane.b32.xlu0 %v7949_v45, %s7601_s7 }
 0x18d   : > { %v2131_v47 = vpop.permute.xlu1 %2130  ;;  %v2400_v61 = vpop.permute.xlu0 %2399 }
 0x18e   : > { %v2133_v50 = vsel %vm431_vm6, %v2129_v31, %v2131_v47  ;;  %v3631_v47 = vsel %vm7756_vm3, %v7949_v45, 0.0 }
 0x18f   : > { %v2137_v51 = vsel %vm7789_vm7, %v2133_v50, 0.0  ;;  %5296 = vrot.lane.b32.xlu1 %v7958_v37, %s7599_s6  ;;  %3636 = vrot.lane.b32.xlu0 %v7965_v49, %s7601_s7 }
 0x190   : > { %7129 = vmatmul.mubr.msk.f32.vlgmr.msra.gmra.mrb[2].mxu0 %vm265_vm4, %v1956_v48  ;;  %7131 = vmatprep.subr.msk.mxu0 %vm269_vm2, %v2137_v51  ;;  %v3630_v48 = vsel %vm7764_vm5, %v7965_v49, 0.0 }
 0x191   : > { %v2224_v55 = vpop.permute.xlu1 %2223  ;;  %7132 = vmatpush1.msk.msra.mxu0 %vm269_vm2, %v2136_v53  ;;  %2212 = vmatprep.mubr.f32.mxu0 %v7600_v5  ;;  %v2398_v0 = vpop.permute.xlu0 %2397 }
 0x192   : > { %v2228_v56 = vsel %vm528_vm9, %v2224_v55, %v2226_v54  ;;  %v2403_v7 = vsel %vm707_vm10, %v2398_v0, %v2400_v61 }
 0x193   : > { %3804 = vrot.lane.b32.xlu1 %v7949_v45, %s7602_s8  ;;  %5298 = vrot.lane.b32.xlu0 %v7976_v52, %s7599_s6  ;;  %v2232_v57 = vsel %vm7756_vm3, %v2228_v56, 0.0  ;;  %v2407_v11 = vsel %vm7811_vm8, %v2403_v7, 0.0  ;;  %v3632_v56 = vld [vmem:[%s9098_s1] sm:$0xf] }
 0x194   : > { %7135 = vmatprep.subr.msk.mxu0 %vm269_vm2, %v2232_v57 }
 0x195   : > { %v2222_v58 = vpop.permute.xlu1 %2221  ;;  %v2497_v6 = vpop.permute.xlu0 %2496 }
 0x196   : > { %v2227_v60 = vsel %vm528_vm9, %v2222_v58, %v2224_v55 }
 0x197   : > { %v2231_v62 = vsel %vm7764_vm5, %v2227_v60, 0.0  ;;  %3802 = vrot.lane.b32.xlu1 %v7965_v49, %s7602_s8  ;;  %3806 = vrot.lane.b32.xlu0 %v7952_v33, %s7602_s8 }
 0x198   : > { %7133 = vmatmul.mubr.msk.f32.vlgmr.msra.gmra.mrb[2].mxu0 %vm265_vm4, %v7130_v59 }
 0x199   : > { %7136 = vmatpush1.msk.msra.mxu0 %vm269_vm2, %v2231_v62  ;;  %2307 = vmatprep.mubr.f32.mxu0 %v7600_v5  ;;  %v2591_v12 = vpop.permute.xlu0 %2590 }
 0x19a   : > { %7139 = vmatprep.subr.msk.mxu0 %vm269_vm2, %v7714_v8  ;;  %v2402_v63 = vpop.permute.xlu1 %2401 }
 0x19b   : > { %3901 = vrot.lane.b32.xlu1 %v7952_v33, %s7603_s9  ;;  %3899 = vrot.lane.b32.xlu0 %v7949_v45, %s7603_s9  ;;  %v2404_v2 = vsel %vm707_vm10, %v2400_v61, %v2402_v63 }
 0x19c   : > { %v2408_v8 = vsel %vm7789_vm7, %v2404_v2, 0.0 }
 0x19d   : > { %v2589_v17 = vpop.permute.xlu0 %2588 }
 0x19e   : > { %v2495_v3 = vpop.permute.xlu1 %2494  ;;  %v2594_v28 = vsel %vm903_vm12, %v2589_v17, %v2591_v12 }
 0x19f   : > { %4075 = vrot.lane.b32.xlu1 %v7949_v45, %s7604_s10  ;;  %3897 = vrot.lane.b32.xlu0 %v7965_v49, %s7603_s9  ;;  %v2499_v10 = vsel %vm804_vm11, %v2495_v3, %v2497_v6 }
 0x1a0   : > { %7137 = vmatmul.mubr.msk.f32.vlgmr.msra.gmra.mrb[2].mxu0 %vm265_vm4, %v7134_v1  ;;  %v2503_v13 = vsel %vm7756_vm3, %v2499_v10, 0.0  ;;  %v7206_v10 = vld [vmem:[%s9098_s1 + $0xc] sm:$0xf] }
 0x1a1   : > { %7140 = vmatpush1.msk.msra.mxu0 %vm269_vm2, %v7703_v4  ;;  %2388 = vmatprep.mubr.f32.mxu0 %v7600_v5  ;;  %v2681_v23 = vpop.permute.xlu0 %2680 }
 0x1a2   : > { %7143 = vmatprep.subr.msk.mxu0 %vm269_vm2, %v2408_v8  ;;  %v2493_v4 = vpop.permute.xlu1 %2492  ;;  %v7202_v8 = vld [vmem:[%s9098_s1 + $0x8] sm:$0xf] }
 0x1a3   : > { %4073 = vrot.lane.b32.xlu1 %v7965_v49, %s7604_s10  ;;  %4077 = vrot.lane.b32.xlu0 %v7952_v33, %s7604_s10  ;;  %v2498_v14 = vsel %vm804_vm11, %v2493_v4, %v2495_v3 }
 0x1a4   : > { %v2502_v18 = vsel %vm7764_vm5, %v2498_v14, 0.0 }
 0x1a6   : > { %v2593_v15 = vpop.permute.xlu1 %2592 }
 0x1a7   : > { %4172 = vrot.lane.b32.xlu1 %v7952_v33, %s7605_s11  ;;  %4170 = vrot.lane.b32.xlu0 %v7949_v45, %s7605_s11  ;;  %v2595_v20 = vsel %vm903_vm12, %v2591_v12, %v2593_v15  ;;  %v7210_v15 = vld [vmem:[%s9098_s1 + $0x10] sm:$0xf] }
 0x1a8   : > { %7141 = vmatmul.mubr.msk.f32.vlgmr.msra.gmra.mrb[2].mxu0 %vm265_vm4, %v7138_v9 }
 0x1a9   : > { %7144 = vmatpush1.msk.msra.mxu0 %vm269_vm2, %v2407_v11  ;;  %2483 = vmatprep.mubr.f32.mxu0 %v7600_v5 }
 0x1aa   : > { %7147 = vmatprep.subr.msk.mxu0 %vm269_vm2, %v2503_v13  ;;  %v2679_v21 = vpop.permute.xlu1 %2678 }
 0x1ab   : > { %4266 = vrot.lane.b32.xlu1 %v7949_v45, %s7606_s12  ;;  %4168 = vrot.lane.b32.xlu0 %v7965_v49, %s7605_s11  ;;  %v2683_v26 = vsel %vm992_vm13, %v2679_v21, %v2681_v23 }
 0x1ac   : > { %v2687_v29 = vsel %vm7789_vm7, %v2683_v26, 0.0  ;;  %v7214_v26 = vld [vmem:[%s9098_s1 + $0x14] sm:$0xf] }
 0x1ae   : > { %v2677_v30 = vpop.permute.xlu1 %2676 }
 0x1af   : > { %4264 = vrot.lane.b32.xlu1 %v7965_v49, %s7606_s12  ;;  %4268 = vrot.lane.b32.xlu0 %v7952_v33, %s7606_s12  ;;  %v2682_v31 = vsel %vm992_vm13, %v2677_v30, %v2679_v21 }
 0x1b0   : > { %7145 = vmatmul.mubr.msk.f32.vlgmr.msra.gmra.mrb[2].mxu0 %vm265_vm4, %v7142_v16  ;;  %v2686_v35 = vsel %vm7811_vm8, %v2682_v31, 0.0 }
 0x1b1   : > { %7148 = vmatpush1.msk.msra.mxu0 %vm269_vm2, %v2502_v18  ;;  %2578 = vmatprep.mubr.f32.mxu0 %v7600_v5 }
 0x1b2   : > { %7151 = vmatprep.subr.msk.mxu0 %vm269_vm2, %v2595_v20 }
 0x1b3   : > { %4356 = vrot.lane.b32.xlu1 %v7952_v33, %s7607_s13  ;;  %4354 = vrot.lane.b32.xlu0 %v7949_v45, %s7607_s13  ;;  %v7195_v33 = vld [vmem:[%s9098_s1 + $0x4] sm:$0xf] }
 0x1b7   : > { %4352 = vrot.lane.b32.xlu0 %v7965_v49, %s7607_s13 }
 0x1b8   : > { %7149 = vmatmul.mubr.msk.f32.vlgmr.msra.gmra.mrb[2].mxu0 %vm265_vm4, %v7146_v25 }
 0x1b9   : > { %7152 = vmatpush1.msk.msra.mxu0 %vm269_vm2, %v2594_v28  ;;  %2667 = vmatprep.mubr.f32.mxu0 %v7600_v5 }
 0x1ba   : > { %7155 = vmatprep.subr.msk.mxu0 %vm269_vm2, %v2687_v29  ;;  %v233_v29 = vld [vmem:[%s9099_s2] sm:$0xf] }
 0x1c0   : > { %7153 = vmatmul.mubr.msk.f32.vlgmr.msra.gmra.mrb[2].mxu0 %vm265_vm4, %v7150_v32 }
 0x1c1   : > { %7156 = vmatpush1.msk.msra.mxu0 %vm269_vm2, %v2686_v35  ;;  %2762 = vmatprep.mubr.f32.mxu0 %v7600_v5  ;;  %v7218_v35 = vld [vmem:[%s9098_s1 + $0x18] sm:$0xf] }
 0x1c8   : > { %7157 = vmatmul.mubr.msk.f32.vlgmr.msra.gmra.mrb[2].mxu0 %vm265_vm4, %v7154_v36 }
 0x1c9   : > { %3715 = vmatprep.mubr.f32.mxu0 %v7600_v5 }
 0x1fd   : > { %v3641_v38 = vpop.permute.xlu1 %3640  ;;  %v3639_v39 = vpop.permute.xlu0 %3638 }
 0x1fe   : > { %v3643_v40 = vsel %vm262_vm1, %v3639_v39, %v3641_v38 }
 0x1ff   : > { %7196 = vmatprep.subr.msk.mxu0 %vm269_vm2, %v3643_v40 }
 0x201   : > { %v5297_v43 = vpop.permute.xlu1 %5296  ;;  %v3637_v44 = vpop.permute.xlu0 %3636 }
 0x202   : > { %v3642_v46 = vsel %vm262_vm1, %v3637_v44, %v3639_v39  ;;  %v8125_v45 = vsel %vm242_vm0, 0.0, %v5297_v43  ;;  %v7222_v44 = vld [vmem:[%s9098_s1 + $0x1c] sm:$0xf] }
 0x203   : > { %7197 = vmatpush1.msk.msra.mxu0 %vm269_vm2, %v3642_v46  ;;  %v7226_v46 = vld [vmem:[%s9098_s1 + $0x20] sm:$0xf] }
 0x204   : > { %7198 = vmatmul.mubr.msk.f32.vlgmr.msra.gmra.mrb[4].mxu0 %vm265_vm4, %v7195_v33  ;;  %7199 = vmatprep.subr.msk.mxu0 %vm269_vm2, %v3631_v47 }
 0x205   : > { %v3805_v50 = vpop.permute.xlu1 %3804  ;;  %7200 = vmatpush1.msk.msra.mxu0 %vm269_vm2, %v3630_v48  ;;  %v5299_v51 = vpop.permute.xlu0 %5298  ;;  %3795 = vmatprep.mubr.f32.mxu0 %v7600_v5 }
 0x206   : > { %v8115_v53 = vsel %vm242_vm0, %v5297_v43, %v5299_v51  ;;  %v8118_v54 = vsel %vm242_vm0, %v5299_v51, 0.0 }
 0x207   : > { %5316 = vrot.lane.b32.xlu0 %v8118_v54, %s7601_s7  ;;  %5314 = vrot.lane.b32.xlu1 %v8115_v53, %s7601_s7 }
 0x209   : > { %v3803_v49 = vpop.permute.xlu1 %3802  ;;  %v3807_v55 = vpop.permute.xlu0 %3806 }
 0x20a   : > { %v3808_v57 = vsel %vm431_vm6, %v3803_v49, %v3805_v50  ;;  %v3809_v58 = vsel %vm431_vm6, %v3805_v50, %v3807_v55  ;;  %v7267_v49 = vld [vmem:[%s9098_s1 + $0x4] sm:$0xf] }
 0x20b   : > { %v3812_v59 = vsel %vm7811_vm8, %v3808_v57, 0.0  ;;  %v3813_v60 = vsel %vm7789_vm7, %v3809_v58, 0.0  ;;  %5480 = vrot.lane.b32.xlu0 %v8115_v53, %s7602_s8  ;;  %5312 = vrot.lane.b32.xlu1 %v8125_v45, %s7601_s7  ;;  %v5306_v57 = vsel %vm7764_vm5, %v8125_v45, 0.0 }
 0x20c   : > { %7201 = vmatmul.mubr.msk.f32.vlgmr.msra.gmra.mrb[4].mxu0 %vm265_vm4, %v3632_v56  ;;  %7203 = vmatprep.subr.msk.mxu0 %vm269_vm2, %v3813_v60  ;;  %v5307_v56 = vsel %vm7756_vm3, %v8115_v53, 0.0 }
 0x20d   : > { %v3902_v61 = vpop.permute.xlu1 %3901  ;;  %7204 = vmatpush1.msk.msra.mxu0 %vm269_vm2, %v3812_v59  ;;  %v3900_v62 = vpop.permute.xlu0 %3899  ;;  %3888 = vmatprep.mubr.f32.mxu0 %v7600_v5 }
 0x20e   : > { %v3904_v63 = vsel %vm528_vm9, %v3900_v62, %v3902_v61 }
 0x20f   : > { %5478 = vrot.lane.b32.xlu0 %v8125_v45, %s7602_s8  ;;  %5482 = vrot.lane.b32.xlu1 %v8118_v54, %s7602_s8  ;;  %v3908_v0 = vsel %vm7756_vm3, %v3904_v63, 0.0 }
 0x210   : > { %7207 = vmatprep.subr.msk.mxu0 %vm269_vm2, %v3908_v0 }
 0x211   : > { %v4076_v1 = vpop.permute.xlu1 %4075  ;;  %v3898_v2 = vpop.permute.xlu0 %3897 }
 0x212   : > { %v3903_v3 = vsel %vm528_vm9, %v3898_v2, %v3900_v62 }
 0x213   : > { %v3907_v6 = vsel %vm7764_vm5, %v3903_v3, 0.0  ;;  %5577 = vrot.lane.b32.xlu0 %v8118_v54, %s7603_s9  ;;  %5575 = vrot.lane.b32.xlu1 %v8115_v53, %s7603_s9 }
 0x214   : > { %7205 = vmatmul.mubr.msk.f32.vlgmr.msra.gmra.mrb[4].mxu0 %vm265_vm4, %v7202_v8 }
 0x215   : > { %7208 = vmatpush1.msk.msra.mxu0 %vm269_vm2, %v3907_v6  ;;  %3983 = vmatprep.mubr.f32.mxu0 %v7600_v5  ;;  %v4074_v7 = vpop.permute.xlu1 %4073  ;;  %v4078_v9 = vpop.permute.xlu0 %4077 }
 0x216   : > { %7211 = vmatprep.subr.msk.mxu0 %vm269_vm2, %v7808_v41  ;;  %v4080_v4 = vsel %vm707_vm10, %v4076_v1, %v4078_v9  ;;  %v4079_v14 = vsel %vm707_vm10, %v4074_v7, %v4076_v1  ;;  %v7274_v7 = vld [vmem:[%s9098_s1 + $0x8] sm:$0xf] }
 0x217   : > { %5751 = vrot.lane.b32.xlu0 %v8115_v53, %s7604_s10  ;;  %5573 = vrot.lane.b32.xlu1 %v8125_v45, %s7603_s9  ;;  %v4084_v41 = vsel %vm7789_vm7, %v4080_v4, 0.0  ;;  %v4083_v19 = vsel %vm7811_vm8, %v4079_v14, 0.0 }
 0x219   : > { %v4173_v11 = vpop.permute.xlu1 %4172  ;;  %v4171_v12 = vpop.permute.xlu0 %4170 }
 0x21b   : > { %5749 = vrot.lane.b32.xlu0 %v8125_v45, %s7604_s10  ;;  %5753 = vrot.lane.b32.xlu1 %v8118_v54, %s7604_s10 }
 0x21c   : > { %7209 = vmatmul.mubr.msk.f32.vlgmr.msra.gmra.mrb[4].mxu0 %vm265_vm4, %v7206_v10 }
 0x21d   : > { %7212 = vmatpush1.msk.msra.mxu0 %vm269_vm2, %v7754_v22  ;;  %4064 = vmatprep.mubr.f32.mxu0 %v7600_v5  ;;  %v4175_v22 = vsel %vm804_vm11, %v4171_v12, %v4173_v11  ;;  %v4267_v17 = vpop.permute.xlu1 %4266  ;;  %v4169_v18 = vpop.permute.xlu0 %4168 }
 0x21e   : > { %7215 = vmatprep.subr.msk.mxu0 %vm269_vm2, %v4084_v41  ;;  %v4179_v20 = vsel %vm7756_vm3, %v4175_v22, 0.0  ;;  %v4174_v21 = vsel %vm804_vm11, %v4169_v18, %v4171_v12  ;;  %v7278_v41 = vld [vmem:[%s9098_s1 + $0xc] sm:$0xf]  ;;  %v7282_v18 = vld [vmem:[%s9098_s1 + $0x10] sm:$0xf] }
 0x21f   : > { %5848 = vrot.lane.b32.xlu0 %v8118_v54, %s7605_s11  ;;  %5846 = vrot.lane.b32.xlu1 %v8115_v53, %s7605_s11  ;;  %v4178_v28 = vsel %vm7764_vm5, %v4174_v21, 0.0 }
 0x220   : > { %v8190_v13 = vpop.f32.mrb[0].mxu0 }
 0x221   : > { %v8197_v16 = vpop.f32.mrb[1].mxu0  ;;  %v4265_v23 = vpop.permute.xlu1 %4264 }
 0x222   : > { %v4269_v25 = vpop.permute.xlu0 %4268  ;;  %v4270_v38 = vsel %vm903_vm12, %v4265_v23, %v4267_v17 }
 0x223   : > { %5942 = vrot.lane.b32.xlu0 %v8115_v53, %s7606_s12  ;;  %5844 = vrot.lane.b32.xlu1 %v8125_v45, %s7605_s11  ;;  %v4271_v30 = vsel %vm903_vm12, %v4267_v17, %v4269_v25 }
 0x224   : > { %7213 = vmatmul.mubr.msk.f32.vlgmr.msra.gmra.mrb[4].mxu0 %vm265_vm4, %v7210_v15 }
 0x225   : > { %7216 = vmatpush1.msk.msra.mxu0 %vm269_vm2, %v4083_v19  ;;  %4159 = vmatprep.mubr.f32.mxu0 %v7600_v5  ;;  %v4357_v31 = vpop.permute.xlu1 %4356 }
 0x226   : > { %7219 = vmatprep.subr.msk.mxu0 %vm269_vm2, %v4179_v20  ;;  %v4355_v32 = vpop.permute.xlu0 %4354 }
 0x227   : > { %5940 = vrot.lane.b32.xlu0 %v8125_v45, %s7606_s12  ;;  %5944 = vrot.lane.b32.xlu1 %v8118_v54, %s7606_s12  ;;  %v4359_v36 = vsel %vm992_vm13, %v4355_v32, %v4357_v31 }
 0x228   : > { %v4363_v39 = vsel %vm7789_vm7, %v4359_v36, 0.0  ;;  %v7290_v36 = vld [vmem:[%s9098_s1 + $0x18] sm:$0xf] }
 0x22a   : > { %v4353_v40 = vpop.permute.xlu0 %4352 }
 0x22b   : > { %6032 = vrot.lane.b32.xlu0 %v8118_v54, %s7607_s13  ;;  %6030 = vrot.lane.b32.xlu1 %v8115_v53, %s7607_s13  ;;  %v4358_v43 = vsel %vm992_vm13, %v4353_v40, %v4355_v32 }
 0x22c   : > { %7217 = vmatmul.mubr.msk.f32.vlgmr.msra.gmra.mrb[4].mxu0 %vm265_vm4, %v7214_v26  ;;  %v4362_v33 = vsel %vm7811_vm8, %v4358_v43, 0.0 }
 0x22d   : > { %7220 = vmatpush1.msk.msra.mxu0 %vm269_vm2, %v4178_v28  ;;  %4254 = vmatprep.mubr.f32.mxu0 %v7600_v5 }
 0x22e   : > { %7223 = vmatprep.subr.msk.mxu0 %vm269_vm2, %v4271_v30 }
 0x22f   : > { %1085 = vperm.xlu0 %7526, %v233_v29   ;;  %6028 = vrot.lane.b32.xlu1 %v8125_v45, %s7607_s13  ;;  %v5308_v45 = vld [vmem:[%s9098_s1] sm:$0xf]  ;;  %v7286_v29 = vld [vmem:[%s9098_s1 + $0x14] sm:$0xf] }
 0x234   : > { %7221 = vmatmul.mubr.msk.f32.vlgmr.msra.gmra.mrb[4].mxu0 %vm265_vm4, %v7218_v35 }
 0x235   : > { %7224 = vmatpush1.msk.msra.mxu0 %vm269_vm2, %v4270_v38  ;;  %4343 = vmatprep.mubr.f32.mxu0 %v7600_v5 }
 0x236   : > { %7227 = vmatprep.subr.msk.mxu0 %vm269_vm2, %v4363_v39 }
 0x23c   : > { %7225 = vmatmul.mubr.msk.f32.vlgmr.msra.gmra.mrb[4].mxu0 %vm265_vm4, %v7222_v44 }
 0x23d   : > { %7228 = vmatpush1.msk.msra.mxu0 %vm269_vm2, %v4362_v33  ;;  %4438 = vmatprep.mubr.f32.mxu0 %v7600_v5 }
 0x244   : > { %7229 = vmatmul.mubr.msk.f32.vlgmr.msra.gmra.mrb[4].mxu0 %vm265_vm4, %v7226_v46 }
 0x245   : > { %5391 = vmatprep.mubr.f32.mxu0 %v7600_v5 }
 0x279   : > { %v5315_v47 = vpop.permute.xlu1 %5314  ;;  %v5317_v48 = vpop.permute.xlu0 %5316 }
 0x27a   : > { %v5319_v50 = vsel %vm262_vm1, %v5315_v47, %v5317_v48 }
 0x27b   : > { %7268 = vmatprep.subr.msk.mxu0 %vm269_vm2, %v5319_v50  ;;  %v7294_v50 = vld [vmem:[%s9098_s1 + $0x1c] sm:$0xf] }
 0x27d   : > { %v5313_v51 = vpop.permute.xlu1 %5312  ;;  %v5481_v54 = vpop.permute.xlu0 %5480 }
 0x27e   : > { %v5318_v55 = vsel %vm262_vm1, %v5313_v51, %v5315_v47  ;;  %v7298_v51 = vld [vmem:[%s9098_s1 + $0x20] sm:$0xf] }
 0x27f   : > { %7269 = vmatpush1.msk.msra.mxu0 %vm269_vm2, %v5318_v55 }
 0x280   : > { %7270 = vmatmul.mubr.msk.f32.vlgmr.msra.gmra.mrb[6].mxu0 %vm265_vm4, %v7267_v49  ;;  %7271 = vmatprep.subr.msk.mxu0 %vm269_vm2, %v5307_v56 }
 0x281   : > { %v5483_v58 = vpop.permute.xlu1 %5482  ;;  %7272 = vmatpush1.msk.msra.mxu0 %vm269_vm2, %v5306_v57  ;;  %v5479_v59 = vpop.permute.xlu0 %5478  ;;  %5471 = vmatprep.mubr.f32.mxu0 %v7600_v5 }
 0x282   : > { %v5485_v60 = vsel %vm431_vm6, %v5481_v54, %v5483_v58  ;;  %v5484_v53 = vsel %vm431_vm6, %v5479_v59, %v5481_v54 }
 0x283   : > { %v5489_v61 = vsel %vm7789_vm7, %v5485_v60, 0.0  ;;  %v5488_v2 = vsel %vm7811_vm8, %v5484_v53, 0.0 }
 0x284   : > { %7275 = vmatprep.subr.msk.mxu0 %vm269_vm2, %v5489_v61 }
 0x285   : > { %v5576_v62 = vpop.permute.xlu1 %5575  ;;  %v5578_v63 = vpop.permute.xlu0 %5577 }
 0x286   : > { %v5580_v0 = vsel %vm528_vm9, %v5576_v62, %v5578_v63 }
 0x287   : > { %v5584_v1 = vsel %vm7756_vm3, %v5580_v0, 0.0 }
 0x288   : > { %7273 = vmatmul.mubr.msk.f32.vlgmr.msra.gmra.mrb[6].mxu0 %vm265_vm4, %v5308_v45 }
 0x289   : > { %7276 = vmatpush1.msk.msra.mxu0 %vm269_vm2, %v5488_v2  ;;  %5564 = vmatprep.mubr.f32.mxu0 %v7600_v5  ;;  %v5574_v8 = vpop.permute.xlu1 %5573  ;;  %v5752_v3 = vpop.permute.xlu0 %5751 }
 0x28a   : > { %7279 = vmatprep.subr.msk.mxu0 %vm269_vm2, %v5584_v1  ;;  %v5579_v6 = vsel %vm528_vm9, %v5574_v8, %v5576_v62 }
 0x28b   : > { %v5583_v9 = vsel %vm7764_vm5, %v5579_v6, 0.0  ;;  %v7087_v6 = vld [vmem:[%s9100_s3 + $0x4] sm:$0xf] }
 0x28d   : > { %v5750_v10 = vpop.permute.xlu0 %5749  ;;  %v5754_v4 = vpop.permute.xlu1 %5753 }
 0x28e   : > { %v5756_v11 = vsel %vm707_vm10, %v5752_v3, %v5754_v4  ;;  %v5755_v17 = vsel %vm707_vm10, %v5750_v10, %v5752_v3 }
 0x28f   : > { %v5760_v14 = vsel %vm7789_vm7, %v5756_v11, 0.0  ;;  %v5759_v23 = vsel %vm7811_vm8, %v5755_v17, 0.0 }
 0x290   : > { %7277 = vmatmul.mubr.msk.f32.vlgmr.msra.gmra.mrb[6].mxu0 %vm265_vm4, %v7274_v7 }
 0x291   : > { %7280 = vmatpush1.msk.msra.mxu0 %vm269_vm2, %v5583_v9  ;;  %5659 = vmatprep.mubr.f32.mxu0 %v7600_v5  ;;  %v5849_v12 = vpop.permute.xlu0 %5848  ;;  %v5847_v15 = vpop.permute.xlu1 %5846 }
 0x292   : > { %7283 = vmatprep.subr.msk.mxu0 %vm269_vm2, %v7976_v52  ;;  %v5851_v19 = vsel %vm804_vm11, %v5847_v15, %v5849_v12 }
 0x295   : > { %v5943_v20 = vpop.permute.xlu0 %5942  ;;  %v5845_v21 = vpop.permute.xlu1 %5844 }
 0x296   : > { %v5850_v26 = vsel %vm804_vm11, %v5845_v21, %v5847_v15 }
 0x297   : > { %v5854_v30 = vsel %vm7764_vm5, %v5850_v26, 0.0 }
 0x298   : > { %7281 = vmatmul.mubr.msk.f32.vlgmr.msra.gmra.mrb[6].mxu0 %vm265_vm4, %v7278_v41 }
 0x299   : > { %7284 = vmatpush1.msk.msra.mxu0 %vm269_vm2, %v7958_v37  ;;  %5740 = vmatprep.mubr.f32.mxu0 %v7600_v5  ;;  %v5855_v37 = vsel %vm7756_vm3, %v5851_v19, 0.0  ;;  %v5941_v25 = vpop.permute.xlu0 %5940  ;;  %v5945_v28 = vpop.permute.xlu1 %5944 }
 0x29a   : > { %7287 = vmatprep.subr.msk.mxu0 %vm269_vm2, %v5760_v14  ;;  %v5947_v31 = vsel %vm903_vm12, %v5943_v20, %v5945_v28  ;;  %v5946_v43 = vsel %vm903_vm12, %v5941_v25, %v5943_v20 }
 0x29b   : > { %v2764_v52 = vpop.f32.mrb[2].mxu0 }
 0x29c   : > { %v2766_v22 = vpop.f32.mrb[3].mxu0 }
 0x29d   : > { %v6033_v32 = vpop.permute.xlu0 %6032  ;;  %v6031_v35 = vpop.permute.xlu1 %6030 }
 0x29e   : > { %v6035_v38 = vsel %vm992_vm13, %v6031_v35, %v6033_v32 }
 0x29f   : > { %v6039_v44 = vsel %vm7789_vm7, %v6035_v38, 0.0 }
 0x2a0   : > { %7285 = vmatmul.mubr.msk.f32.vlgmr.msra.gmra.mrb[6].mxu0 %vm265_vm4, %v7282_v18  ;;  %v1106_v18 = vld [vmem:[%s9100_s3] sm:$0xf] }
 0x2a1   : > { %7288 = vmatpush1.msk.msra.mxu0 %vm269_vm2, %v5759_v23  ;;  %5835 = vmatprep.mubr.f32.mxu0 %v7600_v5  ;;  %v6029_v47 = vpop.permute.xlu1 %6028 }
 0x2a2   : > { %7291 = vmatprep.subr.msk.mxu0 %vm269_vm2, %v5855_v37 }
 0x2a8   : > { %7289 = vmatmul.mubr.msk.f32.vlgmr.msra.gmra.mrb[6].mxu0 %vm265_vm4, %v7286_v29 }
 0x2a9   : > { %7292 = vmatpush1.msk.msra.mxu0 %vm269_vm2, %v5854_v30  ;;  %5930 = vmatprep.mubr.f32.mxu0 %v7600_v5 }
 0x2aa   : > { %7295 = vmatprep.subr.msk.mxu0 %vm269_vm2, %v5947_v31 }
 0x2ae   : > { %v8344_v39 = vpop.permute.xlu0 %1085 }
 0x2af   : > { %v8348_v40 = vadd.f32 %v8344_v39, %v8190_v13  ;;  %v8359_v46 = vadd.f32 %v8344_v39, %v8197_v16  ;;  %v6034_v13 = vsel %vm992_vm13, %v6029_v47, %v6031_v35  ;;  %v8383_v57 = vadd.f32 %v2764_v52, %v8344_v39  ;;  %v7094_v35 = vld [vmem:[%s9100_s3 + $0x8] sm:$0xf]  ;;  %v7098_v47 = vld [vmem:[%s9100_s3 + $0xc] sm:$0xf] }
 0x2b0   : > { %7293 = vmatmul.mubr.msk.f32.vlgmr.msra.gmra.mrb[6].mxu0 %vm265_vm4, %v7290_v36  ;;  %v6038_v16 = vsel %vm7811_vm8, %v6034_v13, 0.0  ;;  %v8391_v61 = vadd.f32 %v2766_v22, %v8344_v39 }
 0x2b1   : > { %7296 = vmatpush1.msk.msra.mxu0 %vm269_vm2, %v5946_v43  ;;  %v1090_v33 = vmax.f32 %v8348_v40, 0.0  ;;  %6019 = vmatprep.mubr.f32.mxu0 %v7600_v5  ;;  %v1091_v48 = vmax.f32 %v8359_v46, 0.0  ;;  %v2773_v60 = vmax.f32 %v8383_v57, 0.0 }
 0x2b2   : > { %7299 = vmatprep.subr.msk.mxu0 %vm269_vm2, %v6039_v44  ;;  %v2774_v62 = vmax.f32 %v8391_v61, 0.0 }
 0x2b3   : > { %1094 = vrot.lane.b32.xlu1 %v1090_v33, %s7599_s6 }
 0x2b7   : > { %1096 = vrot.lane.b32.xlu1 %v1091_v48, %s7599_s6 }
 0x2b8   : > { %7297 = vmatmul.mubr.msk.f32.vlgmr.msra.gmra.mrb[6].mxu0 %vm265_vm4, %v7294_v50 }
 0x2b9   : > { %7300 = vmatpush1.msk.msra.mxu0 %vm269_vm2, %v6038_v16  ;;  %6114 = vmatprep.mubr.f32.mxu0 %v7600_v5 }
 0x2c0   : > { %7301 = vmatmul.mubr.msk.f32.vlgmr.msra.gmra.mrb[6].mxu0 %vm265_vm4, %v7298_v51  ;;  %v7102_v51 = vld [vmem:[%s9100_s3 + $0x10] sm:$0xf] }
 0x317   : > { %v4440_v54 = vpop.f32.mrb[4].mxu0 }
 0x318   : > { %v4442_v49 = vpop.f32.mrb[5].mxu0  ;;  %v8438_v4 = vadd.f32 %v4440_v54, %v8344_v39 }
 0x319   : > { %v8454_v52 = vadd.f32 %v4442_v49, %v8344_v39 }
 0x31a   : > { %v4449_v15 = vmax.f32 %v8438_v4, 0.0 }
 0x31b   : > { %v4450_v25 = vmax.f32 %v8454_v52, 0.0 }
 0x325   : > { %v1095_v55 = vpop.permute.xlu1 %1094 }
 0x326   : > { %v1102_v53 = vsel %vm242_vm0, 0.0, %v1095_v55 }
 0x327   : > { %v1104_v10 = vsel %vm7764_vm5, %v1102_v53, 0.0 }
 0x329   : > { %v1097_v56 = vpop.permute.xlu1 %1096 }
 0x32a   : > { %v1098_v58 = vsel %vm242_vm0, %v1095_v55, %v1097_v56  ;;  %v1103_v59 = vsel %vm242_vm0, %v1097_v56, 0.0 }
 0x32b   : > { %1115 = vrot.lane.b32.xlu1 %v1103_v59, %s7601_s7  ;;  %1113 = vrot.lane.b32.xlu0 %v1098_v58, %s7601_s7  ;;  %v1105_v9 = vsel %vm7756_vm3, %v1098_v58, 0.0 }
 0x32f   : > { %1111 = vrot.lane.b32.xlu0 %v1102_v53, %s7601_s7  ;;  %2777 = vrot.lane.b32.xlu1 %v2773_v60, %s7599_s6 }
 0x333   : > { %2779 = vrot.lane.b32.xlu0 %v2774_v62, %s7599_s6  ;;  %1279 = vrot.lane.b32.xlu1 %v1098_v58, %s7602_s8 }
 0x337   : > { %1281 = vrot.lane.b32.xlu0 %v1103_v59, %s7602_s8  ;;  %1277 = vrot.lane.b32.xlu1 %v1102_v53, %s7602_s8 }
 0x33b   : > { %1375 = vrot.lane.b32.xlu0 %v1098_v58, %s7603_s9  ;;  %1377 = vrot.lane.b32.xlu1 %v1103_v59, %s7603_s9 }
 0x33f   : > { %1373 = vrot.lane.b32.xlu0 %v1102_v53, %s7603_s9  ;;  %1553 = vrot.lane.b32.xlu1 %v1098_v58, %s7604_s10 }
 0x343   : > { %1555 = vrot.lane.b32.xlu0 %v1103_v59, %s7604_s10  ;;  %1551 = vrot.lane.b32.xlu1 %v1102_v53, %s7604_s10 }
 0x347   : > { %1649 = vrot.lane.b32.xlu0 %v1098_v58, %s7605_s11  ;;  %1651 = vrot.lane.b32.xlu1 %v1103_v59, %s7605_s11 }
 0x34b   : > { %1647 = vrot.lane.b32.xlu0 %v1102_v53, %s7605_s11  ;;  %1747 = vrot.lane.b32.xlu1 %v1098_v58, %s7606_s12 }
 0x34f   : > { %1749 = vrot.lane.b32.xlu0 %v1103_v59, %s7606_s12  ;;  %1745 = vrot.lane.b32.xlu1 %v1102_v53, %s7606_s12 }
 0x353   : > { %1835 = vrot.lane.b32.xlu0 %v1098_v58, %s7607_s13  ;;  %1837 = vrot.lane.b32.xlu1 %v1103_v59, %s7607_s13 }
 0x357   : > { %1833 = vrot.lane.b32.xlu0 %v1102_v53, %s7607_s13  ;;  %v7106_v53 = vld [vmem:[%s9100_s3 + $0x14] sm:$0xf] }
 0x393   : > { %v8420_v63 = vpop.f32.mrb[6].mxu0 }
 0x394   : > { %v8422_v45 = vpop.f32.mrb[7].mxu0 }
 0x39d   : > { %v1116_v0 = vpop.permute.xlu1 %1115  ;;  %v1114_v1 = vpop.permute.xlu0 %1113 }
 0x39e   : > { %v1118_v2 = vsel %vm262_vm1, %v1114_v1, %v1116_v0 }
 0x39f   : > { %7088 = vmatprep.subr.msk.mxu1 %vm269_vm2, %v1118_v2 }
 0x3a1   : > { %v1112_v8 = vpop.permute.xlu0 %1111  ;;  %v2778_v3 = vpop.permute.xlu1 %2777 }
 0x3a2   : > { %v1117_v7 = vsel %vm262_vm1, %v1112_v8, %v1114_v1  ;;  %v8460_v19 = vsel %vm242_vm0, 0.0, %v2778_v3 }
 0x3a3   : > { %7089 = vmatpush1.msk.msra.mxu1 %vm269_vm2, %v1117_v7 }
 0x3a4   : > { %7090 = vmatmul.mubr.msk.f32.vlgmr.msra.gmra.mrb[0].mxu1 %vm265_vm4, %v7087_v6  ;;  %7091 = vmatprep.subr.msk.mxu1 %vm269_vm2, %v1105_v9 }
 0x3a5   : > { %7092 = vmatpush1.msk.msra.mxu1 %vm269_vm2, %v1104_v10  ;;  %v2780_v41 = vpop.permute.xlu0 %2779  ;;  %v1280_v11 = vpop.permute.xlu1 %1279  ;;  %1270 = vmatprep.mubr.f32.mxu1 %v7600_v5 }
 0x3a6   : > { %v8443_v12 = vsel %vm242_vm0, %v2778_v3, %v2780_v41  ;;  %v8446_v14 = vsel %vm242_vm0, %v2780_v41, 0.0  ;;  %v7110_v3 = vld [vmem:[%s9100_s3 + $0x18] sm:$0xf] }
 0x3a7   : > { %2797 = vrot.lane.b32.xlu0 %v8446_v14, %s7601_s7  ;;  %2795 = vrot.lane.b32.xlu1 %v8443_v12, %s7601_s7 }
 0x3a9   : > { %v1282_v22 = vpop.permute.xlu0 %1281  ;;  %v1278_v17 = vpop.permute.xlu1 %1277 }
 0x3aa   : > { %v1284_v20 = vsel %vm431_vm6, %v1280_v11, %v1282_v22  ;;  %v1283_v21 = vsel %vm431_vm6, %v1278_v17, %v1280_v11  ;;  %v7114_v11 = vld [vmem:[%s9100_s3 + $0x1c] sm:$0xf]  ;;  %v7118_v22 = vld [vmem:[%s9100_s3 + $0x20] sm:$0xf] }
 0x3ab   : > { %v1288_v23 = vsel %vm7789_vm7, %v1284_v20, 0.0  ;;  %v1287_v37 = vsel %vm7811_vm8, %v1283_v21, 0.0  ;;  %4453 = vrot.lane.b32.xlu0 %v4449_v15, %s7599_s6  ;;  %2793 = vrot.lane.b32.xlu1 %v8460_v19, %s7601_s7 }
 0x3ac   : > { %7093 = vmatmul.mubr.msk.f32.vlgmr.msra.gmra.mrb[0].mxu1 %vm265_vm4, %v1106_v18  ;;  %7095 = vmatprep.subr.msk.mxu1 %vm269_vm2, %v1288_v23 }
 0x3ad   : > { %v1376_v26 = vpop.permute.xlu0 %1375  ;;  %7096 = vmatpush1.msk.msra.mxu1 %vm269_vm2, %v1287_v37  ;;  %v1378_v28 = vpop.permute.xlu1 %1377  ;;  %1364 = vmatprep.mubr.f32.mxu1 %v7600_v5  ;;  %v7158_v37 = vld [vmem:[%s9100_s3 + $0x4] sm:$0xf] }
 0x3ae   : > { %v1380_v29 = vsel %vm528_vm9, %v1376_v26, %v1378_v28  ;;  %v2788_v28 = vsel %vm7756_vm3, %v8443_v12, 0.0 }
 0x3af   : > { %v1384_v30 = vsel %vm7756_vm3, %v1380_v29, 0.0  ;;  %2961 = vrot.lane.b32.xlu0 %v8443_v12, %s7602_s8  ;;  %4455 = vrot.lane.b32.xlu1 %v4450_v25, %s7599_s6  ;;  %v2787_v29 = vsel %vm7764_vm5, %v8460_v19, 0.0 }
 0x3b0   : > { %7099 = vmatprep.subr.msk.mxu1 %vm269_vm2, %v1384_v30  ;;  %v8611_v30 = vadd.f32 %v8420_v63, %v8344_v39 }
 0x3b1   : > { %v1374_v31 = vpop.permute.xlu0 %1373  ;;  %v1554_v32 = vpop.permute.xlu1 %1553 }
 0x3b2   : > { %v1379_v36 = vsel %vm528_vm9, %v1374_v31, %v1376_v26  ;;  %v6125_v63 = vmax.f32 %v8611_v30, 0.0 }
 0x3b3   : > { %v1383_v38 = vsel %vm7764_vm5, %v1379_v36, 0.0  ;;  %2959 = vrot.lane.b32.xlu0 %v8460_v19, %s7602_s8  ;;  %2963 = vrot.lane.b32.xlu1 %v8446_v14, %s7602_s8 }
 0x3b4   : > { %7097 = vmatmul.mubr.msk.f32.vlgmr.msra.gmra.mrb[0].mxu1 %vm265_vm4, %v7094_v35 }
 0x3b5   : > { %7100 = vmatpush1.msk.msra.mxu1 %vm269_vm2, %v1383_v38  ;;  %1460 = vmatprep.mubr.f32.mxu1 %v7600_v5  ;;  %v1556_v43 = vpop.permute.xlu0 %1555  ;;  %v1552_v44 = vpop.permute.xlu1 %1551 }
 0x3b6   : > { %7103 = vmatprep.subr.msk.mxu1 %vm269_vm2, %v1091_v48  ;;  %v1558_v13 = vsel %vm707_vm10, %v1554_v32, %v1556_v43  ;;  %v1557_v16 = vsel %vm707_vm10, %v1552_v44, %v1554_v32  ;;  %v2789_v43 = vld [vmem:[%s9100_s3] sm:$0xf] }
 0x3b7   : > { %3058 = vrot.lane.b32.xlu0 %v8446_v14, %s7603_s9  ;;  %3056 = vrot.lane.b32.xlu1 %v8443_v12, %s7603_s9  ;;  %v1562_v46 = vsel %vm7789_vm7, %v1558_v13, 0.0  ;;  %v1561_v49 = vsel %vm7811_vm8, %v1557_v16, 0.0 }
 0x3b9   : > { %v1650_v48 = vpop.permute.xlu0 %1649  ;;  %v1652_v50 = vpop.permute.xlu1 %1651 }
 0x3ba   : > { %v1654_v40 = vsel %vm804_vm11, %v1650_v48, %v1652_v50 }
 0x3bb   : > { %3232 = vrot.lane.b32.xlu0 %v8443_v12, %s7604_s10  ;;  %3054 = vrot.lane.b32.xlu1 %v8460_v19, %s7603_s9  ;;  %v1658_v55 = vsel %vm7756_vm3, %v1654_v40, 0.0 }
 0x3bc   : > { %7101 = vmatmul.mubr.msk.f32.vlgmr.msra.gmra.mrb[0].mxu1 %vm265_vm4, %v7098_v47 }
 0x3bd   : > { %7104 = vmatpush1.msk.msra.mxu1 %vm269_vm2, %v1090_v33  ;;  %1542 = vmatprep.mubr.f32.mxu1 %v7600_v5  ;;  %v1648_v54 = vpop.permute.xlu0 %1647  ;;  %v1748_v33 = vpop.permute.xlu1 %1747 }
 0x3be   : > { %7107 = vmatprep.subr.msk.mxu1 %vm269_vm2, %v1562_v46  ;;  %v1653_v56 = vsel %vm804_vm11, %v1648_v54, %v1650_v48 }
 0x3bf   : > { %3230 = vrot.lane.b32.xlu0 %v8460_v19, %s7604_s10  ;;  %3234 = vrot.lane.b32.xlu1 %v8446_v14, %s7604_s10  ;;  %v1657_v0 = vsel %vm7764_vm5, %v1653_v56, 0.0 }
 0x3c1   : > { %v1750_v58 = vpop.permute.xlu0 %1749  ;;  %v1746_v59 = vpop.permute.xlu1 %1745 }
 0x3c2   : > { %v1752_v1 = vsel %vm903_vm12, %v1748_v33, %v1750_v58  ;;  %v1751_v7 = vsel %vm903_vm12, %v1746_v59, %v1748_v33  ;;  %v7165_v33 = vld [vmem:[%s9100_s3 + $0x8] sm:$0xf]  ;;  %v7169_v59 = vld [vmem:[%s9100_s3 + $0xc] sm:$0xf] }
 0x3c3   : > { %3329 = vrot.lane.b32.xlu0 %v8446_v14, %s7605_s11  ;;  %3327 = vrot.lane.b32.xlu1 %v8443_v12, %s7605_s11 }
 0x3c4   : > { %7105 = vmatmul.mubr.msk.f32.vlgmr.msra.gmra.mrb[0].mxu1 %vm265_vm4, %v7102_v51 }
 0x3c5   : > { %7108 = vmatpush1.msk.msra.mxu1 %vm269_vm2, %v1561_v49  ;;  %1638 = vmatprep.mubr.f32.mxu1 %v7600_v5  ;;  %v1836_v2 = vpop.permute.xlu0 %1835  ;;  %v1838_v8 = vpop.permute.xlu1 %1837 }
 0x3c6   : > { %7111 = vmatprep.subr.msk.mxu1 %vm269_vm2, %v1658_v55  ;;  %v1840_v6 = vsel %vm992_vm13, %v1836_v2, %v1838_v8 }
 0x3c7   : > { %3423 = vrot.lane.b32.xlu0 %v8443_v12, %s7606_s12  ;;  %3325 = vrot.lane.b32.xlu1 %v8460_v19, %s7605_s11  ;;  %v1844_v9 = vsel %vm7789_vm7, %v1840_v6, 0.0 }
 0x3c9   : > { %v1834_v10 = vpop.permute.xlu0 %1833 }
 0x3ca   : > { %v1839_v41 = vsel %vm992_vm13, %v1834_v10, %v1836_v2  ;;  %v7173_v2 = vld [vmem:[%s9100_s3 + $0x10] sm:$0xf] }
 0x3cb   : > { %3421 = vrot.lane.b32.xlu0 %v8460_v19, %s7606_s12  ;;  %3425 = vrot.lane.b32.xlu1 %v8446_v14, %s7606_s12 }
 0x3cc   : > { %7109 = vmatmul.mubr.msk.f32.vlgmr.msra.gmra.mrb[0].mxu1 %vm265_vm4, %v7106_v53 }
 0x3cd   : > { %7112 = vmatpush1.msk.msra.mxu1 %vm269_vm2, %v1657_v0  ;;  %1734 = vmatprep.mubr.f32.mxu1 %v7600_v5 }
 0x3ce   : > { %7115 = vmatprep.subr.msk.mxu1 %vm269_vm2, %v1752_v1 }
 0x3cf   : > { %3513 = vrot.lane.b32.xlu0 %v8446_v14, %s7607_s13  ;;  %3511 = vrot.lane.b32.xlu1 %v8443_v12, %s7607_s13  ;;  %v1843_v14 = vsel %vm7811_vm8, %v1839_v41, 0.0  ;;  %v7177_v41 = vld [vmem:[%s9100_s3 + $0x14] sm:$0xf] }
 0x3d3   : > { %3509 = vrot.lane.b32.xlu1 %v8460_v19, %s7607_s13  ;;  %v8628_v19 = vadd.f32 %v8422_v45, %v8344_v39 }
 0x3d4   : > { %7113 = vmatmul.mubr.msk.f32.vlgmr.msra.gmra.mrb[0].mxu1 %vm265_vm4, %v7110_v3 }
 0x3d5   : > { %7116 = vmatpush1.msk.msra.mxu1 %vm269_vm2, %v1751_v7  ;;  %1824 = vmatprep.mubr.f32.mxu1 %v7600_v5  ;;  %v6126_v45 = vmax.f32 %v8628_v19, 0.0  ;;  %v7532_v19 = vld [vmem:[%s7689_s5 + $0x8] sm:$0xff] }
 0x3d6   : > { %7119 = vmatprep.subr.msk.mxu1 %vm269_vm2, %v1844_v9 }
 0x3dc   : > { %7117 = vmatmul.mubr.msk.f32.vlgmr.msra.gmra.mrb[0].mxu1 %vm265_vm4, %v7114_v11 }
 0x3dd   : > { %7120 = vmatpush1.msk.msra.mxu1 %vm269_vm2, %v1843_v14  ;;  %1920 = vmatprep.mubr.f32.mxu1 %v7600_v5 }
 0x3e4   : > { %7121 = vmatmul.mubr.msk.f32.vlgmr.msra.gmra.mrb[0].mxu1 %vm265_vm4, %v7118_v22 }
 0x3e5   : > { %2872 = vmatprep.mubr.f32.mxu1 %v7600_v5 }
 0x419   : > { %v2798_v17 = vpop.permute.xlu0 %2797  ;;  %v2796_v18 = vpop.permute.xlu1 %2795 }
 0x41a   : > { %v2800_v20 = vsel %vm262_vm1, %v2796_v18, %v2798_v17 }
 0x41b   : > { %7159 = vmatprep.subr.msk.mxu1 %vm269_vm2, %v2800_v20 }
 0x41d   : > { %v4454_v21 = vpop.permute.xlu0 %4453  ;;  %v2794_v23 = vpop.permute.xlu1 %2793 }
 0x41e   : > { %v2799_v26 = vsel %vm262_vm1, %v2794_v23, %v2796_v18  ;;  %v8634_v44 = vsel %vm242_vm0, 0.0, %v4454_v21  ;;  %v7181_v18 = vld [vmem:[%s9100_s3 + $0x18] sm:$0xf] }
 0x41f   : > { %7160 = vmatpush1.msk.msra.mxu1 %vm269_vm2, %v2799_v26 }
 0x420   : > { %7161 = vmatmul.mubr.msk.f32.vlgmr.msra.gmra.mrb[2].mxu1 %vm265_vm4, %v7158_v37  ;;  %7162 = vmatprep.subr.msk.mxu1 %vm269_vm2, %v2788_v28  ;;  %v7185_v28 = vld [vmem:[%s9100_s3 + $0x1c] sm:$0xf] }
 0x421   : > { %v2962_v31 = vpop.permute.xlu0 %2961  ;;  %7163 = vmatpush1.msk.msra.mxu1 %vm269_vm2, %v2787_v29  ;;  %v4456_v32 = vpop.permute.xlu1 %4455  ;;  %2952 = vmatprep.mubr.f32.mxu1 %v7600_v5 }
 0x422   : > { %v8616_v12 = vsel %vm242_vm0, %v4454_v21, %v4456_v32  ;;  %v8619_v35 = vsel %vm242_vm0, %v4456_v32, 0.0 }
 0x423   : > { %4473 = vrot.lane.b32.xlu1 %v8619_v35, %s7601_s7  ;;  %4471 = vrot.lane.b32.xlu0 %v8616_v12, %s7601_s7 }
 0x425   : > { %v2960_v36 = vpop.permute.xlu0 %2959  ;;  %v2964_v38 = vpop.permute.xlu1 %2963 }
 0x426   : > { %v2965_v47 = vsel %vm431_vm6, %v2960_v36, %v2962_v31  ;;  %v2966_v13 = vsel %vm431_vm6, %v2962_v31, %v2964_v38  ;;  %v7189_v31 = vld [vmem:[%s9100_s3 + $0x20] sm:$0xf] }
 0x427   : > { %v2969_v46 = vsel %vm7811_vm8, %v2965_v47, 0.0  ;;  %v2970_v39 = vsel %vm7789_vm7, %v2966_v13, 0.0  ;;  %6129 = vrot.lane.b32.xlu1 %v6125_v63, %s7599_s6  ;;  %4469 = vrot.lane.b32.xlu0 %v8634_v44, %s7601_s7  ;;  %v7230_v47 = vld [vmem:[%s9100_s3 + $0x4] sm:$0xf] }
 0x428   : > { %7164 = vmatmul.mubr.msk.f32.vlgmr.msra.gmra.mrb[2].mxu1 %vm265_vm4, %v2789_v43  ;;  %7166 = vmatprep.subr.msk.mxu1 %vm269_vm2, %v2970_v39  ;;  %v4463_v39 = vsel %vm7764_vm5, %v8634_v44, 0.0 }
 0x429   : > { %v3059_v48 = vpop.permute.xlu0 %3058  ;;  %7167 = vmatpush1.msk.msra.mxu1 %vm269_vm2, %v2969_v46  ;;  %v3057_v50 = vpop.permute.xlu1 %3056  ;;  %3045 = vmatprep.mubr.f32.mxu1 %v7600_v5  ;;  %v4464_v46 = vsel %vm7756_vm3, %v8616_v12, 0.0 }
 0x42a   : > { %v3061_v16 = vsel %vm528_vm9, %v3057_v50, %v3059_v48 }
 0x42b   : > { %v3065_v51 = vsel %vm7756_vm3, %v3061_v16, 0.0  ;;  %4637 = vrot.lane.b32.xlu1 %v8616_v12, %s7602_s8  ;;  %6131 = vrot.lane.b32.xlu0 %v6126_v45, %s7599_s6  ;;  %s191_s6 = sand.u32 1, %s7589_s16  }
 0x42c   : > { %7170 = vmatprep.subr.msk.mxu1 %vm269_vm2, %v3065_v51 }
 0x42d   : > { %v3233_v40 = vpop.permute.xlu0 %3232  ;;  %v3055_v54 = vpop.permute.xlu1 %3054 }
 0x42e   : > { %v3060_v49 = vsel %vm528_vm9, %v3055_v54, %v3057_v50 }
 0x42f   : > { %v3064_v55 = vsel %vm7764_vm5, %v3060_v49, 0.0  ;;  %4635 = vrot.lane.b32.xlu1 %v8634_v44, %s7602_s8  ;;  %4639 = vrot.lane.b32.xlu0 %v8619_v35, %s7602_s8 }
 0x430   : > { %7168 = vmatmul.mubr.msk.f32.vlgmr.msra.gmra.mrb[2].mxu1 %vm265_vm4, %v7165_v33 }
 0x431   : > { %7171 = vmatpush1.msk.msra.mxu1 %vm269_vm2, %v3064_v55  ;;  %3140 = vmatprep.mubr.f32.mxu1 %v7600_v5  ;;  %v3231_v56 = vpop.permute.xlu0 %3230  ;;  %v3235_v58 = vpop.permute.xlu1 %3234 }
 0x432   : > { %7174 = vmatprep.subr.msk.mxu1 %vm269_vm2, %v2774_v62  ;;  %v3237_v53 = vsel %vm707_vm10, %v3233_v40, %v3235_v58  ;;  %v3236_v1 = vsel %vm707_vm10, %v3231_v56, %v3233_v40  ;;  %v4465_v40 = vld [vmem:[%s9100_s3] sm:$0xf] }
 0x433   : > { %4734 = vrot.lane.b32.xlu1 %v8619_v35, %s7603_s9  ;;  %4732 = vrot.lane.b32.xlu0 %v8616_v12, %s7603_s9  ;;  %v3241_v61 = vsel %vm7789_vm7, %v3237_v53, 0.0  ;;  %v3240_v3 = vsel %vm7811_vm8, %v3236_v1, 0.0  ;;  %v7237_v1 = vld [vmem:[%s9100_s3 + $0x8] sm:$0xf] }
 0x435   : > { %v3330_v62 = vpop.permute.xlu0 %3329  ;;  %v3328_v0 = vpop.permute.xlu1 %3327 }
 0x436   : > { %v3332_v57 = vsel %vm804_vm11, %v3328_v0, %v3330_v62 }
 0x437   : > { %4908 = vrot.lane.b32.xlu1 %v8616_v12, %s7604_s10  ;;  %4730 = vrot.lane.b32.xlu0 %v8634_v44, %s7603_s9  ;;  %v3336_v6 = vsel %vm7756_vm3, %v3332_v57, 0.0 }
 0x438   : > { %7172 = vmatmul.mubr.msk.f32.vlgmr.msra.gmra.mrb[2].mxu1 %vm265_vm4, %v7169_v59 }
 0x439   : > { %7175 = vmatpush1.msk.msra.mxu1 %vm269_vm2, %v2773_v60  ;;  %3221 = vmatprep.mubr.f32.mxu1 %v7600_v5  ;;  %v3424_v8 = vpop.permute.xlu0 %3423  ;;  %v3326_v60 = vpop.permute.xlu1 %3325 }
 0x43a   : > { %7178 = vmatprep.subr.msk.mxu1 %vm269_vm2, %v3241_v61  ;;  %v3331_v7 = vsel %vm804_vm11, %v3326_v60, %v3328_v0 }
 0x43b   : > { %4906 = vrot.lane.b32.xlu1 %v8634_v44, %s7604_s10  ;;  %4910 = vrot.lane.b32.xlu0 %v8619_v35, %s7604_s10  ;;  %v3335_v11 = vsel %vm7764_vm5, %v3331_v7, 0.0 }
 0x43d   : > { %v3422_v9 = vpop.permute.xlu0 %3421  ;;  %v3426_v10 = vpop.permute.xlu1 %3425 }
 0x43e   : > { %v3428_v14 = vsel %vm903_vm12, %v3424_v8, %v3426_v10  ;;  %v3427_v21 = vsel %vm903_vm12, %v3422_v9, %v3424_v8  ;;  %v7531_v9 = vld [vmem:[%s7689_s5] sm:$0xff] }
 0x43f   : > { %5005 = vrot.lane.b32.xlu1 %v8619_v35, %s7605_s11  ;;  %5003 = vrot.lane.b32.xlu0 %v8616_v12, %s7605_s11  ;;  %v1930_v10 = vcombine.high %v7531_v9, %v7531_v9 }
 0x440   : > { %7176 = vmatmul.mubr.msk.f32.vlgmr.msra.gmra.mrb[2].mxu1 %vm265_vm4, %v7173_v2 }
 0x441   : > { %7179 = vmatpush1.msk.msra.mxu1 %vm269_vm2, %v3240_v3  ;;  %3316 = vmatprep.mubr.f32.mxu1 %v7600_v5  ;;  %v3514_v22 = vpop.permute.xlu0 %3513  ;;  %v3512_v17 = vpop.permute.xlu1 %3511  ;;  %v7241_v3 = vld [vmem:[%s9100_s3 + $0xc] sm:$0xf] }
 0x442   : > { %7182 = vmatprep.subr.msk.mxu1 %vm269_vm2, %v3336_v6  ;;  %v3516_v20 = vsel %vm992_vm13, %v3512_v17, %v3514_v22 }
 0x443   : > { %5099 = vrot.lane.b32.xlu1 %v8616_v12, %s7606_s12  ;;  %5001 = vrot.lane.b32.xlu0 %v8634_v44, %s7605_s11  ;;  %v3520_v23 = vsel %vm7789_vm7, %v3516_v20, 0.0 }
 0x445   : > { %v3510_v37 = vpop.permute.xlu1 %3509 }
 0x446   : > { %v3515_v26 = vsel %vm992_vm13, %v3510_v37, %v3512_v17 }
 0x447   : > { %5097 = vrot.lane.b32.xlu1 %v8634_v44, %s7606_s12  ;;  %5101 = vrot.lane.b32.xlu0 %v8619_v35, %s7606_s12  ;;  %v3519_v29 = vsel %vm7811_vm8, %v3515_v26, 0.0 }
 0x448   : > { %7180 = vmatmul.mubr.msk.f32.vlgmr.msra.gmra.mrb[2].mxu1 %vm265_vm4, %v7177_v41 }
 0x449   : > { %7183 = vmatpush1.msk.msra.mxu1 %vm269_vm2, %v3335_v11  ;;  %3411 = vmatprep.mubr.f32.mxu1 %v7600_v5 }
 0x44a   : > { %7186 = vmatprep.subr.msk.mxu1 %vm269_vm2, %v3428_v14 }
 0x44b   : > { %5189 = vrot.lane.b32.xlu1 %v8619_v35, %s7607_s13  ;;  %5187 = vrot.lane.b32.xlu0 %v8616_v12, %s7607_s13 }
 0x44f   : > { %5185 = vrot.lane.b32.xlu0 %v8634_v44, %s7607_s13 }
 0x450   : > { %7184 = vmatmul.mubr.msk.f32.vlgmr.msra.gmra.mrb[2].mxu1 %vm265_vm4, %v7181_v18 }
 0x451   : > { %7187 = vmatpush1.msk.msra.mxu1 %vm269_vm2, %v3427_v21  ;;  %3500 = vmatprep.mubr.f32.mxu1 %v7600_v5 }
 0x452   : > { %7190 = vmatprep.subr.msk.mxu1 %vm269_vm2, %v3520_v23 }
 0x458   : > { %7188 = vmatmul.mubr.msk.f32.vlgmr.msra.gmra.mrb[2].mxu1 %vm265_vm4, %v7185_v28 }
 0x459   : > { %7191 = vmatpush1.msk.msra.mxu1 %vm269_vm2, %v3519_v29  ;;  %3595 = vmatprep.mubr.f32.mxu1 %v7600_v5 }
 0x460   : > { %7192 = vmatmul.mubr.msk.f32.vlgmr.msra.gmra.mrb[2].mxu1 %vm265_vm4, %v7189_v31  ;;  %v7249_v31 = vld [vmem:[%s9100_s3 + $0x14] sm:$0xf] }
 0x461   : > { %4548 = vmatprep.mubr.f32.mxu1 %v7600_v5 }
 0x495   : > { %v4472_v32 = vpop.permute.xlu0 %4471  ;;  %v4474_v35 = vpop.permute.xlu1 %4473 }
 0x496   : > { %v4476_v36 = vsel %vm262_vm1, %v4472_v32, %v4474_v35 }
 0x497   : > { %7231 = vmatprep.subr.msk.mxu1 %vm269_vm2, %v4476_v36 }
 0x499   : > { %v4470_v38 = vpop.permute.xlu0 %4469  ;;  %v6130_v43 = vpop.permute.xlu1 %6129 }
 0x49a   : > { %v4475_v13 = vsel %vm262_vm1, %v4470_v38, %v4472_v32  ;;  %v8799_v54 = vsel %vm242_vm0, 0.0, %v6130_v43 }
 0x49b   : > { %7232 = vmatpush1.msk.msra.mxu1 %vm269_vm2, %v4475_v13 }
 0x49c   : > { %7233 = vmatmul.mubr.msk.f32.vlgmr.msra.gmra.mrb[4].mxu1 %vm265_vm4, %v7230_v47  ;;  %7234 = vmatprep.subr.msk.mxu1 %vm269_vm2, %v4464_v46 }
 0x49d   : > { %v6132_v48 = vpop.permute.xlu0 %6131  ;;  %7235 = vmatpush1.msk.msra.mxu1 %vm269_vm2, %v4463_v39  ;;  %v4638_v50 = vpop.permute.xlu1 %4637  ;;  %4628 = vmatprep.mubr.f32.mxu1 %v7600_v5 }
 0x49e   : > { %v8786_v16 = vsel %vm242_vm0, %v6130_v43, %v6132_v48  ;;  %v8789_v51 = vsel %vm242_vm0, %v6132_v48, 0.0  ;;  %v7253_v43 = vld [vmem:[%s9100_s3 + $0x18] sm:$0xf] }
 0x49f   : > { %6149 = vrot.lane.b32.xlu0 %v8789_v51, %s7601_s7  ;;  %6147 = vrot.lane.b32.xlu1 %v8786_v16, %s7601_s7 }
 0x4a1   : > { %v4640_v12 = vpop.permute.xlu0 %4639  ;;  %v4636_v44 = vpop.permute.xlu1 %4635 }
 0x4a2   : > { %v4642_v33 = vsel %vm431_vm6, %v4638_v50, %v4640_v12  ;;  %v4641_v49 = vsel %vm431_vm6, %v4636_v44, %v4638_v50  ;;  %v7257_v50 = vld [vmem:[%s9100_s3 + $0x1c] sm:$0xf]  ;;  %v7261_v12 = vld [vmem:[%s9100_s3 + $0x20] sm:$0xf] }
 0x4a3   : > { %v4646_v55 = vsel %vm7789_vm7, %v4642_v33, 0.0  ;;  %v4645_v56 = vsel %vm7811_vm8, %v4641_v49, 0.0  ;;  %6313 = vrot.lane.b32.xlu0 %v8786_v16, %s7602_s8  ;;  %6145 = vrot.lane.b32.xlu1 %v8799_v54, %s7601_s7 }
 0x4a4   : > { %7236 = vmatmul.mubr.msk.f32.vlgmr.msra.gmra.mrb[4].mxu1 %vm265_vm4, %v4465_v40  ;;  %7238 = vmatprep.subr.msk.mxu1 %vm269_vm2, %v4646_v55 }
 0x4a5   : > { %v4733_v58 = vpop.permute.xlu0 %4732  ;;  %7239 = vmatpush1.msk.msra.mxu1 %vm269_vm2, %v4645_v56  ;;  %v4735_v59 = vpop.permute.xlu1 %4734  ;;  %4721 = vmatprep.mubr.f32.mxu1 %v7600_v5  ;;  %v7302_v56 = vld [vmem:[%s9100_s3 + $0x4] sm:$0xf] }
 0x4a6   : > { %v4737_v53 = vsel %vm528_vm9, %v4733_v58, %v4735_v59  ;;  %v6140_v59 = vsel %vm7756_vm3, %v8786_v16, 0.0 }
 0x4a7   : > { %v4741_v61 = vsel %vm7756_vm3, %v4737_v53, 0.0  ;;  %6311 = vrot.lane.b32.xlu0 %v8799_v54, %s7602_s8  ;;  %6315 = vrot.lane.b32.xlu1 %v8789_v51, %s7602_s8  ;;  %v6139_v53 = vsel %vm7764_vm5, %v8799_v54, 0.0 }
 0x4a8   : > { %7242 = vmatprep.subr.msk.mxu1 %vm269_vm2, %v4741_v61 }
 0x4a9   : > { %v4731_v62 = vpop.permute.xlu0 %4730  ;;  %v4909_v0 = vpop.permute.xlu1 %4908 }
 0x4aa   : > { %v4736_v2 = vsel %vm528_vm9, %v4731_v62, %v4733_v58 }
 0x4ab   : > { %v4740_v57 = vsel %vm7764_vm5, %v4736_v2, 0.0  ;;  %6410 = vrot.lane.b32.xlu0 %v8789_v51, %s7603_s9  ;;  %6408 = vrot.lane.b32.xlu1 %v8786_v16, %s7603_s9 }
 0x4ac   : > { %7240 = vmatmul.mubr.msk.f32.vlgmr.msra.gmra.mrb[4].mxu1 %vm265_vm4, %v7237_v1 }
 0x4ad   : > { %7243 = vmatpush1.msk.msra.mxu1 %vm269_vm2, %v4740_v57  ;;  %4816 = vmatprep.mubr.f32.mxu1 %v7600_v5  ;;  %v4911_v8 = vpop.permute.xlu0 %4910  ;;  %v4907_v60 = vpop.permute.xlu1 %4906 }
 0x4ae   : > { %7246 = vmatprep.subr.msk.mxu1 %vm269_vm2, %v4450_v25  ;;  %v4913_v6 = vsel %vm707_vm10, %v4909_v0, %v4911_v8  ;;  %v4912_v4 = vsel %vm707_vm10, %v4907_v60, %v4909_v0 }
 0x4af   : > { %6584 = vrot.lane.b32.xlu0 %v8786_v16, %s7604_s10  ;;  %6406 = vrot.lane.b32.xlu1 %v8799_v54, %s7603_s9  ;;  %v4917_v52 = vsel %vm7789_vm7, %v4913_v6, 0.0  ;;  %s7048_s9 = sshll.u32 %s191_s6, 5  ;;  %v4916_v23 = vsel %vm7811_vm8, %v4912_v4, 0.0 }
 0x4b0   : > { %s8883_s23 = scalar_lea.vmem [#allocation2], %s7048_s9 }
 0x4b1   : > { %v5004_v25 = vpop.permute.xlu0 %5003  ;;  %v5006_v7 = vpop.permute.xlu1 %5005 }
 0x4b2   : > { %v5008_v17 = vsel %vm804_vm11, %v5004_v25, %v5006_v7  ;;  %v7309_v7 = vld [vmem:[%s9100_s3 + $0x8] sm:$0xf] }
 0x4b3   : > { %6582 = vrot.lane.b32.xlu0 %v8799_v54, %s7604_s10  ;;  %6586 = vrot.lane.b32.xlu1 %v8789_v51, %s7604_s10  ;;  %v5012_v37 = vsel %vm7756_vm3, %v5008_v17, 0.0  ;;  %s6982_s10 = sshll.u32 %s8883_s23, 4  ;;  %s9046_s10 = int_to_ptr.vmem [resolvable:$true] %s6982_s10 }
 0x4b4   : > { %7244 = vmatmul.mubr.msk.f32.vlgmr.msra.gmra.mrb[4].mxu1 %vm265_vm4, %v7241_v3  ;;  %s7535_s28 = scalar_lea.vmem %s9046_s10, 512 }
 0x4b5   : > { %7247 = vmatpush1.msk.msra.mxu1 %vm269_vm2, %v4449_v15  ;;  %4897 = vmatprep.mubr.f32.mxu1 %v7600_v5  ;;  %v7245_v15 = vld [vmem:[%s9100_s3 + $0x10] sm:$0xf]  ;;  %v5002_v18 = vpop.permute.xlu0 %5001  ;;  %v5100_v20 = vpop.permute.xlu1 %5099  ;;  %p7536_p11 = scmp.ne.s32.totalorder %s9046_s10, %s7535_s28 }
 0x4b6   : > { %7250 = vmatprep.subr.msk.mxu1 %vm269_vm2, %v4917_v52  ;;  %v5007_v26 = vsel %vm804_vm11, %v5002_v18, %v5004_v25 }
 0x4b7   : > { %6681 = vrot.lane.b32.xlu0 %v8789_v51, %s7605_s11  ;;  %6679 = vrot.lane.b32.xlu1 %v8786_v16, %s7605_s11  ;;  %v1922_v41 = vpop.f32.mrb[0].mxu1  ;;  %v5011_v32 = vsel %vm7764_vm5, %v5007_v26, 0.0  ;;  %p7537_p12 = pnand %p7536_p11, %p7675_p5 }
 0x4b8   : > { %v1932_v11 = vadd.f32 %v7531_v9, %v1922_v41  ;;  %v1924_v14 = vpop.f32.mrb[1].mxu1 }
 0x4b9   : > { %v1933_v22 = vadd.f32 %v1930_v10, %v1924_v14  ;;  %v5102_v28 = vpop.permute.xlu0 %5101  ;;  %v5098_v29 = vpop.permute.xlu1 %5097  ;;  %p7538_p13 = pneg %p7537_p12 }
 0x4ba   : > { %v5104_v35 = vsel %vm903_vm12, %v5100_v20, %v5102_v28  ;;  %v5103_v13 = vsel %vm903_vm12, %v5098_v29, %v5100_v20 }
 0x4bb   : > { %6775 = vrot.lane.b32.xlu0 %v8786_v16, %s7606_s12  ;;  %6677 = vrot.lane.b32.xlu1 %v8799_v54, %s7605_s11  ;;  %v1936_v21 = vcombine.low %v1932_v11, %v1933_v22  ;;  %v7313_v11 = vld [vmem:[%s9100_s3 + $0xc] sm:$0xf] }
 0x4bc   : > { %7248 = vmatmul.mubr.msk.f32.vlgmr.msra.gmra.mrb[4].mxu1 %vm265_vm4, %v7245_v15 }
 0x4bd   : > { %7251 = vmatpush1.msk.msra.mxu1 %vm269_vm2, %v4916_v23  ;;  %4992 = vmatprep.mubr.f32.mxu1 %v7600_v5  ;;  %1938 = vst [vmem:[%s8883_s23] sm:$0xff] %v1936_v21  ;;  %v5188_v36 = vpop.permute.xlu0 %5187  ;;  %v5190_v38 = vpop.permute.xlu1 %5189  ;;  %v7317_v23 = vld [vmem:[%s9100_s3 + $0x10] sm:$0xf] }
 0x4be   : > { %7254 = vmatprep.subr.msk.mxu1 %vm269_vm2, %v5012_v37  ;;  %v5192_v47 = vsel %vm992_vm13, %v5188_v36, %v5190_v38  ;;  %v7321_v38 = vld [vmem:[%s9100_s3 + $0x14] sm:$0xf] }
 0x4bf   : > { %6773 = vrot.lane.b32.xlu0 %v8799_v54, %s7606_s12  ;;  %6777 = vrot.lane.b32.xlu1 %v8789_v51, %s7606_s12  ;;  %v5196_v46 = vsel %vm7789_vm7, %v5192_v47, 0.0  ;;  %s9051_s12 = scalar_lea.hbm %s9101_s4, %s7346_s22 }
 0x4c1   : > { %v5186_v39 = vpop.permute.xlu0 %5185 }
 0x4c2   : > { %v5191_v48 = vsel %vm992_vm13, %v5186_v39, %v5188_v36 }
 0x4c3   : > { %6865 = vrot.lane.b32.xlu0 %v8789_v51, %s7607_s13  ;;  %6863 = vrot.lane.b32.xlu1 %v8786_v16, %s7607_s13  ;;  %v5195_v51 = vsel %vm7811_vm8, %v5191_v48, 0.0 }
 0x4c4   : > { %7252 = vmatmul.mubr.msk.f32.vlgmr.msra.gmra.mrb[4].mxu1 %vm265_vm4, %v7249_v31 }
 0x4c5   : > { %7255 = vmatpush1.msk.msra.mxu1 %vm269_vm2, %v5011_v32  ;;  %5087 = vmatprep.mubr.f32.mxu1 %v7600_v5 }
 0x4c6   : > { %7258 = vmatprep.subr.msk.mxu1 %vm269_vm2, %v5104_v35 }
 0x4c7   : > { %6861 = vrot.lane.b32.xlu1 %v8799_v54, %s7607_s13  ;;  %v6141_v54 = vld [vmem:[%s9100_s3] sm:$0xf]  ;;  %s7539_s13 = sshll.u32 %s7609_s19, 4  ;;  %s7540_s13 = int_to_ptr.vmem [resolvable:$false] %s7539_s13 }
 0x4c8   : > { %s7541_s29 = scalar_lea.vmem %s7540_s13, 1024  ;;  %p7542_p0 = scmp.lt.s32.totalorder %s9046_s10, %s7540_s13 }
 0x4c9   : > { %p7543_p1 = scmp.lt.s32.totalorder %s7541_s29, %s7535_s28 }
 0x4cb   : > { %p7544_p2 = por %p7543_p1, %p7542_p0 }
 0x4cc   : > { %7256 = vmatmul.mubr.msk.f32.vlgmr.msra.gmra.mrb[4].mxu1 %vm265_vm4, %v7253_v43 }
 0x4cd   : > { %7259 = vmatpush1.msk.msra.mxu1 %vm269_vm2, %v5103_v13  ;;  %5176 = vmatprep.mubr.f32.mxu1 %v7600_v5  ;;  %p7545_p3 = pnand %p7544_p2, %p7538_p13 }
 0x4ce   : > { %7262 = vmatprep.subr.msk.mxu1 %vm269_vm2, %v5196_v46  ;;  %v7325_v46 = vld [vmem:[%s9100_s3 + $0x18] sm:$0xf] }
 0x4d4   : > { %7260 = vmatmul.mubr.msk.f32.vlgmr.msra.gmra.mrb[4].mxu1 %vm265_vm4, %v7257_v50 }
 0x4d5   : > { %7263 = vmatpush1.msk.msra.mxu1 %vm269_vm2, %v5195_v51  ;;  %5271 = vmatprep.mubr.f32.mxu1 %v7600_v5 }
 0x4dc   : > { %7264 = vmatmul.mubr.msk.f32.vlgmr.msra.gmra.mrb[4].mxu1 %vm265_vm4, %v7261_v12  ;;  %v7329_v12 = vld [vmem:[%s9100_s3 + $0x1c] sm:$0xf] }
 0x4dd   : > { %6224 = vmatprep.mubr.f32.mxu1 %v7600_v5 }
 0x511   : > { %v6150_v44 = vpop.permute.xlu0 %6149  ;;  %v6148_v40 = vpop.permute.xlu1 %6147 }
 0x512   : > { %v6152_v33 = vsel %vm262_vm1, %v6148_v40, %v6150_v44 }
 0x513   : > { %7303 = vmatprep.subr.msk.mxu1 %vm269_vm2, %v6152_v33 }
 0x515   : > { %v6314_v49 = vpop.permute.xlu0 %6313  ;;  %v6146_v55 = vpop.permute.xlu1 %6145 }
 0x516   : > { %v6151_v58 = vsel %vm262_vm1, %v6146_v55, %v6148_v40  ;;  %v7533_v40 = vld [vmem:[%s7689_s5 + $0x10] sm:$0xff] }
 0x517   : > { %7304 = vmatpush1.msk.msra.mxu1 %vm269_vm2, %v6151_v58  ;;  %v5281_v33 = vcombine.high %v7533_v40, %v7533_v40 }
 0x518   : > { %7305 = vmatmul.mubr.msk.f32.vlgmr.msra.gmra.mrb[6].mxu1 %vm265_vm4, %v7302_v56  ;;  %7306 = vmatprep.subr.msk.mxu1 %vm269_vm2, %v6140_v59  ;;  %v7534_v59 = vld [vmem:[%s7689_s5 + $0x18] sm:$0xff]  ;;  %s9056_s5 = scalar_lea.sflag [#allocation3], %s191_s6 }
 0x519   : > { %v6312_v61 = vpop.permute.xlu0 %6311  ;;  %7307 = vmatpush1.msk.msra.mxu1 %vm269_vm2, %v6139_v53  ;;  %v6316_v62 = vpop.permute.xlu1 %6315  ;;  %6304 = vmatprep.mubr.f32.mxu1 %v7600_v5 }
 0x51a   : > { %v6318_v0 = vsel %vm431_vm6, %v6314_v49, %v6316_v62  ;;  %v6317_v16 = vsel %vm431_vm6, %v6312_v61, %v6314_v49 }
 0x51b   : > { %v6322_v1 = vsel %vm7789_vm7, %v6318_v0, 0.0  ;;  %v6321_v3 = vsel %vm7811_vm8, %v6317_v16, 0.0 }
 0x51c   : > { %7310 = vmatprep.subr.msk.mxu1 %vm269_vm2, %v6322_v1 }
 0x51d   : > { %v6411_v2 = vpop.permute.xlu0 %6410  ;;  %v6409_v57 = vpop.permute.xlu1 %6408 }
 0x51e   : > { %v6413_v8 = vsel %vm528_vm9, %v6409_v57, %v6411_v2 }
 0x51f   : > { %v6417_v60 = vsel %vm7756_vm3, %v6413_v8, 0.0 }
 0x520   : > { %7308 = vmatmul.mubr.msk.f32.vlgmr.msra.gmra.mrb[6].mxu1 %vm265_vm4, %v6141_v54 }
 0x521   : > { %7311 = vmatpush1.msk.msra.mxu1 %vm269_vm2, %v6321_v3  ;;  %6397 = vmatprep.mubr.f32.mxu1 %v7600_v5  ;;  %v6407_v6 = vpop.permute.xlu1 %6406  ;;  %v6585_v52 = vpop.permute.xlu0 %6584 }
 0x522   : > { %7314 = vmatprep.subr.msk.mxu1 %vm269_vm2, %v6417_v60  ;;  %v6412_v25 = vsel %vm528_vm9, %v6407_v6, %v6409_v57 }
 0x523   : > { %v6416_v9 = vsel %vm7764_vm5, %v6412_v25, 0.0 }
 0x525   : > { %v6583_v10 = vpop.permute.xlu0 %6582  ;;  %v6587_v41 = vpop.permute.xlu1 %6586 }
 0x526   : > { %v6589_v14 = vsel %vm707_vm10, %v6585_v52, %v6587_v41  ;;  %v6588_v21 = vsel %vm707_vm10, %v6583_v10, %v6585_v52 }
 0x527   : > { %v6593_v4 = vsel %vm7789_vm7, %v6589_v14, 0.0  ;;  %v6592_v29 = vsel %vm7811_vm8, %v6588_v21, 0.0 }
 0x528   : > { %7312 = vmatmul.mubr.msk.f32.vlgmr.msra.gmra.mrb[6].mxu1 %vm265_vm4, %v7309_v7 }
 0x529   : > { %7315 = vmatpush1.msk.msra.mxu1 %vm269_vm2, %v6416_v9  ;;  %6492 = vmatprep.mubr.f32.mxu1 %v7600_v5  ;;  %v6682_v15 = vpop.permute.xlu0 %6681  ;;  %v6680_v22 = vpop.permute.xlu1 %6679 }
 0x52a   : > { %7318 = vmatprep.subr.msk.mxu1 %vm269_vm2, %v6126_v45  ;;  %v3605_v45 = vcombine.high %v7532_v19, %v7532_v19  ;;  %v6684_v30 = vsel %vm804_vm11, %v6680_v22, %v6682_v15 }
 0x52b   : > { %v6688_v31 = vsel %vm7756_vm3, %v6684_v30, 0.0 }
 0x52d   : > { %v6678_v26 = vpop.permute.xlu1 %6677 }
 0x52e   : > { %v6683_v32 = vsel %vm804_vm11, %v6678_v26, %v6680_v22 }
 0x52f   : > { %v6687_v43 = vsel %vm7764_vm5, %v6683_v32, 0.0 }
 0x530   : > { %7316 = vmatmul.mubr.msk.f32.vlgmr.msra.gmra.mrb[6].mxu1 %vm265_vm4, %v7313_v11 }
 0x531   : > { %7319 = vmatpush1.msk.msra.mxu1 %vm269_vm2, %v6125_v63  ;;  %6573 = vmatprep.mubr.f32.mxu1 %v7600_v5  ;;  %v6776_v63 = vpop.permute.xlu0 %6775  ;;  %v6778_v36 = vpop.permute.xlu1 %6777 }
 0x532   : > { %7322 = vmatprep.subr.msk.mxu1 %vm269_vm2, %v6593_v4  ;;  %v6780_v24 = vsel %vm903_vm12, %v6776_v63, %v6778_v36 }
 0x533   : > { %v3597_v17 = vpop.f32.mrb[2].mxu1 }
 0x534   : > { %v3607_v18 = vadd.f32 %v7532_v19, %v3597_v17  ;;  %v3599_v20 = vpop.f32.mrb[3].mxu1 }
 0x535   : > { %v3608_v37 = vadd.f32 %v3605_v45, %v3599_v20  ;;  %v6774_v35 = vpop.permute.xlu0 %6773  ;;  %v6864_v13 = vpop.permute.xlu1 %6863 }
 0x536   : > { %v6779_v27 = vsel %vm903_vm12, %v6774_v35, %v6776_v63 }
 0x537   : > { %v3611_v28 = vcombine.low %v3607_v18, %v3608_v37 }
 0x538   : > { %7320 = vmatmul.mubr.msk.f32.vlgmr.msra.gmra.mrb[6].mxu1 %vm265_vm4, %v7317_v23 }
 0x539   : > { %7323 = vmatpush1.msk.msra.mxu1 %vm269_vm2, %v6592_v29  ;;  %6668 = vmatprep.mubr.f32.mxu1 %v7600_v5  ;;  %7193 = vst [vmem:[%s8883_s23 + $0x8] sm:$0xff] %v3611_v28  ;;  %v6866_v47 = vpop.permute.xlu0 %6865  ;;  %v6862_v50 = vpop.permute.xlu1 %6861 }
 0x53a   : > { %7326 = vmatprep.subr.msk.mxu1 %vm269_vm2, %v6688_v31  ;;  %v6868_v39 = vsel %vm992_vm13, %v6864_v13, %v6866_v47  ;;  %v6867_v51 = vsel %vm992_vm13, %v6862_v50, %v6864_v13 }
 0x53b   : > { %v6872_v48 = vsel %vm7789_vm7, %v6868_v39, 0.0  ;;  %v6871_v44 = vsel %vm7811_vm8, %v6867_v51, 0.0 }
 0x540   : > { %7324 = vmatmul.mubr.msk.f32.vlgmr.msra.gmra.mrb[6].mxu1 %vm265_vm4, %v7321_v38 }
 0x541   : > { %7327 = vmatpush1.msk.msra.mxu1 %vm269_vm2, %v6687_v43  ;;  %6763 = vmatprep.mubr.f32.mxu1 %v7600_v5 }
 0x542   : > { %7330 = vmatprep.subr.msk.mxu1 %vm269_vm2, %v6780_v24 }
 0x548   : > { %7328 = vmatmul.mubr.msk.f32.vlgmr.msra.gmra.mrb[6].mxu1 %vm265_vm4, %v7325_v46 }
 0x549   : > { %7331 = vmatpush1.msk.msra.mxu1 %vm269_vm2, %v6779_v27  ;;  %6852 = vmatprep.mubr.f32.mxu1 %v7600_v5 }
 0x54a   : > { %7334 = vmatprep.subr.msk.mxu1 %vm269_vm2, %v6872_v48 }
 0x550   : > { %7332 = vmatmul.mubr.msk.f32.vlgmr.msra.gmra.mrb[6].mxu1 %vm265_vm4, %v7329_v12 }
 0x551   : > { %7335 = vmatpush1.msk.msra.mxu1 %vm269_vm2, %v6871_v44  ;;  %6947 = vmatprep.mubr.f32.mxu1 %v7600_v5  ;;  %v6957_v5 = vcombine.high %v7534_v59, %v7534_v59 }
 0x558   : > { %7336 = vmatmul.mubr.msk.f32.vlgmr.msra.gmra.mrb[6].mxu1 %vm265_vm4, %v7333_v34 }
 0x5af   : > { %v5273_v49 = vpop.f32.mrb[4].mxu1 }
 0x5b0   : > { %v5283_v55 = vadd.f32 %v7533_v40, %v5273_v49  ;;  %v5275_v42 = vpop.f32.mrb[5].mxu1 }
 0x5b1   : > { %v5284_v56 = vadd.f32 %v5281_v33, %v5275_v42 }
 0x5b3   : > { %v5287_v58 = vcombine.low %v5283_v55, %v5284_v56 }
 0x5b5   : > { %7265 = vst [vmem:[%s8883_s23 + $0x10] sm:$0xff] %v5287_v58 }
 0x62b   : > { %v6949_v53 = vpop.f32.mrb[6].mxu1 }
 0x62c   : > { %v6959_v61 = vadd.f32 %v7534_v59, %v6949_v53  ;;  %v6951_v62 = vpop.f32.mrb[7].mxu1 }
 0x62d   : > { %v6960_v0 = vadd.f32 %v6957_v5, %v6951_v62 }
 0x62f   : > { %v6963_v1 = vcombine.low %v6959_v61, %v6960_v0 }
 0x631   : > { %7337 = vst [vmem:[%s8883_s23 + $0x18] sm:$0xff] %v6963_v1 }
 0x632   : > { %7548 = shalt.err (!%p7545_p3)
}
 0x633   : > { %s7549_s6 = scalar_lea.hbm %s9051_s12, 512  ;;  %s7553_s7 = scalar_lea.hbm %s9101_s4, 1536 }
 0x634   : > { %p7550_p4 = scmp.ne.s32.totalorder %s9051_s12, %s7549_s6  ;;  %p7554_p9 = scmp.lt.u32.totalorder %s9051_s12, %s9101_s4 }
 0x635   : > { %p7555_p10 = scmp.lt.u32.totalorder %s7553_s7, %s7549_s6  ;;  %p7557_p12 = scmp.lt.u32.totalorder %s7549_s6, %s9051_s12 }
 0x636   : > { %p7551_p7 = pnand %p7550_p4, %p7675_p5 }
 0x637   : > { %p7556_p11 = por %p7555_p10, %p7554_p9 }
 0x638   : > { %p7552_p8 = pneg %p7551_p7 }
 0x639   : > { %p7558_p13 = por %p7557_p12, %p7556_p11 }
 0x63b   : > { %p7559_p0 = pnand %p7558_p13, %p7552_p8 }
 0x63d   : > { %7562 = shalt.err (!%p7559_p0)
}
 0x63e   : > { %s7610_s20 = smov 128   ;;  %s7611_s9 = smov 8  }
 0x63f   : > { %7475 = dma.vmem_to_hbm [thread:$0]  (%p7675_p5), %s9046_s10, 512, %s9051_s12, %s9056_s5, %s7610_s20, %s7610_s20, %s7611_s9  }
 0x640 PF: > { %p7481_p1 = scmp.ge.s32.totalorder %s7597_s18, 2  ;;  %s6997_s22 = sand.u32 1, %s7585_s15  }
 0x641   : > { %s6998_s11 = scalar_lea.sflag [#allocation3], %s6997_s22 }
 0x642   : > { %p7478_p2 = pnand %p7481_p1, %p7679_p6 }
 0x644   : > { %7580 = dma.done.wait (!%p7478_p2), %s6998_s11, 512  }
 0x645   : > { %7582 = vsyncadd (!%p7478_p2), %s6998_s11, 4294966784  ;;  %p14_p3 = scmp.ge.s32.totalorder %s7662_s21, 5   ;;  %s9112_s15 = smov %s7589_s16 }
 0x646   : > { %s9113_s16 = smov %s7593_s17  ;;  %s9114_s17 = smov %s7673_s24 }
 0x647   : > { %s9115_s18 = smov %s7662_s21  ;;  %16 = sbr.rel (!%p14_p3) target bundleno = 3 (0x3), region = 93 }
 0x64e   :  { %7003 = vsyncpa [#allocation3], 1 }
 0x64f   :  { %7005 = vsyncpa [#allocation3 + $0x1], 1 }

</bundles_post_ra>
